<compile_context>
chip_gen: v7x
topology: tpu7x:2x2x1
jax: 0.10.0
libtpu: 0.0.40
codegen_flags: <defaults>
</compile_context>

<pallas_src>
import functools

import numpy as np

import jax
import jax.numpy as jnp
from jax.experimental import pallas as pl
from jax.experimental.pallas import tpu as pltpu


_LANE = 128   # final layer padded to this lane width -> unmasked HBM store


# ----------------------------------------------------------------------------
# Fold one Conv2d(k=3, s=2, p=1) into a dense matrix acting on CHW-flattened
# feature vectors:   out_vec = in_vec @ D + bias    (bias broadcast per row).
# ----------------------------------------------------------------------------
def _dense_conv_operator(w, b, H, W):
    w = np.asarray(w, np.float32)              # [Cout, Cin, 3, 3] (PyTorch OIHW)
    b = np.asarray(b, np.float32)              # [Cout]
    Cout, Cin = w.shape[0], w.shape[1]
    Ho, Wo = (H + 1) // 2, (W + 1) // 2
    D = np.zeros((Cin, H * W, Cout, Ho * Wo), np.float32)
    for ky in range(3):
        for kx in range(3):
            wt = w[:, :, ky, kx].T             # [Cin, Cout]
            for ho in range(Ho):
                hi = 2 * ho + ky - 1
                if hi < 0 or hi >= H:
                    continue
                for wo in range(Wo):
                    wi = 2 * wo + kx - 1
                    if wi < 0 or wi >= W:
                        continue
                    D[:, hi * W + wi, :, ho * Wo + wo] += wt
    D = D.reshape(Cin * H * W, Cout * Ho * Wo)           # CHW-in -> CHW-out
    bias = np.repeat(b, Ho * Wo).reshape(1, Cout * Ho * Wo)
    return D, bias, Ho, Wo


# ----------------------------------------------------------------------------
# Fused encoder kernel: processes Bt batch elements per grid step.
#   refs = [x, (W, b) * n_layers, out]
# All layers are [Bt, F_in] @ [F_in, F_out] MXU matmuls; ReLU after every
# layer except the last (3 convs + hidden FC have ReLU, final Linear does not).
# ----------------------------------------------------------------------------
def _encoder_kernel(*refs, n_layers):
    x_ref, o_ref = refs[0], refs[-1]
    y = x_ref[...]                                        # [Bt, F0] f32
    for l in range(n_layers):
        w_ref, b_ref = refs[1 + 2 * l], refs[2 + 2 * l]
        y = jnp.dot(y, w_ref[...],
                    preferred_element_type=jnp.float32) + b_ref[...]
        if l < n_layers - 1:
            y = jnp.maximum(y, 0.0)
    o_ref[...] = y                                        # [Bt, n_out_pad] lane-dense


# ----------------------------------------------------------------------------
# Parameter init (PyTorch-equivalent layouts: conv OIHW, linear [out, in]).
# ----------------------------------------------------------------------------
def init_encoder_params(key, input_channels, N_pod, n_latent,
                        conv_channels=(16, 32, 64), fc_layers=(128,)):
    S = int(round(N_pod ** 0.5))
    if S * S != N_pod:
        raise ValueError("N_pod must be a perfect square")

    params = {"conv": [], "fc": []}
    in_ch, spatial = input_channels, S
    for out_ch in conv_channels:
        key, kw, kb = jax.random.split(key, 3)
        fan_in = in_ch * 9
        w = jax.random.normal(kw, (out_ch, in_ch, 3, 3), jnp.float32) / np.sqrt(fan_in)
        b = jax.random.normal(kb, (out_ch,), jnp.float32) * 0.01
        params["conv"].append((w, b))
        in_ch, spatial = out_ch, (spatial + 1) // 2

    dim = in_ch * spatial * spatial
    for hidden in list(fc_layers) + [n_latent]:
        key, kw, kb = jax.random.split(key, 3)
        w = jax.random.normal(kw, (hidden, dim), jnp.float32) / np.sqrt(dim)
        b = jax.random.normal(kb, (hidden,), jnp.float32) * 0.01
        params["fc"].append((w, b))
        dim = hidden

    cfg = dict(input_channels=input_channels, N_pod=N_pod, n_latent=n_latent,
               spatial=S, conv_channels=tuple(conv_channels),
               fc_layers=tuple(fc_layers))
    return params, cfg


# ----------------------------------------------------------------------------
# One-time layout plumbing: fold convs into dense operators, transpose FC
# weights, lane-pad the final layer.  All layout work lives here, not per-call.
# ----------------------------------------------------------------------------
def pack_encoder_params(params, cfg):
    H = W = cfg["spatial"]
    inputs = []

    for (w, b) in params["conv"]:
        D, bias, H, W = _dense_conv_operator(w, b, H, W)
        inputs += [jnp.asarray(D), jnp.asarray(bias)]

    final_conv_dim = params["conv"][-1][0].shape[0] * H * W
    assert params["fc"][0][0].shape[1] == final_conv_dim   # CHW flatten matches

    n_fc = len(params["fc"])
    for li, (w, b) in enumerate(params["fc"]):
        wk = jnp.transpose(jnp.asarray(w, jnp.float32))     # [in, out]
        bk = jnp.asarray(b, jnp.float32).reshape(1, -1)
        if li == n_fc - 1:
            out_dim = wk.shape[1]
            n_pad = ((out_dim + _LANE - 1) // _LANE) * _LANE
            if n_pad > out_dim:
                wk = jnp.pad(wk, ((0, 0), (0, n_pad - out_dim)))
                bk = jnp.pad(bk, ((0, 0), (0, n_pad - out_dim)))
        inputs += [wk, bk]

    return dict(inputs=tuple(inputs),
                n_layers=len(params["conv"]) + n_fc)


def _const_index_map(ndim):
    return lambda i: (0,) * ndim


# ----------------------------------------------------------------------------
# Forward pass: single fused pallas_call over a batch-tiled grid.
# ----------------------------------------------------------------------------
def encoder_forward(x_N, packed, cfg, max_batch_tile=128):
    B, cin, N_pod = x_N.shape
    assert cin == cfg["input_channels"] and N_pod == cfg["N_pod"]
    F0 = cin * N_pod

    inputs = packed["inputs"]
    n_layers = packed["n_layers"]
    n_out_pad = inputs[-1].shape[1]

    # Batch tile: multiple of 8 sublanes, capped so larger batches become
    # multiple "parallel" grid steps (megacore sharding on v7x).
    Bt = max(8, min(max_batch_tile, ((B + 7) // 8) * 8))
    n_steps = pl.cdiv(B, Bt)
    B_pad = n_steps * Bt

    # PyTorch view [B, C, S, S] + CHW Flatten  ==  reshape to [B, C*N_pod].
    x = x_N.reshape(B, F0).astype(jnp.float32)
    if B_pad > B:
        x = jnp.pad(x, ((0, B_pad - B), (0, 0)))

    kernel = functools.partial(_encoder_kernel, n_layers=n_layers)

    in_specs = [pl.BlockSpec((Bt, F0), lambda i: (i, 0))]
    for a in inputs:                       # constant blocks -> DMA'd once
        in_specs.append(pl.BlockSpec(a.shape, _const_index_map(a.ndim)))

    weights = inputs[0::2]
    flops = int(sum(2 * B_pad * int(w.shape[0]) * int(w.shape[1]) for w in weights))
    bytes_accessed = int(B_pad * F0 * 4
                         + sum(int(a.size) * 4 for a in inputs)
                         + B_pad * n_out_pad * 4)

    out = pl.pallas_call(
        kernel,
        out_shape=jax.ShapeDtypeStruct((B_pad, n_out_pad), jnp.float32),
        grid=(n_steps,),
        in_specs=in_specs,
        out_specs=pl.BlockSpec((Bt, n_out_pad), lambda i: (i, 0)),
        compiler_params=pltpu.CompilerParams(
            dimension_semantics=("parallel",)),
        cost_estimate=pl.CostEstimate(flops=flops, transcendentals=0,
                                      bytes_accessed=bytes_accessed),
    )(x, *inputs)

    return out[:B, :cfg["n_latent"]]


# ----------------------------------------------------------------------------
# Plain-JAX reference (uses the PyTorch-layout params directly).
# ----------------------------------------------------------------------------
def encoder_forward_ref(x_N, params, cfg):
    B = x_N.shape[0]
    cin, S = cfg["input_channels"], cfg["spatial"]
    x = x_N.reshape(B, cin, S, S)
    for w, b in params["conv"]:
        x = jax.lax.conv_general_dilated(
            x, w, window_strides=(2, 2), padding=((1, 1), (1, 1)),
            dimension_numbers=("NCHW", "OIHW", "NCHW"))
        x = jax.nn.relu(x + b[None, :, None, None])
    x = x.reshape(B, -1)                              # CHW flatten
    n_fc = len(params["fc"])
    for i, (w, b) in enumerate(params["fc"]):
        x = x @ w.T + b
        if i < n_fc - 1:
            x = jax.nn.relu(x)
    return x


if __name__ == "__main__":
    # Small shapes consistent with the module: B=2, input_channels=1,
    # N_pod=256 (16x16 spatial), n_latent=8, conv=[16,32,64], fc=[128].
    B, input_channels, N_pod, n_latent = 2, 1, 256, 8

    params, cfg = init_encoder_params(
        jax.random.PRNGKey(0), input_channels, N_pod, n_latent)
    packed = pack_encoder_params(params, cfg)

    x = jax.random.normal(jax.random.PRNGKey(0),
                          (B, input_channels, N_pod), dtype=jnp.float32)

    fwd = jax.jit(lambda xx: encoder_forward(xx, packed, cfg))
    out = jax.block_until_ready(fwd(x))
    assert out.shape == (B, n_latent), out.shape

    ref = jax.block_until_ready(encoder_forward_ref(x, params, cfg))
    max_err = float(jnp.max(jnp.abs(out - ref)))
    assert jnp.allclose(out, ref, atol=2e-5, rtol=2e-5), max_err

    print("KERNEL_OK")
</pallas_src>

<mosaic_0001>
module attributes {stable_mosaic.version = 11 : i64} {
  func.func @_encoder_kernel(%arg0: i32, %arg1: memref<8x256xf32, #tpu.memory_space<vmem>>, %arg2: memref<256x1024xf32, #tpu.memory_space<vmem>>, %arg3: memref<1x1024xf32, #tpu.memory_space<vmem>>, %arg4: memref<1024x512xf32, #tpu.memory_space<vmem>>, %arg5: memref<1x512xf32, #tpu.memory_space<vmem>>, %arg6: memref<512x256xf32, #tpu.memory_space<vmem>>, %arg7: memref<1x256xf32, #tpu.memory_space<vmem>>, %arg8: memref<256x128xf32, #tpu.memory_space<vmem>>, %arg9: memref<1x128xf32, #tpu.memory_space<vmem>>, %arg10: memref<128x128xf32, #tpu.memory_space<vmem>>, %arg11: memref<1x128xf32, #tpu.memory_space<vmem>>, %arg12: memref<8x128xf32, #tpu.memory_space<vmem>>) attributes {dimension_semantics = [#tpu.dimension_semantics<parallel>], iteration_bounds = array<i64: 1>, scalar_prefetch = 0 : i64, scratch_operands = 0 : i64, tpu.core_type = #tpu.core_type<tc>, window_params = [{transform_indices = @transform_0, window_bounds = array<i64: 8, 256>}, {pipeline_mode = #tpu.pipeline_mode<synchronous>, transform_indices = @transform_1, window_bounds = array<i64: 256, 1024>}, {pipeline_mode = #tpu.pipeline_mode<synchronous>, transform_indices = @transform_2, window_bounds = array<i64: 1, 1024>}, {pipeline_mode = #tpu.pipeline_mode<synchronous>, transform_indices = @transform_3, window_bounds = array<i64: 1024, 512>}, {pipeline_mode = #tpu.pipeline_mode<synchronous>, transform_indices = @transform_4, window_bounds = array<i64: 1, 512>}, {pipeline_mode = #tpu.pipeline_mode<synchronous>, transform_indices = @transform_5, window_bounds = array<i64: 512, 256>}, {pipeline_mode = #tpu.pipeline_mode<synchronous>, transform_indices = @transform_6, window_bounds = array<i64: 1, 256>}, {pipeline_mode = #tpu.pipeline_mode<synchronous>, transform_indices = @transform_7, window_bounds = array<i64: 256, 128>}, {pipeline_mode = #tpu.pipeline_mode<synchronous>, transform_indices = @transform_8, window_bounds = array<i64: 1, 128>}, {pipeline_mode = #tpu.pipeline_mode<synchronous>, transform_indices = @transform_9, window_bounds = array<i64: 128, 128>}, {pipeline_mode = #tpu.pipeline_mode<synchronous>, transform_indices = @transform_10, window_bounds = array<i64: 1, 128>}, {transform_indices = @transform_11, window_bounds = array<i64: 8, 128>}]} {
    %c0 = arith.constant 0 : index
    %c0_0 = arith.constant 0 : index
    %0 = vector.load %arg1[%c0, %c0_0] : memref<8x256xf32, #tpu.memory_space<vmem>>, vector<8x256xf32>
    %c0_1 = arith.constant 0 : index
    %c0_2 = arith.constant 0 : index
    %1 = vector.load %arg2[%c0_1, %c0_2] : memref<256x1024xf32, #tpu.memory_space<vmem>>, vector<256x1024xf32>
    %cst = arith.constant dense<0.000000e+00> : vector<8x1024xf32>
    %2 = tpu.matmul %0, %1, %cst {dimension_numbers = #tpu.dot_dimension_numbers<[1], [0], [0], [1], [0, 0, 1, 1], [], []>} : vector<8x256xf32>, vector<256x1024xf32>, vector<8x1024xf32> -> vector<8x1024xf32>
    %c0_3 = arith.constant 0 : index
    %c0_4 = arith.constant 0 : index
    %3 = vector.load %arg3[%c0_3, %c0_4] : memref<1x1024xf32, #tpu.memory_space<vmem>>, vector<1x1024xf32>
    %4 = vector.broadcast %3 : vector<1x1024xf32> to vector<8x1024xf32>
    %5 = arith.addf %2, %4 : vector<8x1024xf32>
    %cst_5 = arith.constant 0.000000e+00 : f32
    %6 = vector.broadcast %cst_5 : f32 to vector<8x1024xf32>
    %7 = arith.maximumf %5, %6 : vector<8x1024xf32>
    %c0_6 = arith.constant 0 : index
    %c0_7 = arith.constant 0 : index
    %8 = vector.load %arg4[%c0_6, %c0_7] : memref<1024x512xf32, #tpu.memory_space<vmem>>, vector<1024x512xf32>
    %cst_8 = arith.constant dense<0.000000e+00> : vector<8x512xf32>
    %9 = tpu.matmul %7, %8, %cst_8 {dimension_numbers = #tpu.dot_dimension_numbers<[1], [0], [0], [1], [0, 0, 1, 1], [], []>} : vector<8x1024xf32>, vector<1024x512xf32>, vector<8x512xf32> -> vector<8x512xf32>
    %c0_9 = arith.constant 0 : index
    %c0_10 = arith.constant 0 : index
    %10 = vector.load %arg5[%c0_9, %c0_10] : memref<1x512xf32, #tpu.memory_space<vmem>>, vector<1x512xf32>
    %11 = vector.broadcast %10 : vector<1x512xf32> to vector<8x512xf32>
    %12 = arith.addf %9, %11 : vector<8x512xf32>
    %cst_11 = arith.constant 0.000000e+00 : f32
    %13 = vector.broadcast %cst_11 : f32 to vector<8x512xf32>
    %14 = arith.maximumf %12, %13 : vector<8x512xf32>
    %c0_12 = arith.constant 0 : index
    %c0_13 = arith.constant 0 : index
    %15 = vector.load %arg6[%c0_12, %c0_13] : memref<512x256xf32, #tpu.memory_space<vmem>>, vector<512x256xf32>
    %cst_14 = arith.constant dense<0.000000e+00> : vector<8x256xf32>
    %16 = tpu.matmul %14, %15, %cst_14 {dimension_numbers = #tpu.dot_dimension_numbers<[1], [0], [0], [1], [0, 0, 1, 1], [], []>} : vector<8x512xf32>, vector<512x256xf32>, vector<8x256xf32> -> vector<8x256xf32>
    %c0_15 = arith.constant 0 : index
    %c0_16 = arith.constant 0 : index
    %17 = vector.load %arg7[%c0_15, %c0_16] : memref<1x256xf32, #tpu.memory_space<vmem>>, vector<1x256xf32>
    %18 = vector.broadcast %17 : vector<1x256xf32> to vector<8x256xf32>
    %19 = arith.addf %16, %18 : vector<8x256xf32>
    %cst_17 = arith.constant 0.000000e+00 : f32
    %20 = vector.broadcast %cst_17 : f32 to vector<8x256xf32>
    %21 = arith.maximumf %19, %20 : vector<8x256xf32>
    %c0_18 = arith.constant 0 : index
    %c0_19 = arith.constant 0 : index
    %22 = vector.load %arg8[%c0_18, %c0_19] : memref<256x128xf32, #tpu.memory_space<vmem>>, vector<256x128xf32>
    %cst_20 = arith.constant dense<0.000000e+00> : vector<8x128xf32>
    %23 = tpu.matmul %21, %22, %cst_20 {dimension_numbers = #tpu.dot_dimension_numbers<[1], [0], [0], [1], [0, 0, 1, 1], [], []>} : vector<8x256xf32>, vector<256x128xf32>, vector<8x128xf32> -> vector<8x128xf32>
    %c0_21 = arith.constant 0 : index
    %c0_22 = arith.constant 0 : index
    %24 = vector.load %arg9[%c0_21, %c0_22] : memref<1x128xf32, #tpu.memory_space<vmem>>, vector<1x128xf32>
    %25 = vector.broadcast %24 : vector<1x128xf32> to vector<8x128xf32>
    %26 = arith.addf %23, %25 : vector<8x128xf32>
    %cst_23 = arith.constant 0.000000e+00 : f32
    %27 = vector.broadcast %cst_23 : f32 to vector<8x128xf32>
    %28 = arith.maximumf %26, %27 : vector<8x128xf32>
    %c0_24 = arith.constant 0 : index
    %c0_25 = arith.constant 0 : index
    %29 = vector.load %arg10[%c0_24, %c0_25] : memref<128x128xf32, #tpu.memory_space<vmem>>, vector<128x128xf32>
    %cst_26 = arith.constant dense<0.000000e+00> : vector<8x128xf32>
    %30 = tpu.matmul %28, %29, %cst_26 {dimension_numbers = #tpu.dot_dimension_numbers<[1], [0], [0], [1], [0, 0, 1, 1], [], []>} : vector<8x128xf32>, vector<128x128xf32>, vector<8x128xf32> -> vector<8x128xf32>
    %c0_27 = arith.constant 0 : index
    %c0_28 = arith.constant 0 : index
    %31 = vector.load %arg11[%c0_27, %c0_28] : memref<1x128xf32, #tpu.memory_space<vmem>>, vector<1x128xf32>
    %32 = vector.broadcast %31 : vector<1x128xf32> to vector<8x128xf32>
    %33 = arith.addf %30, %32 : vector<8x128xf32>
    %c0_29 = arith.constant 0 : index
    %c0_30 = arith.constant 0 : index
    %34 = vector.load %arg12[%c0_29, %c0_30] : memref<8x128xf32, #tpu.memory_space<vmem>>, vector<8x128xf32>
    tpu.vector_store %arg12[%c0_29, %c0_30], %33 {strides = array<i32>} : memref<8x128xf32, #tpu.memory_space<vmem>>, vector<8x128xf32>,
    return
  }
  func.func @transform_0(%arg0: i32) -> (i32, i32) {
    %c0_i32 = arith.constant 0 : i32
    %c0_i32_0 = arith.constant 0 : i32
    return %arg0, %c0_i32 : i32, i32
  }
  func.func @transform_1(%arg0: i32) -> (i32, i32) {
    %c0_i32 = arith.constant 0 : i32
    %c0_i32_0 = arith.constant 0 : i32
    %c0_i32_1 = arith.constant 0 : i32
    return %c0_i32, %c0_i32_0 : i32, i32
  }
  func.func @transform_2(%arg0: i32) -> (i32, i32) {
    %c0_i32 = arith.constant 0 : i32
    %c0_i32_0 = arith.constant 0 : i32
    %c0_i32_1 = arith.constant 0 : i32
    return %c0_i32, %c0_i32_0 : i32, i32
  }
  func.func @transform_3(%arg0: i32) -> (i32, i32) {
    %c0_i32 = arith.constant 0 : i32
    %c0_i32_0 = arith.constant 0 : i32
    %c0_i32_1 = arith.constant 0 : i32
    return %c0_i32, %c0_i32_0 : i32, i32
  }
  func.func @transform_4(%arg0: i32) -> (i32, i32) {
    %c0_i32 = arith.constant 0 : i32
    %c0_i32_0 = arith.constant 0 : i32
    %c0_i32_1 = arith.constant 0 : i32
    return %c0_i32, %c0_i32_0 : i32, i32
  }
  func.func @transform_5(%arg0: i32) -> (i32, i32) {
    %c0_i32 = arith.constant 0 : i32
    %c0_i32_0 = arith.constant 0 : i32
    %c0_i32_1 = arith.constant 0 : i32
    return %c0_i32, %c0_i32_0 : i32, i32
  }
  func.func @transform_6(%arg0: i32) -> (i32, i32) {
    %c0_i32 = arith.constant 0 : i32
    %c0_i32_0 = arith.constant 0 : i32
    %c0_i32_1 = arith.constant 0 : i32
    return %c0_i32, %c0_i32_0 : i32, i32
  }
  func.func @transform_7(%arg0: i32) -> (i32, i32) {
    %c0_i32 = arith.constant 0 : i32
    %c0_i32_0 = arith.constant 0 : i32
    %c0_i32_1 = arith.constant 0 : i32
    return %c0_i32, %c0_i32_0 : i32, i32
  }
  func.func @transform_8(%arg0: i32) -> (i32, i32) {
    %c0_i32 = arith.constant 0 : i32
    %c0_i32_0 = arith.constant 0 : i32
    %c0_i32_1 = arith.constant 0 : i32
    return %c0_i32, %c0_i32_0 : i32, i32
  }
  func.func @transform_9(%arg0: i32) -> (i32, i32) {
    %c0_i32 = arith.constant 0 : i32
    %c0_i32_0 = arith.constant 0 : i32
    %c0_i32_1 = arith.constant 0 : i32
    return %c0_i32, %c0_i32_0 : i32, i32
  }
  func.func @transform_10(%arg0: i32) -> (i32, i32) {
    %c0_i32 = arith.constant 0 : i32
    %c0_i32_0 = arith.constant 0 : i32
    %c0_i32_1 = arith.constant 0 : i32
    return %c0_i32, %c0_i32_0 : i32, i32
  }
  func.func @transform_11(%arg0: i32) -> (i32, i32) {
    %c0_i32 = arith.constant 0 : i32
    %c0_i32_0 = arith.constant 0 : i32
    return %arg0, %c0_i32 : i32, i32
  }
}

</mosaic_0001>

<bundles_post_ra>
// kernel: _lambda_.1
= control target key start
LH: loop header
LB: loop body
LE: loop exit
PB: predicated region body
PF: predicated region fallthrough
CT: control target
= control target key end

     0   :  { %16 = vsyncpa [#allocation3], 0  ;;  %s3958_s0 = inlined_call_operand.vmem [shape: f32[8,256], index: 0, kind: input, shape index: {}]   ;;  %s3959_s1 = inlined_call_operand.hbm [shape: f32[256,1024], index: 1, kind: input, shape index: {}]   ;;  %s3960_s2 = inlined_call_operand.hbm [shape: f32[1,1024], index: 2, kind: input, shape index: {}]   ;;  %s3961_s3 = inlined_call_operand.hbm [shape: f32[1024,512], index: 3, kind: input, shape index: {}]   ;;  %s3962_s4 = inlined_call_operand.hbm [shape: f32[1,512], index: 4, kind: input, shape index: {}]   ;;  %s3963_s5 = inlined_call_operand.hbm [shape: f32[512,256], index: 5, kind: input, shape index: {}]   ;;  %s3964_s6 = inlined_call_operand.hbm [shape: f32[1,256], index: 6, kind: input, shape index: {}]   ;;  %s3965_s7 = inlined_call_operand.hbm [shape: f32[256,128], index: 7, kind: input, shape index: {}]   ;;  %s3966_s8 = inlined_call_operand.hbm [shape: f32[1,128], index: 8, kind: input, shape index: {}]   ;;  %s3967_s9 = inlined_call_operand.hbm [shape: f32[128,128], index: 9, kind: input, shape index: {}]   ;;  %s3968_s10 = inlined_call_operand.hbm [shape: f32[1,128], index: 10, kind: input, shape index: {}]   ;;  %s3969_s11 = inlined_call_operand.vmem [shape: f32[8,128], index: 11, kind: output, shape index: {}]  }
   0x1   :  { %17 = vsyncpa [#allocation5], 0 }
   0x2   :  { %18 = vsyncpa [#allocation8], 0 }
   0x3   :  { %19 = vsyncpa [#allocation11], 0 }
   0x4   :  { %20 = vsyncpa [#allocation14], 0 }
   0x5   :  { %21 = vsyncpa [#allocation17], 0  ;;  %s3675_s17 = smov [#allocation4]   ;;  %s3676_s19 = smov [#allocation7]  }
   0x6   :  { %s42_s18 = sshll.u32 %s3675_s17, 4  ;;  %s64_s20 = sshll.u32 %s3676_s19, 4  ;;  %s43_s18 = int_to_ptr.vmem [resolvable:$true] %s42_s18  ;;  %s65_s20 = int_to_ptr.vmem [resolvable:$true] %s64_s20 }
   0x7   :  { %s3443_s23 = scalar_lea.hbm %s3960_s2, 128 }
   0x8   :  { %p3444_p0 = scmp.ne.s32.totalorder %s3960_s2, %s3443_s23  ;;  %p3447_p1 = scmp.lt.u32.totalorder %s3443_s23, %s3960_s2 }
   0xa   :  { %p3449_p2 = pnand %p3447_p1, %p3444_p0 }
   0xc   :  { %3452 = shalt.err (!%p3449_p2)
}
   0xd   :  { %s3453_s28 = scalar_lea.vmem %s43_s18, 128  ;;  %p3458_p4 = scmp.lt.s32.totalorder %s43_s18, %s43_s18 }
   0xe   :  { %p3454_p3 = scmp.ne.s32.totalorder %s43_s18, %s3453_s28  ;;  %p3459_p5 = scmp.lt.s32.totalorder %s3453_s28, %s3453_s28 }
  0x10   :  { %p3460_p6 = por %p3459_p5, %p3458_p4 }
  0x12   :  { %p3461_p7 = pnand %p3460_p6, %p3454_p3 }
  0x14   :  { %3464 = shalt.err (!%p3461_p7)
}
  0x15   :  { %45 = dma.hbm_to_vmem [thread:$0]  %s3960_s2, 128, %s43_s18, [#allocation5]  }
  0x16   :  { %s3465_s14 = scalar_lea.hbm %s3962_s4, 64 }
  0x17   :  { %p3466_p8 = scmp.ne.s32.totalorder %s3962_s4, %s3465_s14  ;;  %p3469_p9 = scmp.lt.u32.totalorder %s3465_s14, %s3962_s4 }
  0x19   :  { %p3471_p10 = pnand %p3469_p9, %p3466_p8 }
  0x1b   :  { %3474 = shalt.err (!%p3471_p10)
}
  0x1c   :  { %s3475_s21 = scalar_lea.vmem %s65_s20, 64  ;;  %p3480_p12 = scmp.lt.s32.totalorder %s65_s20, %s65_s20 }
  0x1d   :  { %p3476_p11 = scmp.ne.s32.totalorder %s65_s20, %s3475_s21  ;;  %p3481_p13 = scmp.lt.s32.totalorder %s3475_s21, %s3475_s21 }
  0x1f   :  { %p3482_p0 = por %p3481_p13, %p3480_p12 }
  0x21   :  { %p3483_p1 = pnand %p3482_p0, %p3476_p11 }
  0x23   :  { %3486 = shalt.err (!%p3483_p1)
}
  0x24   :  { %67 = dma.hbm_to_vmem [thread:$0]  %s3962_s4, 64, %s65_s20, [#allocation8]  }
  0x25   :  { %s3677_s22 = smov [#allocation10]   ;;  %s3678_s24 = smov [#allocation13]  }
  0x26   :  { %s86_s23 = sshll.u32 %s3677_s22, 4  ;;  %s108_s25 = sshll.u32 %s3678_s24, 4  ;;  %s87_s23 = int_to_ptr.vmem [resolvable:$true] %s86_s23  ;;  %s109_s25 = int_to_ptr.vmem [resolvable:$true] %s108_s25 }
  0x27   :  { %s3487_s28 = scalar_lea.hbm %s3964_s6, 32 }
  0x28   :  { %p3488_p2 = scmp.ne.s32.totalorder %s3964_s6, %s3487_s28  ;;  %p3491_p3 = scmp.lt.u32.totalorder %s3487_s28, %s3964_s6 }
  0x2a   :  { %p3493_p4 = pnand %p3491_p3, %p3488_p2 }
  0x2c   :  { %3496 = shalt.err (!%p3493_p4)
}
  0x2d   :  { %s3497_s4 = scalar_lea.vmem %s87_s23, 32  ;;  %p3502_p6 = scmp.lt.s32.totalorder %s87_s23, %s87_s23 }
  0x2e   :  { %p3498_p5 = scmp.ne.s32.totalorder %s87_s23, %s3497_s4  ;;  %p3503_p7 = scmp.lt.s32.totalorder %s3497_s4, %s3497_s4 }
  0x30   :  { %p3504_p8 = por %p3503_p7, %p3502_p6 }
  0x32   :  { %p3505_p9 = pnand %p3504_p8, %p3498_p5 }
  0x34   :  { %3508 = shalt.err (!%p3505_p9)
}
  0x35   :  { %89 = dma.hbm_to_vmem [thread:$0]  %s3964_s6, 32, %s87_s23, [#allocation11]  }
  0x36   :  { %s3509_s17 = scalar_lea.hbm %s3966_s8, 16 }
  0x37   :  { %p3510_p10 = scmp.ne.s32.totalorder %s3966_s8, %s3509_s17  ;;  %p3513_p11 = scmp.lt.u32.totalorder %s3509_s17, %s3966_s8 }
  0x39   :  { %p3515_p12 = pnand %p3513_p11, %p3510_p10 }
  0x3b   :  { %3518 = shalt.err (!%p3515_p12)
}
  0x3c   :  { %s3519_s22 = scalar_lea.vmem %s109_s25, 16  ;;  %s3523_s24 = scalar_lea.vmem %s109_s25, 32 }
  0x3d   :  { %p3520_p13 = scmp.ne.s32.totalorder %s109_s25, %s3519_s22  ;;  %p3524_p0 = scmp.lt.s32.totalorder %s109_s25, %s109_s25 }
  0x3e   :  { %p3525_p1 = scmp.lt.s32.totalorder %s3523_s24, %s3519_s22 }
  0x40   :  { %p3526_p2 = por %p3525_p1, %p3524_p0 }
  0x42   :  { %p3527_p3 = pnand %p3526_p2, %p3520_p13 }
  0x44   :  { %3530 = shalt.err (!%p3527_p3)
}
  0x45   :  { %111 = dma.hbm_to_vmem [thread:$0]  %s3966_s8, 16, %s109_s25, [#allocation14]  }
  0x46   :  { %s3679_s26 = smov [#allocation2]   ;;  %s3531_s30 = scalar_lea.hbm %s3959_s1, 32768 }
  0x47   :  { %s29_s27 = sshll.u32 %s3679_s26, 4  ;;  %p3532_p4 = scmp.ne.s32.totalorder %s3959_s1, %s3531_s30  ;;  %s30_s27 = int_to_ptr.vmem [resolvable:$true] %s29_s27 }
  0x48   :  { %p3535_p5 = scmp.lt.u32.totalorder %s3531_s30, %s3959_s1 }
  0x4a   :  { %p3537_p6 = pnand %p3535_p5, %p3532_p4 }
  0x4c   :  { %3540 = shalt.err (!%p3537_p6)
}
  0x4d   :  { %s3541_s14 = scalar_lea.vmem %s30_s27, 32768  ;;  %p3546_p8 = scmp.lt.s32.totalorder %s30_s27, %s30_s27 }
  0x4e   :  { %p3542_p7 = scmp.ne.s32.totalorder %s30_s27, %s3541_s14  ;;  %p3547_p9 = scmp.lt.s32.totalorder %s3541_s14, %s3541_s14 }
  0x50   :  { %p3548_p10 = por %p3547_p9, %p3546_p8 }
  0x52   :  { %p3549_p11 = pnand %p3548_p10, %p3542_p7 }
  0x54   :  { %3552 = shalt.err (!%p3549_p11)
}
  0x55   :  { %s3680_s8 = smov 1024   ;;  %s3681_s25 = smov 64  }
  0x56   :  { %35 = dma.hbm_to_vmem [thread:$0]  %s3959_s1, 32768, %s30_s27, [#allocation3], %s3680_s8, %s3680_s8, %s3681_s25  }
  0x57   :  { %s3682_s17 = smov [#allocation6]   ;;  %s3553_s18 = scalar_lea.hbm %s3961_s3, 65536 }
  0x58   :  { %s51_s19 = sshll.u32 %s3682_s17, 4  ;;  %p3554_p12 = scmp.ne.s32.totalorder %s3961_s3, %s3553_s18  ;;  %s52_s19 = int_to_ptr.vmem [resolvable:$true] %s51_s19 }
  0x59   :  { %p3557_p13 = scmp.lt.u32.totalorder %s3553_s18, %s3961_s3 }
  0x5b   :  { %p3559_p0 = pnand %p3557_p13, %p3554_p12 }
  0x5d   :  { %3562 = shalt.err (!%p3559_p0)
}
  0x5e   :  { %s3563_s26 = scalar_lea.vmem %s52_s19, 65536  ;;  %p3568_p2 = scmp.lt.s32.totalorder %s52_s19, %s52_s19 }
  0x5f   :  { %p3564_p1 = scmp.ne.s32.totalorder %s52_s19, %s3563_s26  ;;  %p3569_p3 = scmp.lt.s32.totalorder %s3563_s26, %s3563_s26 }
  0x61   :  { %p3570_p4 = por %p3569_p3, %p3568_p2 }
  0x63   :  { %p3571_p5 = pnand %p3570_p4, %p3564_p1 }
  0x65   :  { %3574 = shalt.err (!%p3571_p5)
}
  0x66   :  { %s3683_s1 = smov 512   ;;  %s3684_s27 = smov 32  }
  0x67   :  { %57 = dma.hbm_to_vmem [thread:$0]  %s3961_s3, 65536, %s52_s19, [#allocation5], %s3683_s1, %s3683_s1, %s3684_s27  }
  0x68   :  { %s3685_s30 = smov [#allocation9]   ;;  %s3575_s20 = scalar_lea.hbm %s3963_s5, 16384 }
  0x69   :  { %s73_s12 = sshll.u32 %s3685_s30, 4  ;;  %p3576_p6 = scmp.ne.s32.totalorder %s3963_s5, %s3575_s20  ;;  %s74_s12 = int_to_ptr.vmem [resolvable:$true] %s73_s12 }
  0x6a   :  { %p3579_p7 = scmp.lt.u32.totalorder %s3575_s20, %s3963_s5 }
  0x6c   :  { %p3581_p8 = pnand %p3579_p7, %p3576_p6 }
  0x6e   :  { %3584 = shalt.err (!%p3581_p8)
}
  0x6f   :  { %s3585_s16 = scalar_lea.vmem %s74_s12, 16384  ;;  %p3590_p10 = scmp.lt.s32.totalorder %s74_s12, %s74_s12 }
  0x70   :  { %p3586_p9 = scmp.ne.s32.totalorder %s74_s12, %s3585_s16  ;;  %p3591_p11 = scmp.lt.s32.totalorder %s3585_s16, %s3585_s16 }
  0x72   :  { %p3592_p12 = por %p3591_p11, %p3590_p10 }
  0x74   :  { %p3593_p13 = pnand %p3592_p12, %p3586_p9 }
  0x76   :  { %3596 = shalt.err (!%p3593_p13)
}
  0x77   :  { %s3686_s3 = smov 256   ;;  %s3687_s17 = smov 16  }
  0x78   :  { %79 = dma.hbm_to_vmem [thread:$0]  %s3963_s5, 16384, %s74_s12, [#allocation8], %s3686_s3, %s3686_s3, %s3687_s17  }
  0x79   :  { %s3688_s2 = smov [#allocation12]   ;;  %s3597_s6 = scalar_lea.hbm %s3965_s7, 4096 }
  0x7a   :  { %s95_s18 = sshll.u32 %s3688_s2, 4  ;;  %p3598_p0 = scmp.ne.s32.totalorder %s3965_s7, %s3597_s6  ;;  %s96_s18 = int_to_ptr.vmem [resolvable:$true] %s95_s18 }
  0x7b   :  { %p3601_p1 = scmp.lt.u32.totalorder %s3597_s6, %s3965_s7 }
  0x7d   :  { %p3603_p2 = pnand %p3601_p1, %p3598_p0 }
  0x7f   :  { %3606 = shalt.err (!%p3603_p2)
}
  0x80   :  { %s3607_s28 = scalar_lea.vmem %s96_s18, 4096  ;;  %p3612_p4 = scmp.lt.s32.totalorder %s96_s18, %s96_s18 }
  0x81   :  { %p3608_p3 = scmp.ne.s32.totalorder %s96_s18, %s3607_s28  ;;  %p3613_p5 = scmp.lt.s32.totalorder %s3607_s28, %s3607_s28 }
  0x83   :  { %p3614_p6 = por %p3613_p5, %p3612_p4 }
  0x85   :  { %p3615_p7 = pnand %p3614_p6, %p3608_p3 }
  0x87   :  { %3618 = shalt.err (!%p3615_p7)
}
  0x88   :  { %s3689_s5 = smov 128   ;;  %s3690_s29 = smov 8  }
  0x89   :  { %101 = dma.hbm_to_vmem [thread:$0]  %s3965_s7, 4096, %s96_s18, [#allocation11], %s3689_s5, %s3689_s5, %s3690_s29  }
  0x8a   :  { %s3691_s13 = smov [#allocation15]   ;;  %s3692_s20 = smov [#allocation16]  }
  0x8b   :  { %s117_s4 = sshll.u32 %s3691_s13, 4  ;;  %s130_s14 = sshll.u32 %s3692_s20, 4  ;;  %s118_s4 = int_to_ptr.vmem [resolvable:$true] %s117_s4  ;;  %s131_s14 = int_to_ptr.vmem [resolvable:$true] %s130_s14 }
  0x8c   :  { %s3619_s15 = scalar_lea.hbm %s3967_s9, 2048 }
  0x8d   :  { %p3620_p8 = scmp.ne.s32.totalorder %s3967_s9, %s3619_s15  ;;  %p3623_p9 = scmp.lt.u32.totalorder %s3619_s15, %s3967_s9 }
  0x8f   :  { %p3625_p10 = pnand %p3623_p9, %p3620_p8 }
  0x91   :  { %3628 = shalt.err (!%p3625_p10)
}
  0x92   :  { %s3629_s7 = scalar_lea.vmem %s118_s4, 2048  ;;  %p3634_p12 = scmp.lt.s32.totalorder %s118_s4, %s118_s4 }
  0x93   :  { %p3630_p11 = scmp.ne.s32.totalorder %s118_s4, %s3629_s7  ;;  %p3635_p13 = scmp.lt.s32.totalorder %s3629_s7, %s3629_s7 }
  0x95   :  { %p3636_p0 = por %p3635_p13, %p3634_p12 }
  0x97   :  { %p3637_p1 = pnand %p3636_p0, %p3630_p11 }
  0x99   :  { %3640 = shalt.err (!%p3637_p1)
}
  0x9a   :  { %123 = dma.hbm_to_vmem [thread:$0]  %s3967_s9, 2048, %s118_s4, [#allocation14], %s3689_s5, %s3689_s5, %s3690_s29  }
  0x9b   :  { %s3641_s24 = scalar_lea.hbm %s3968_s10, 16 }
  0x9c   :  { %p3642_p2 = scmp.ne.s32.totalorder %s3968_s10, %s3641_s24  ;;  %p3645_p3 = scmp.lt.u32.totalorder %s3641_s24, %s3968_s10 }
  0x9e   :  { %p3647_p4 = pnand %p3645_p3, %p3642_p2 }
  0xa0   :  { %3650 = shalt.err (!%p3647_p4)
}
  0xa1   :  { %s3651_s27 = scalar_lea.vmem %s131_s14, 16  ;;  %s3655_s28 = scalar_lea.vmem %s131_s14, 32 }
  0xa2   :  { %p3652_p5 = scmp.ne.s32.totalorder %s131_s14, %s3651_s27  ;;  %p3656_p6 = scmp.lt.s32.totalorder %s131_s14, %s131_s14 }
  0xa3   :  { %p3657_p7 = scmp.lt.s32.totalorder %s3655_s28, %s3651_s27 }
  0xa5   :  { %p3658_p8 = por %p3657_p7, %p3656_p6 }
  0xa7   :  { %p3659_p9 = pnand %p3658_p8, %p3652_p5 }
  0xa9   :  { %3662 = shalt.err (!%p3659_p9)
}
  0xaa   :  { %133 = dma.hbm_to_vmem [thread:$0]  %s3968_s10, 16, %s131_s14, [#allocation17]  }
  0xab   :  { %3663 = dma.done.wait [#allocation3], 32768  }
  0xac   :  { %3664 = vsyncadd [#allocation3], 4294934528 }
  0xad   :  { %3665 = dma.done.wait [#allocation5], 65664  }
  0xae   :  { %3666 = vsyncadd [#allocation5], 4294901632 }
  0xaf   :  { %3667 = dma.done.wait [#allocation8], 16448  }
  0xb0   :  { %3668 = vsyncadd [#allocation8], 4294950848 }
  0xb1   :  { %3669 = dma.done.wait [#allocation11], 4128  }
  0xb2   :  { %3670 = vsyncadd [#allocation11], 4294963168 }
  0xb3   :  { %3671 = dma.done.wait [#allocation14], 2064  }
  0xb4   :  { %3672 = vsyncadd [#allocation14], 4294965232 }
  0xb5   :  { %3673 = dma.done.wait [#allocation17], 16  }
  0xb6   :  { %3674 = vsyncadd [#allocation17], 4294967280  ;;  %v167_v0 = vld [vmem:[#allocation2 + $0x8] sm:$0xff]  ;;  %v166_v2 = vld [vmem:[#allocation2] sm:$0xff]  ;;  %vm3694_vm0 = vmmov 0  }
  0xb7   :  { %v175_v1 = vld [vmem:[#allocation2 + $0x48] sm:$0xff]  ;;  %v174_v4 = vld [vmem:[#allocation2 + $0x40] sm:$0xff]  ;;  %v169_v43 = vld [vmem:[#allocation2 + $0x18] sm:$0xff] }
  0xb8   :  { %v2449_v3 = vpack.c.bf16 %v175_v1, %v167_v0  ;;  %v183_v5 = vld [vmem:[#allocation2 + $0x88] sm:$0xff]  ;;  %v2451_v7 = vpack.c.bf16 %v174_v4, %v166_v2  ;;  %v182_v9 = vld [vmem:[#allocation2 + $0x80] sm:$0xff]  ;;  %v177_v45 = vld [vmem:[#allocation2 + $0x58] sm:$0xff] }
  0xb9   :  { %v191_v6 = vld [vmem:[#allocation2 + $0xc8] sm:$0xff]  ;;  %v190_v10 = vld [vmem:[#allocation2 + $0xc0] sm:$0xff]  ;;  %v168_v46 = vld [vmem:[#allocation2 + $0x10] sm:$0xff]  ;;  %v2513_v47 = vpack.c.bf16 %v177_v45, %v169_v43 }
  0xba   :  { %v2453_v8 = vpack.c.bf16 %v191_v6, %v183_v5  ;;  %v199_v11 = vld [vmem:[#allocation2 + $0x108] sm:$0xff]  ;;  %2450 = vmatprep.subr.bf16.mxu0 %v2449_v3  ;;  %v2455_v13 = vpack.c.bf16 %v190_v10, %v182_v9  ;;  %v198_v15 = vld [vmem:[#allocation2 + $0x100] sm:$0xff]  ;;  %v176_v48 = vld [vmem:[#allocation2 + $0x50] sm:$0xff] }
  0xbb   :  { %v207_v12 = vld [vmem:[#allocation2 + $0x148] sm:$0xff]  ;;  %2452 = vmatpush1.bf16.msra.mxu0 %v2451_v7  ;;  %v206_v16 = vld [vmem:[#allocation2 + $0x140] sm:$0xff]  ;;  %v185_v49 = vld [vmem:[#allocation2 + $0x98] sm:$0xff]  ;;  %v2515_v52 = vpack.c.bf16 %v176_v48, %v168_v46  ;;  %2514 = vmatprep.subr.bf16.mxu1 %v2513_v47 }
  0xbc   :  { %2454 = vmatprep.subr.bf16.mxu0 %v2453_v8  ;;  %v2457_v14 = vpack.c.bf16 %v207_v12, %v199_v11  ;;  %v215_v17 = vld [vmem:[#allocation2 + $0x188] sm:$0xff]  ;;  %v2459_v19 = vpack.c.bf16 %v206_v16, %v198_v15  ;;  %v214_v21 = vld [vmem:[#allocation2 + $0x180] sm:$0xff]  ;;  %v193_v50 = vld [vmem:[#allocation2 + $0xd8] sm:$0xff] }
  0xbd   :  { %v223_v18 = vld [vmem:[#allocation2 + $0x1c8] sm:$0xff]  ;;  %v222_v22 = vld [vmem:[#allocation2 + $0x1c0] sm:$0xff]  ;;  %v2517_v53 = vpack.c.bf16 %v193_v50, %v185_v49  ;;  %v184_v54 = vld [vmem:[#allocation2 + $0x90] sm:$0xff]  ;;  %2516 = vmatpush1.bf16.msra.mxu1 %v2515_v52 }
  0xbe   :  { %v2461_v20 = vpack.c.bf16 %v223_v18, %v215_v17  ;;  %v231_v23 = vld [vmem:[#allocation2 + $0x208] sm:$0xff]  ;;  %v2463_v25 = vpack.c.bf16 %v222_v22, %v214_v21  ;;  %v230_v27 = vld [vmem:[#allocation2 + $0x200] sm:$0xff]  ;;  %v192_v55 = vld [vmem:[#allocation2 + $0xd0] sm:$0xff] }
  0xbf   :  { %2456 = vmatpush1.bf16.msra.mxu0 %v2455_v13  ;;  %v239_v24 = vld [vmem:[#allocation2 + $0x248] sm:$0xff]  ;;  %v238_v28 = vld [vmem:[#allocation2 + $0x240] sm:$0xff]  ;;  %v201_v56 = vld [vmem:[#allocation2 + $0x118] sm:$0xff]  ;;  %v2519_v63 = vpack.c.bf16 %v192_v55, %v184_v54  ;;  %2518 = vmatprep.subr.bf16.mxu1 %v2517_v53 }
  0xc0   :  { %2458 = vmatprep.subr.bf16.mxu0 %v2457_v14  ;;  %v2465_v26 = vpack.c.bf16 %v239_v24, %v231_v23  ;;  %v247_v29 = vld [vmem:[#allocation2 + $0x288] sm:$0xff]  ;;  %v2467_v31 = vpack.c.bf16 %v238_v28, %v230_v27  ;;  %v246_v33 = vld [vmem:[#allocation2 + $0x280] sm:$0xff]  ;;  %v209_v60 = vld [vmem:[#allocation2 + $0x158] sm:$0xff] }
  0xc1   :  { %v255_v30 = vld [vmem:[#allocation2 + $0x2c8] sm:$0xff]  ;;  %v254_v34 = vld [vmem:[#allocation2 + $0x2c0] sm:$0xff]  ;;  %v2521_v0 = vpack.c.bf16 %v209_v60, %v201_v56  ;;  %v200_v1 = vld [vmem:[#allocation2 + $0x110] sm:$0xff]  ;;  %2520 = vmatpush1.bf16.msra.mxu1 %v2519_v63 }
  0xc2   :  { %v2469_v32 = vpack.c.bf16 %v255_v30, %v247_v29  ;;  %v263_v35 = vld [vmem:[#allocation2 + $0x308] sm:$0xff]  ;;  %v2471_v37 = vpack.c.bf16 %v254_v34, %v246_v33  ;;  %v262_v38 = vld [vmem:[#allocation2 + $0x300] sm:$0xff]  ;;  %v208_v2 = vld [vmem:[#allocation2 + $0x150] sm:$0xff] }
  0xc3   :  { %2460 = vmatpush1.bf16.msra.mxu0 %v2459_v19  ;;  %v271_v36 = vld [vmem:[#allocation2 + $0x348] sm:$0xff]  ;;  %v270_v39 = vld [vmem:[#allocation2 + $0x340] sm:$0xff]  ;;  %v217_v4 = vld [vmem:[#allocation2 + $0x198] sm:$0xff]  ;;  %v2523_v11 = vpack.c.bf16 %v208_v2, %v200_v1  ;;  %2522 = vmatprep.subr.bf16.mxu1 %v2521_v0 }
  0xc4   :  { %2462 = vmatprep.subr.bf16.mxu0 %v2461_v20  ;;  %v2473_v40 = vpack.c.bf16 %v271_v36, %v263_v35  ;;  %v279_v41 = vld [vmem:[#allocation2 + $0x388] sm:$0xff]  ;;  %v2475_v51 = vpack.c.bf16 %v270_v39, %v262_v38  ;;  %v278_v58 = vld [vmem:[#allocation2 + $0x380] sm:$0xff]  ;;  %v225_v5 = vld [vmem:[#allocation2 + $0x1d8] sm:$0xff] }
  0xc5   :  { %v3879_v42 = vld [vmem:[%s3958_s0 + $0x8] sm:$0xff]  ;;  %v286_v59 = vld [vmem:[#allocation2 + $0x3c0] sm:$0xff]  ;;  %v2525_v12 = vpack.c.bf16 %v225_v5, %v217_v4  ;;  %v216_v13 = vld [vmem:[#allocation2 + $0x190] sm:$0xff]  ;;  %2524 = vmatpush1.bf16.msra.mxu1 %v2523_v11 }
  0xc6   :  { %v287_v44 = vld [vmem:[#allocation2 + $0x3c8] sm:$0xff]  ;;  %528 = vmatprep.mubr.f32.mxu0 %v3879_v42  ;;  %599 = vmatprep.mubr.f32.mxu1 %v3879_v42  ;;  %v2479_v3 = vpack.c.bf16 %v286_v59, %v278_v58  ;;  %v294_v7 = vld [vmem:[#allocation2 + $0x400] sm:$0xff]  ;;  %v224_v14 = vld [vmem:[#allocation2 + $0x1d0] sm:$0xff] }
  0xc7   :  { %2464 = vmatpush1.bf16.msra.mxu0 %v2463_v25  ;;  %v2477_v57 = vpack.c.bf16 %v287_v44, %v279_v41  ;;  %v295_v61 = vld [vmem:[#allocation2 + $0x408] sm:$0xff]  ;;  %v302_v8 = vld [vmem:[#allocation2 + $0x440] sm:$0xff]  ;;  %v233_v16 = vld [vmem:[#allocation2 + $0x218] sm:$0xff]  ;;  %v2527_v23 = vpack.c.bf16 %v224_v14, %v216_v13  ;;  %2526 = vmatprep.subr.bf16.mxu1 %v2525_v12 }
  0xc8   :  { %2466 = vmatprep.subr.bf16.mxu0 %v2465_v26  ;;  %v303_v62 = vld [vmem:[#allocation2 + $0x448] sm:$0xff]  ;;  %v2483_v15 = vpack.c.bf16 %v302_v8, %v294_v7  ;;  %v241_v17 = vld [vmem:[#allocation2 + $0x258] sm:$0xff]  ;;  %v310_v19 = vld [vmem:[#allocation2 + $0x480] sm:$0xff] }
  0xc9   :  { %v2481_v6 = vpack.c.bf16 %v303_v62, %v295_v61  ;;  %v311_v9 = vld [vmem:[#allocation2 + $0x488] sm:$0xff]  ;;  %v318_v20 = vld [vmem:[#allocation2 + $0x4c0] sm:$0xff]  ;;  %v2529_v24 = vpack.c.bf16 %v241_v17, %v233_v16  ;;  %v232_v25 = vld [vmem:[#allocation2 + $0x210] sm:$0xff]  ;;  %2528 = vmatpush1.bf16.msra.mxu1 %v2527_v23 }
  0xca   :  { %v319_v10 = vld [vmem:[#allocation2 + $0x4c8] sm:$0xff]  ;;  %v240_v26 = vld [vmem:[#allocation2 + $0x250] sm:$0xff]  ;;  %v2487_v27 = vpack.c.bf16 %v318_v20, %v310_v19  ;;  %v249_v28 = vld [vmem:[#allocation2 + $0x298] sm:$0xff] }
  0xcb   :  { %2468 = vmatpush1.bf16.msra.mxu0 %v2467_v31  ;;  %v2485_v18 = vpack.c.bf16 %v319_v10, %v311_v9  ;;  %v327_v21 = vld [vmem:[#allocation2 + $0x508] sm:$0xff]  ;;  %v257_v29 = vld [vmem:[#allocation2 + $0x2d8] sm:$0xff]  ;;  %v326_v31 = vld [vmem:[#allocation2 + $0x500] sm:$0xff]  ;;  %v2531_v35 = vpack.c.bf16 %v240_v26, %v232_v25  ;;  %2530 = vmatprep.subr.bf16.mxu1 %v2529_v24 }
  0xcc   :  { %2470 = vmatprep.subr.bf16.mxu0 %v2469_v32  ;;  %v335_v22 = vld [vmem:[#allocation2 + $0x548] sm:$0xff]  ;;  %v334_v32 = vld [vmem:[#allocation2 + $0x540] sm:$0xff]  ;;  %v2533_v36 = vpack.c.bf16 %v257_v29, %v249_v28  ;;  %v256_v38 = vld [vmem:[#allocation2 + $0x2d0] sm:$0xff] }
  0xcd   :  { %v2489_v30 = vpack.c.bf16 %v335_v22, %v327_v21  ;;  %v343_v33 = vld [vmem:[#allocation2 + $0x588] sm:$0xff]  ;;  %v2491_v39 = vpack.c.bf16 %v334_v32, %v326_v31  ;;  %v273_v41 = vld [vmem:[#allocation2 + $0x358] sm:$0xff]  ;;  %v342_v44 = vld [vmem:[#allocation2 + $0x580] sm:$0xff]  ;;  %2532 = vmatpush1.bf16.msra.mxu1 %v2531_v35 }
  0xce   :  { %v351_v34 = vld [vmem:[#allocation2 + $0x5c8] sm:$0xff]  ;;  %v350_v45 = vld [vmem:[#allocation2 + $0x5c0] sm:$0xff]  ;;  %2534 = vmatprep.subr.bf16.mxu1 %v2533_v36  ;;  %v264_v50 = vld [vmem:[#allocation2 + $0x310] sm:$0xff] }
  0xcf   :  { %2472 = vmatpush1.bf16.msra.mxu0 %v2471_v37  ;;  %v248_v37 = vld [vmem:[#allocation2 + $0x290] sm:$0xff]  ;;  %v2493_v43 = vpack.c.bf16 %v351_v34, %v343_v33  ;;  %v359_v46 = vld [vmem:[#allocation2 + $0x608] sm:$0xff]  ;;  %v2495_v52 = vpack.c.bf16 %v350_v45, %v342_v44  ;;  %v281_v53 = vld [vmem:[#allocation2 + $0x398] sm:$0xff] }
  0xd0   :  { %2474 = vmatprep.subr.bf16.mxu0 %v2473_v40  ;;  %v265_v40 = vld [vmem:[#allocation2 + $0x318] sm:$0xff]  ;;  %v367_v47 = vld [vmem:[#allocation2 + $0x648] sm:$0xff]  ;;  %v2535_v48 = vpack.c.bf16 %v256_v38, %v248_v37  ;;  %v358_v56 = vld [vmem:[#allocation2 + $0x600] sm:$0xff] }
  0xd1   :  { %v2537_v49 = vpack.c.bf16 %v273_v41, %v265_v40  ;;  %v289_v54 = vld [vmem:[#allocation2 + $0x3d8] sm:$0xff]  ;;  %v2497_v55 = vpack.c.bf16 %v367_v47, %v359_v46  ;;  %v375_v58 = vld [vmem:[#allocation2 + $0x688] sm:$0xff]  ;;  %v280_v62 = vld [vmem:[#allocation2 + $0x390] sm:$0xff] }
  0xd2   :  { %v383_v59 = vld [vmem:[#allocation2 + $0x6c8] sm:$0xff]  ;;  %2536 = vmatpush1.bf16.msra.mxu1 %v2535_v48  ;;  %v2541_v61 = vpack.c.bf16 %v289_v54, %v281_v53  ;;  %v288_v63 = vld [vmem:[#allocation2 + $0x3d0] sm:$0xff]  ;;  %v297_v1 = vld [vmem:[#allocation2 + $0x418] sm:$0xff] }
  0xd3   :  { %2476 = vmatpush1.bf16.msra.mxu0 %v2475_v51  ;;  %v272_v51 = vld [vmem:[#allocation2 + $0x350] sm:$0xff]  ;;  %2538 = vmatprep.subr.bf16.mxu1 %v2537_v49  ;;  %v305_v2 = vld [vmem:[#allocation2 + $0x458] sm:$0xff]  ;;  %v374_v4 = vld [vmem:[#allocation2 + $0x680] sm:$0xff]  ;;  %v2543_v8 = vpack.c.bf16 %v288_v63, %v280_v62 }
  0xd4   :  { %2478 = vmatprep.subr.bf16.mxu0 %v2477_v57  ;;  %v366_v57 = vld [vmem:[#allocation2 + $0x640] sm:$0xff]  ;;  %v2539_v60 = vpack.c.bf16 %v272_v51, %v264_v50  ;;  %v399_v7 = vld [vmem:[#allocation2 + $0x748] sm:$0xff]  ;;  %v2545_v9 = vpack.c.bf16 %v305_v2, %v297_v1  ;;  %v296_v10 = vld [vmem:[#allocation2 + $0x410] sm:$0xff] }
  0xd5   :  { %v2499_v0 = vpack.c.bf16 %v366_v57, %v358_v56  ;;  %v382_v5 = vld [vmem:[#allocation2 + $0x6c0] sm:$0xff]  ;;  %v304_v11 = vld [vmem:[#allocation2 + $0x450] sm:$0xff]  ;;  %v313_v13 = vld [vmem:[#allocation2 + $0x498] sm:$0xff] }
  0xd6   :  { %2540 = vmatpush1.bf16.msra.mxu1 %v2539_v60  ;;  %v2503_v12 = vpack.c.bf16 %v382_v5, %v374_v4  ;;  %v321_v14 = vld [vmem:[#allocation2 + $0x4d8] sm:$0xff]  ;;  %v390_v16 = vld [vmem:[#allocation2 + $0x700] sm:$0xff]  ;;  %v415_v19 = vld [vmem:[#allocation2 + $0x7c8] sm:$0xff]  ;;  %v2547_v20 = vpack.c.bf16 %v304_v11, %v296_v10 }
  0xd7   :  { %2480 = vmatpush1.bf16.msra.mxu0 %v2479_v3  ;;  %v2501_v3 = vpack.c.bf16 %v383_v59, %v375_v58  ;;  %2542 = vmatprep.subr.bf16.mxu1 %v2541_v61  ;;  %v398_v17 = vld [vmem:[#allocation2 + $0x740] sm:$0xff]  ;;  %v2549_v21 = vpack.c.bf16 %v321_v14, %v313_v13  ;;  %v312_v22 = vld [vmem:[#allocation2 + $0x490] sm:$0xff]  ;;  %v329_v25 = vld [vmem:[#allocation2 + $0x518] sm:$0xff] }
  0xd8   :  { %2482 = vmatprep.subr.bf16.mxu0 %v2481_v6  ;;  %v391_v6 = vld [vmem:[#allocation2 + $0x708] sm:$0xff]  ;;  %v320_v23 = vld [vmem:[#allocation2 + $0x4d0] sm:$0xff]  ;;  %v2507_v24 = vpack.c.bf16 %v398_v17, %v390_v16  ;;  %v337_v26 = vld [vmem:[#allocation2 + $0x558] sm:$0xff] }
  0xd9   :  { %v406_v28 = vld [vmem:[#allocation2 + $0x780] sm:$0xff]  ;;  %v171_v31 = vld [vmem:[#allocation2 + $0x28] sm:$0xff]  ;;  %v2553_v33 = vpack.c.bf16 %v337_v26, %v329_v25  ;;  %v328_v34 = vld [vmem:[#allocation2 + $0x510] sm:$0xff] }
  0xda   :  { %2544 = vmatpush1.bf16.msra.mxu1 %v2543_v8  ;;  %v414_v29 = vld [vmem:[#allocation2 + $0x7c0] sm:$0xff]  ;;  %v179_v32 = vld [vmem:[#allocation2 + $0x68] sm:$0xff]  ;;  %v336_v35 = vld [vmem:[#allocation2 + $0x550] sm:$0xff] }
  0xdb   :  { %2484 = vmatpush1.bf16.msra.mxu0 %v2483_v15  ;;  %v2505_v15 = vpack.c.bf16 %v399_v7, %v391_v6  ;;  %2546 = vmatprep.subr.bf16.mxu1 %v2545_v9  ;;  %v2511_v36 = vpack.c.bf16 %v414_v29, %v406_v28  ;;  %v345_v37 = vld [vmem:[#allocation2 + $0x598] sm:$0xff]  ;;  %v170_v40 = vld [vmem:[#allocation2 + $0x20] sm:$0xff]  ;;  %v187_v44 = vld [vmem:[#allocation2 + $0xa8] sm:$0xff] }
  0xdc   :  { %2486 = vmatprep.subr.bf16.mxu0 %v2485_v18  ;;  %v407_v18 = vld [vmem:[#allocation2 + $0x788] sm:$0xff]  ;;  %v353_v38 = vld [vmem:[#allocation2 + $0x5d8] sm:$0xff]  ;;  %v178_v41 = vld [vmem:[#allocation2 + $0x60] sm:$0xff] }
  0xdd   :  { %v195_v45 = vld [vmem:[#allocation2 + $0xe8] sm:$0xff]  ;;  %v2557_v46 = vpack.c.bf16 %v353_v38, %v345_v37  ;;  %v344_v47 = vld [vmem:[#allocation2 + $0x590] sm:$0xff]  ;;  %v3886_v49 = vld [vmem:[%s3958_s0] sm:$0xff] }
  0xde   :  { %2548 = vmatpush1.bf16.msra.mxu1 %v2547_v20  ;;  %v352_v48 = vld [vmem:[#allocation2 + $0x5d0] sm:$0xff]  ;;  %v361_v50 = vld [vmem:[#allocation2 + $0x618] sm:$0xff]  ;;  %v2581_v53 = vpack.c.bf16 %v195_v45, %v187_v44  ;;  %v186_v54 = vld [vmem:[#allocation2 + $0xa0] sm:$0xff] }
  0xdf   :  { %2488 = vmatpush1.bf16.msra.mxu0 %v2487_v27  ;;  %v2509_v27 = vpack.c.bf16 %v415_v19, %v407_v18  ;;  %2550 = vmatprep.subr.bf16.mxu1 %v2549_v21  ;;  %v369_v51 = vld [vmem:[#allocation2 + $0x658] sm:$0xff]  ;;  %v2559_v56 = vpack.c.bf16 %v352_v48, %v344_v47  ;;  %v203_v57 = vld [vmem:[#allocation2 + $0x128] sm:$0xff]  ;;  %v360_v60 = vld [vmem:[#allocation2 + $0x610] sm:$0xff] }
  0xe0   :  { %2490 = vmatprep.subr.bf16.mxu0 %v2489_v30  ;;  %v2551_v30 = vpack.c.bf16 %v320_v23, %v312_v22  ;;  %v211_v58 = vld [vmem:[#allocation2 + $0x168] sm:$0xff]  ;;  %v2561_v59 = vpack.c.bf16 %v369_v51, %v361_v50  ;;  %v368_v61 = vld [vmem:[#allocation2 + $0x650] sm:$0xff]  ;;  %v377_v62 = vld [vmem:[#allocation2 + $0x698] sm:$0xff] }
  0xe1   :  { %v385_v63 = vld [vmem:[#allocation2 + $0x6d8] sm:$0xff]  ;;  %v2585_v1 = vpack.c.bf16 %v211_v58, %v203_v57  ;;  %v202_v2 = vld [vmem:[#allocation2 + $0x120] sm:$0xff]  ;;  %v2563_v4 = vpack.c.bf16 %v368_v61, %v360_v60  ;;  %v219_v5 = vld [vmem:[#allocation2 + $0x1a8] sm:$0xff] }
  0xe2   :  { %2552 = vmatpush1.bf16.msra.mxu1 %v2551_v30  ;;  %v227_v6 = vld [vmem:[#allocation2 + $0x1e8] sm:$0xff]  ;;  %v2565_v7 = vpack.c.bf16 %v385_v63, %v377_v62  ;;  %v376_v8 = vld [vmem:[#allocation2 + $0x690] sm:$0xff]  ;;  %v393_v10 = vld [vmem:[#allocation2 + $0x718] sm:$0xff] }
  0xe3   :  { %2492 = vmatpush1.bf16.msra.mxu0 %v2491_v39  ;;  %v2577_v39 = vpack.c.bf16 %v179_v32, %v171_v31  ;;  %2554 = vmatprep.subr.bf16.mxu1 %v2553_v33  ;;  %v384_v9 = vld [vmem:[#allocation2 + $0x6d0] sm:$0xff]  ;;  %v401_v11 = vld [vmem:[#allocation2 + $0x758] sm:$0xff]  ;;  %v2589_v13 = vpack.c.bf16 %v227_v6, %v219_v5  ;;  %v218_v14 = vld [vmem:[#allocation2 + $0x1a0] sm:$0xff] }
  0xe4   :  { %2494 = vmatprep.subr.bf16.mxu0 %v2493_v43  ;;  %v2555_v43 = vpack.c.bf16 %v336_v35, %v328_v34  ;;  %v2567_v16 = vpack.c.bf16 %v384_v9, %v376_v8  ;;  %v235_v17 = vld [vmem:[#allocation2 + $0x228] sm:$0xff]  ;;  %v2569_v19 = vpack.c.bf16 %v401_v11, %v393_v10  ;;  %v392_v20 = vld [vmem:[#allocation2 + $0x710] sm:$0xff]  ;;  %v409_v22 = vld [vmem:[#allocation2 + $0x798] sm:$0xff] }
  0xe5   :  { %v243_v18 = vld [vmem:[#allocation2 + $0x268] sm:$0xff]  ;;  %v400_v21 = vld [vmem:[#allocation2 + $0x750] sm:$0xff]  ;;  %v417_v23 = vld [vmem:[#allocation2 + $0x7d8] sm:$0xff] }
  0xe6   :  { %2556 = vmatpush1.bf16.msra.mxu1 %v2555_v43  ;;  %v2593_v25 = vpack.c.bf16 %v243_v18, %v235_v17  ;;  %v234_v26 = vld [vmem:[#allocation2 + $0x220] sm:$0xff]  ;;  %v2571_v28 = vpack.c.bf16 %v400_v21, %v392_v20  ;;  %v251_v29 = vld [vmem:[#allocation2 + $0x2a8] sm:$0xff]  ;;  %v2573_v31 = vpack.c.bf16 %v417_v23, %v409_v22  ;;  %v408_v32 = vld [vmem:[#allocation2 + $0x790] sm:$0xff] }
  0xe7   :  { %2496 = vmatpush1.bf16.msra.mxu0 %v2495_v52  ;;  %v2579_v52 = vpack.c.bf16 %v178_v41, %v170_v40  ;;  %2558 = vmatprep.subr.bf16.mxu1 %v2557_v46  ;;  %v259_v30 = vld [vmem:[#allocation2 + $0x2e8] sm:$0xff]  ;;  %v416_v33 = vld [vmem:[#allocation2 + $0x7d0] sm:$0xff]  ;;  %v173_v35 = vld [vmem:[#allocation2 + $0x38] sm:$0xff] }
  0xe8   :  { %2498 = vmatprep.subr.bf16.mxu0 %v2497_v55  ;;  %v194_v55 = vld [vmem:[#allocation2 + $0xe0] sm:$0xff]  ;;  %v2597_v37 = vpack.c.bf16 %v259_v30, %v251_v29  ;;  %v2575_v40 = vpack.c.bf16 %v416_v33, %v408_v32  ;;  %v267_v41 = vld [vmem:[#allocation2 + $0x328] sm:$0xff]  ;;  %v172_v45 = vld [vmem:[#allocation2 + $0x30] sm:$0xff] }
  0xe9   :  { %v250_v38 = vld [vmem:[#allocation2 + $0x2a0] sm:$0xff]  ;;  %v275_v43 = vld [vmem:[#allocation2 + $0x368] sm:$0xff]  ;;  %v180_v46 = vld [vmem:[#allocation2 + $0x70] sm:$0xff] }
  0xea   :  { %2560 = vmatpush1.bf16.msra.mxu1 %v2559_v56  ;;  %v189_v48 = vld [vmem:[#allocation2 + $0xb8] sm:$0xff]  ;;  %v2601_v51 = vpack.c.bf16 %v275_v43, %v267_v41  ;;  %v291_v56 = vld [vmem:[#allocation2 + $0x3e8] sm:$0xff]  ;;  %v188_v58 = vld [vmem:[#allocation2 + $0xb0] sm:$0xff] }
  0xeb   :  { %2500 = vmatpush1.bf16.msra.mxu0 %v2499_v0  ;;  %v2583_v0 = vpack.c.bf16 %v194_v55, %v186_v54  ;;  %2562 = vmatprep.subr.bf16.mxu1 %v2561_v59  ;;  %v197_v50 = vld [vmem:[#allocation2 + $0xf8] sm:$0xff]  ;;  %v2643_v54 = vpack.c.bf16 %v180_v46, %v172_v45  ;;  %v283_v55 = vld [vmem:[#allocation2 + $0x3a8] sm:$0xff]  ;;  %v196_v59 = vld [vmem:[#allocation2 + $0xf0] sm:$0xff] }
  0xec   :  { %2502 = vmatprep.subr.bf16.mxu0 %v2501_v3  ;;  %v210_v3 = vld [vmem:[#allocation2 + $0x160] sm:$0xff]  ;;  %v2645_v57 = vpack.c.bf16 %v197_v50, %v189_v48  ;;  %v205_v61 = vld [vmem:[#allocation2 + $0x138] sm:$0xff]  ;;  %v2605_v63 = vpack.c.bf16 %v291_v56, %v283_v55  ;;  %v204_v6 = vld [vmem:[#allocation2 + $0x130] sm:$0xff] }
  0xed   :  { %v213_v62 = vld [vmem:[#allocation2 + $0x178] sm:$0xff]  ;;  %v220_v18 = vld [vmem:[#allocation2 + $0x1b0] sm:$0xff]  ;;  %v314_v23 = vld [vmem:[#allocation2 + $0x4a0] sm:$0xff] }
  0xee   :  { %2564 = vmatpush1.bf16.msra.mxu1 %v2563_v4  ;;  %v307_v4 = vld [vmem:[#allocation2 + $0x468] sm:$0xff]  ;;  %v2649_v5 = vpack.c.bf16 %v213_v62, %v205_v61  ;;  %v221_v9 = vld [vmem:[#allocation2 + $0x1b8] sm:$0xff]  ;;  %v236_v29 = vld [vmem:[#allocation2 + $0x230] sm:$0xff] }
  0xef   :  { %2504 = vmatpush1.bf16.msra.mxu0 %v2503_v12  ;;  %v2587_v12 = vpack.c.bf16 %v210_v3, %v202_v2  ;;  %2566 = vmatprep.subr.bf16.mxu1 %v2565_v7  ;;  %v2647_v2 = vpack.c.bf16 %v196_v59, %v188_v58  ;;  %v299_v3 = vld [vmem:[#allocation2 + $0x428] sm:$0xff]  ;;  %v212_v7 = vld [vmem:[#allocation2 + $0x170] sm:$0xff]  ;;  %v229_v10 = vld [vmem:[#allocation2 + $0x1f8] sm:$0xff] }
  0xf0   :  { %2506 = vmatprep.subr.bf16.mxu0 %v2505_v15  ;;  %v226_v15 = vld [vmem:[#allocation2 + $0x1e0] sm:$0xff]  ;;  %v2609_v11 = vpack.c.bf16 %v307_v4, %v299_v3  ;;  %v2653_v17 = vpack.c.bf16 %v229_v10, %v221_v9  ;;  %v237_v20 = vld [vmem:[#allocation2 + $0x238] sm:$0xff]  ;;  %v244_v30 = vld [vmem:[#allocation2 + $0x270] sm:$0xff] }
  0xf1   :  { %v245_v21 = vld [vmem:[#allocation2 + $0x278] sm:$0xff]  ;;  %v252_v41 = vld [vmem:[#allocation2 + $0x2b0] sm:$0xff]  ;;  %v346_v48 = vld [vmem:[#allocation2 + $0x5a0] sm:$0xff] }
  0xf2   :  { %2568 = vmatpush1.bf16.msra.mxu1 %v2567_v16  ;;  %v323_v16 = vld [vmem:[#allocation2 + $0x4e8] sm:$0xff]  ;;  %v253_v32 = vld [vmem:[#allocation2 + $0x2b8] sm:$0xff]  ;;  %v260_v43 = vld [vmem:[#allocation2 + $0x2f0] sm:$0xff] }
  0xf3   :  { %2508 = vmatpush1.bf16.msra.mxu0 %v2507_v24  ;;  %v2591_v24 = vpack.c.bf16 %v226_v15, %v218_v14  ;;  %2570 = vmatprep.subr.bf16.mxu1 %v2569_v19  ;;  %v2651_v14 = vpack.c.bf16 %v212_v7, %v204_v6  ;;  %v315_v15 = vld [vmem:[#allocation2 + $0x4a8] sm:$0xff]  ;;  %v261_v33 = vld [vmem:[#allocation2 + $0x2f8] sm:$0xff]  ;;  %v354_v50 = vld [vmem:[#allocation2 + $0x5e0] sm:$0xff] }
  0xf4   :  { %2510 = vmatprep.subr.bf16.mxu0 %v2509_v27  ;;  %v242_v27 = vld [vmem:[#allocation2 + $0x260] sm:$0xff]  ;;  %v2613_v22 = vpack.c.bf16 %v323_v16, %v315_v15  ;;  %v269_v45 = vld [vmem:[#allocation2 + $0x338] sm:$0xff]  ;;  %v268_v55 = vld [vmem:[#allocation2 + $0x330] sm:$0xff] }
  0xf5   :  { %v2595_v34 = vpack.c.bf16 %v242_v27, %v234_v26  ;;  %v331_v26 = vld [vmem:[#allocation2 + $0x528] sm:$0xff]  ;;  %v277_v46 = vld [vmem:[#allocation2 + $0x378] sm:$0xff]  ;;  %v276_v56 = vld [vmem:[#allocation2 + $0x370] sm:$0xff] }
  0xf6   :  { %2572 = vmatpush1.bf16.msra.mxu1 %v2571_v28  ;;  %v339_v27 = vld [vmem:[#allocation2 + $0x568] sm:$0xff]  ;;  %v2657_v28 = vpack.c.bf16 %v245_v21, %v237_v20  ;;  %v285_v58 = vld [vmem:[#allocation2 + $0x3b8] sm:$0xff]  ;;  %v362_v61 = vld [vmem:[#allocation2 + $0x620] sm:$0xff] }
  0xf7   :  { %2512 = vmatpush1.bf16.msra.mxu0 %v2511_v36  ;;  %v181_v36 = vld [vmem:[#allocation2 + $0x78] sm:$0xff]  ;;  %2574 = vmatprep.subr.bf16.mxu1 %v2573_v31  ;;  %v370_v62 = vld [vmem:[#allocation2 + $0x660] sm:$0xff]  ;;  %v284_v3 = vld [vmem:[#allocation2 + $0x3b0] sm:$0xff] }
  0xf8   :  { %2578 = vmatprep.subr.bf16.mxu0 %v2577_v39  ;;  %v258_v39 = vld [vmem:[#allocation2 + $0x2e0] sm:$0xff]  ;;  %v2641_v44 = vpack.c.bf16 %v181_v36, %v173_v35  ;;  %v293_v59 = vld [vmem:[#allocation2 + $0x3f8] sm:$0xff]  ;;  %v292_v4 = vld [vmem:[#allocation2 + $0x3f0] sm:$0xff] }
  0xf9   :  { %v2599_v47 = vpack.c.bf16 %v258_v39, %v250_v38  ;;  %v330_v35 = vld [vmem:[#allocation2 + $0x520] sm:$0xff]  ;;  %v347_v38 = vld [vmem:[#allocation2 + $0x5a8] sm:$0xff]  ;;  %v301_v6 = vld [vmem:[#allocation2 + $0x438] sm:$0xff] }
  0xfa   :  { %529 = vmatmul.mubr.f32.vlgmr.msra.gmra.mrb[0].mxu0 %v3886_v49  ;;  %2576 = vmatpush1.bf16.msra.mxu1 %v2575_v40  ;;  %v338_v36 = vld [vmem:[#allocation2 + $0x560] sm:$0xff]  ;;  %v355_v39 = vld [vmem:[#allocation2 + $0x5e8] sm:$0xff]  ;;  %v2661_v40 = vpack.c.bf16 %v261_v33, %v253_v32  ;;  %v309_v7 = vld [vmem:[#allocation2 + $0x478] sm:$0xff] }
  0xfb   :  { %2580 = vmatpush1.bf16.msra.mxu0 %v2579_v52  ;;  %670 = vmatprep.mubr.f32.mxu0 %v3879_v42  ;;  %v266_v52 = vld [vmem:[#allocation2 + $0x320] sm:$0xff]  ;;  %v300_v15 = vld [vmem:[#allocation2 + $0x430] sm:$0xff] }
  0xfc   :  { %2582 = vmatprep.subr.bf16.mxu0 %v2581_v53  ;;  %v274_v53 = vld [vmem:[#allocation2 + $0x360] sm:$0xff]  ;;  %2642 = vmatprep.subr.bf16.mxu1 %v2641_v44  ;;  %v2619_v44 = vpack.c.bf16 %v338_v36, %v330_v35  ;;  %v308_v16 = vld [vmem:[#allocation2 + $0x470] sm:$0xff] }
  0xfd   :  { %v2603_v60 = vpack.c.bf16 %v274_v53, %v266_v52  ;;  %600 = vmatmul.mubr.f32.vlgmr.msra.gmra.mrb[0].mxu1 %v3886_v49  ;;  %v363_v52 = vld [vmem:[#allocation2 + $0x628] sm:$0xff]  ;;  %v378_v9 = vld [vmem:[#allocation2 + $0x6a0] sm:$0xff]  ;;  %v757_v35 = vld [vmem:[#allocation6 + $0x8] sm:$0xff] }
  0xfe   :  { %2644 = vmatpush1.bf16.msra.mxu1 %v2643_v54  ;;  %741 = vmatprep.mubr.f32.mxu1 %v3879_v42  ;;  %v228_v42 = vld [vmem:[#allocation2 + $0x1f0] sm:$0xff]  ;;  %v371_v53 = vld [vmem:[#allocation2 + $0x668] sm:$0xff]  ;;  %v2665_v54 = vpack.c.bf16 %v277_v46, %v269_v45  ;;  %v386_v10 = vld [vmem:[#allocation2 + $0x6e0] sm:$0xff] }
  0xff   :  { %2584 = vmatpush1.bf16.msra.mxu0 %v2583_v0  ;;  %v282_v0 = vld [vmem:[#allocation2 + $0x3a0] sm:$0xff]  ;;  %2646 = vmatprep.subr.bf16.mxu1 %v2645_v57  ;;  %v2623_v57 = vpack.c.bf16 %v354_v50, %v346_v48  ;;  %v761_v36 = vld [vmem:[#allocation6 + $0x28] sm:$0xff]  ;;  %v756_v45 = vld [vmem:[#allocation6] sm:$0xff] }
 0x100   :  { %2586 = vmatprep.subr.bf16.mxu0 %v2585_v1  ;;  %v290_v1 = vld [vmem:[#allocation2 + $0x3e0] sm:$0xff]  ;;  %v760_v46 = vld [vmem:[#allocation6 + $0x20] sm:$0xff]  ;;  %v765_v48 = vld [vmem:[#allocation6 + $0x48] sm:$0xff] }
 0x101   :  { %v2607_v8 = vpack.c.bf16 %v290_v1, %v282_v0  ;;  %v379_v0 = vld [vmem:[#allocation2 + $0x6a8] sm:$0xff]  ;;  %v394_v20 = vld [vmem:[#allocation2 + $0x720] sm:$0xff]  ;;  %v769_v50 = vld [vmem:[#allocation6 + $0x68] sm:$0xff] }
 0x102   :  { %2648 = vmatpush1.bf16.msra.mxu1 %v2647_v2  ;;  %v387_v1 = vld [vmem:[#allocation2 + $0x6e8] sm:$0xff]  ;;  %v2669_v2 = vpack.c.bf16 %v293_v59, %v285_v58  ;;  %v402_v21 = vld [vmem:[#allocation2 + $0x760] sm:$0xff] }
 0x103   :  { %2588 = vmatpush1.bf16.msra.mxu0 %v2587_v12  ;;  %v298_v12 = vld [vmem:[#allocation2 + $0x420] sm:$0xff]  ;;  %2650 = vmatprep.subr.bf16.mxu1 %v2649_v5  ;;  %v2627_v5 = vpack.c.bf16 %v370_v62, %v362_v61  ;;  %v764_v58 = vld [vmem:[#allocation6 + $0x40] sm:$0xff]  ;;  %v773_v61 = vld [vmem:[#allocation6 + $0x88] sm:$0xff] }
 0x104   :  { %2590 = vmatprep.subr.bf16.mxu0 %v2589_v13  ;;  %v306_v13 = vld [vmem:[#allocation2 + $0x460] sm:$0xff]  ;;  %v768_v59 = vld [vmem:[#allocation6 + $0x60] sm:$0xff]  ;;  %v777_v62 = vld [vmem:[#allocation6 + $0xa8] sm:$0xff] }
 0x105   :  { %v2611_v19 = vpack.c.bf16 %v306_v13, %v298_v12  ;;  %v395_v12 = vld [vmem:[#allocation2 + $0x728] sm:$0xff]  ;;  %v410_v32 = vld [vmem:[#allocation2 + $0x7a0] sm:$0xff] }
 0x106   :  { %2652 = vmatpush1.bf16.msra.mxu1 %v2651_v14  ;;  %v403_v13 = vld [vmem:[#allocation2 + $0x768] sm:$0xff]  ;;  %v2673_v14 = vpack.c.bf16 %v309_v7, %v301_v6  ;;  %v418_v33 = vld [vmem:[#allocation2 + $0x7e0] sm:$0xff] }
 0x107   :  { %2592 = vmatpush1.bf16.msra.mxu0 %v2591_v24  ;;  %v322_v24 = vld [vmem:[#allocation2 + $0x4e0] sm:$0xff]  ;;  %2654 = vmatprep.subr.bf16.mxu1 %v2653_v17  ;;  %v2631_v17 = vpack.c.bf16 %v386_v10, %v378_v9  ;;  %v772_v6 = vld [vmem:[#allocation6 + $0x80] sm:$0xff]  ;;  %v781_v9 = vld [vmem:[#allocation6 + $0xc8] sm:$0xff] }
 0x108   :  { %2594 = vmatprep.subr.bf16.mxu0 %v2593_v25  ;;  %v2655_v25 = vpack.c.bf16 %v228_v42, %v220_v18  ;;  %v2615_v31 = vpack.c.bf16 %v322_v24, %v314_v23  ;;  %v317_v18 = vld [vmem:[#allocation2 + $0x4b8] sm:$0xff]  ;;  %v411_v23 = vld [vmem:[#allocation2 + $0x7a8] sm:$0xff]  ;;  %v785_v10 = vld [vmem:[#allocation6 + $0xe8] sm:$0xff] }
 0x109   :  { %v325_v42 = vld [vmem:[#allocation2 + $0x4f8] sm:$0xff]  ;;  %v419_v24 = vld [vmem:[#allocation2 + $0x7e8] sm:$0xff] }
 0x10a   :  { %2656 = vmatpush1.bf16.msra.mxu1 %v2655_v25  ;;  %v2677_v25 = vpack.c.bf16 %v325_v42, %v317_v18  ;;  %v776_v7 = vld [vmem:[#allocation6 + $0xa0] sm:$0xff] }
 0x10b   :  { %2596 = vmatpush1.bf16.msra.mxu0 %v2595_v34  ;;  %v2617_v34 = vpack.c.bf16 %v339_v27, %v331_v26  ;;  %2658 = vmatprep.subr.bf16.mxu1 %v2657_v28  ;;  %v316_v26 = vld [vmem:[#allocation2 + $0x4b0] sm:$0xff]  ;;  %v2635_v28 = vpack.c.bf16 %v402_v21, %v394_v20  ;;  %v780_v18 = vld [vmem:[#allocation6 + $0xc0] sm:$0xff] }
 0x10c   :  { %2598 = vmatprep.subr.bf16.mxu0 %v2597_v37  ;;  %v2659_v37 = vpack.c.bf16 %v244_v30, %v236_v29  ;;  %v324_v27 = vld [vmem:[#allocation2 + $0x4f0] sm:$0xff]  ;;  %v333_v29 = vld [vmem:[#allocation2 + $0x538] sm:$0xff]  ;;  %v784_v42 = vld [vmem:[#allocation6 + $0xe0] sm:$0xff] }
 0x10d   :  { %v341_v30 = vld [vmem:[#allocation2 + $0x578] sm:$0xff]  ;;  %v789_v20 = vld [vmem:[#allocation6 + $0x108] sm:$0xff] }
 0x10e   :  { %2660 = vmatpush1.bf16.msra.mxu1 %v2659_v37  ;;  %v2681_v37 = vpack.c.bf16 %v341_v30, %v333_v29  ;;  %v793_v21 = vld [vmem:[#allocation6 + $0x128] sm:$0xff]  ;;  %v788_v29 = vld [vmem:[#allocation6 + $0x100] sm:$0xff] }
 0x10f   :  { %2600 = vmatpush1.bf16.msra.mxu0 %v2599_v47  ;;  %v2621_v47 = vpack.c.bf16 %v355_v39, %v347_v38  ;;  %2662 = vmatprep.subr.bf16.mxu1 %v2661_v40  ;;  %v332_v38 = vld [vmem:[#allocation2 + $0x530] sm:$0xff]  ;;  %v2639_v40 = vpack.c.bf16 %v418_v33, %v410_v32  ;;  %v792_v30 = vld [vmem:[#allocation6 + $0x120] sm:$0xff] }
 0x110   :  { %2602 = vmatprep.subr.bf16.mxu0 %v2601_v51  ;;  %v2663_v51 = vpack.c.bf16 %v260_v43, %v252_v41  ;;  %v340_v39 = vld [vmem:[#allocation2 + $0x570] sm:$0xff]  ;;  %v349_v41 = vld [vmem:[#allocation2 + $0x5b8] sm:$0xff] }
 0x111   :  { %v357_v43 = vld [vmem:[#allocation2 + $0x5f8] sm:$0xff]  ;;  %v797_v32 = vld [vmem:[#allocation6 + $0x148] sm:$0xff] }
 0x112   :  { %2664 = vmatpush1.bf16.msra.mxu1 %v2663_v51  ;;  %v2685_v51 = vpack.c.bf16 %v357_v43, %v349_v41  ;;  %v801_v33 = vld [vmem:[#allocation6 + $0x168] sm:$0xff]  ;;  %v796_v41 = vld [vmem:[#allocation6 + $0x140] sm:$0xff] }
 0x113   :  { %2604 = vmatpush1.bf16.msra.mxu0 %v2603_v60  ;;  %v2625_v60 = vpack.c.bf16 %v371_v53, %v363_v52  ;;  %2666 = vmatprep.subr.bf16.mxu1 %v2665_v54  ;;  %v348_v52 = vld [vmem:[#allocation2 + $0x5b0] sm:$0xff]  ;;  %v365_v54 = vld [vmem:[#allocation2 + $0x638] sm:$0xff]  ;;  %v800_v43 = vld [vmem:[#allocation6 + $0x160] sm:$0xff] }
 0x114   :  { %2606 = vmatprep.subr.bf16.mxu0 %v2605_v63  ;;  %v2667_v63 = vpack.c.bf16 %v276_v56, %v268_v55  ;;  %v356_v53 = vld [vmem:[#allocation2 + $0x5f0] sm:$0xff]  ;;  %v373_v55 = vld [vmem:[#allocation2 + $0x678] sm:$0xff]  ;;  %v2707_v56 = vpack.c.bf16 %v760_v46, %v756_v45 }
 0x115   :  { %v805_v45 = vld [vmem:[#allocation6 + $0x188] sm:$0xff] }
 0x116   :  { %2668 = vmatpush1.bf16.msra.mxu1 %v2667_v63  ;;  %v2689_v63 = vpack.c.bf16 %v373_v55, %v365_v54  ;;  %v809_v46 = vld [vmem:[#allocation6 + $0x1a8] sm:$0xff]  ;;  %v804_v55 = vld [vmem:[#allocation6 + $0x180] sm:$0xff] }
 0x117   :  { %2608 = vmatpush1.bf16.msra.mxu0 %v2607_v8  ;;  %v2629_v8 = vpack.c.bf16 %v387_v1, %v379_v0  ;;  %2670 = vmatprep.subr.bf16.mxu1 %v2669_v2  ;;  %v364_v0 = vld [vmem:[#allocation2 + $0x630] sm:$0xff]  ;;  %v381_v2 = vld [vmem:[#allocation2 + $0x6b8] sm:$0xff]  ;;  %v2729_v54 = vpack.c.bf16 %v809_v46, %v805_v45  ;;  %v807_v46 = vld [vmem:[#allocation6 + $0x198] sm:$0xff] }
 0x118   :  { %2610 = vmatprep.subr.bf16.mxu0 %v2609_v11  ;;  %v2671_v11 = vpack.c.bf16 %v292_v4, %v284_v3  ;;  %v372_v1 = vld [vmem:[#allocation2 + $0x670] sm:$0xff]  ;;  %v389_v3 = vld [vmem:[#allocation2 + $0x6f8] sm:$0xff]  ;;  %v2711_v4 = vpack.c.bf16 %v768_v59, %v764_v58 }
 0x119   :  { %v813_v58 = vld [vmem:[#allocation6 + $0x1c8] sm:$0xff]  ;;  %v802_v45 = vld [vmem:[#allocation6 + $0x170] sm:$0xff] }
 0x11a   :  { %2672 = vmatpush1.bf16.msra.mxu1 %v2671_v11  ;;  %v2693_v11 = vpack.c.bf16 %v389_v3, %v381_v2  ;;  %v817_v59 = vld [vmem:[#allocation6 + $0x1e8] sm:$0xff]  ;;  %v812_v3 = vld [vmem:[#allocation6 + $0x1c0] sm:$0xff] }
 0x11b   :  { %2612 = vmatpush1.bf16.msra.mxu0 %v2611_v19  ;;  %v2633_v19 = vpack.c.bf16 %v403_v13, %v395_v12  ;;  %2674 = vmatprep.subr.bf16.mxu1 %v2673_v14  ;;  %v380_v12 = vld [vmem:[#allocation2 + $0x6b0] sm:$0xff]  ;;  %v397_v14 = vld [vmem:[#allocation2 + $0x738] sm:$0xff]  ;;  %v2733_v2 = vpack.c.bf16 %v817_v59, %v813_v58  ;;  %v815_v59 = vld [vmem:[#allocation6 + $0x1d8] sm:$0xff] }
 0x11c   :  { %2614 = vmatprep.subr.bf16.mxu0 %v2613_v22  ;;  %v2675_v22 = vpack.c.bf16 %v308_v16, %v300_v15  ;;  %v388_v13 = vld [vmem:[#allocation2 + $0x6f0] sm:$0xff]  ;;  %v405_v15 = vld [vmem:[#allocation2 + $0x778] sm:$0xff]  ;;  %v2715_v16 = vpack.c.bf16 %v776_v7, %v772_v6 }
 0x11d   :  { %v821_v6 = vld [vmem:[#allocation6 + $0x208] sm:$0xff]  ;;  %v810_v58 = vld [vmem:[#allocation6 + $0x1b0] sm:$0xff] }
 0x11e   :  { %2676 = vmatpush1.bf16.msra.mxu1 %v2675_v22  ;;  %v2697_v22 = vpack.c.bf16 %v405_v15, %v397_v14  ;;  %v825_v7 = vld [vmem:[#allocation6 + $0x228] sm:$0xff]  ;;  %v820_v15 = vld [vmem:[#allocation6 + $0x200] sm:$0xff] }
 0x11f   :  { %2616 = vmatpush1.bf16.msra.mxu0 %v2615_v31  ;;  %v2637_v31 = vpack.c.bf16 %v419_v24, %v411_v23  ;;  %2678 = vmatprep.subr.bf16.mxu1 %v2677_v25  ;;  %v396_v23 = vld [vmem:[#allocation2 + $0x730] sm:$0xff]  ;;  %v413_v25 = vld [vmem:[#allocation2 + $0x7b8] sm:$0xff]  ;;  %v2737_v14 = vpack.c.bf16 %v825_v7, %v821_v6  ;;  %v823_v7 = vld [vmem:[#allocation6 + $0x218] sm:$0xff] }
 0x120   :  { %2618 = vmatprep.subr.bf16.mxu0 %v2617_v34  ;;  %v2679_v34 = vpack.c.bf16 %v324_v27, %v316_v26  ;;  %v404_v24 = vld [vmem:[#allocation2 + $0x770] sm:$0xff]  ;;  %v421_v26 = vld [vmem:[#allocation2 + $0x7f8] sm:$0xff]  ;;  %v2719_v27 = vpack.c.bf16 %v784_v42, %v780_v18 }
 0x121   :  { %v833_v18 = vld [vmem:[#allocation6 + $0x268] sm:$0xff]  ;;  %v818_v6 = vld [vmem:[#allocation6 + $0x1f0] sm:$0xff] }
 0x122   :  { %2680 = vmatpush1.bf16.msra.mxu1 %v2679_v34  ;;  %v2701_v34 = vpack.c.bf16 %v421_v26, %v413_v25  ;;  %v828_v25 = vld [vmem:[#allocation6 + $0x240] sm:$0xff] }
 0x123   :  { %2620 = vmatpush1.bf16.msra.mxu0 %v2619_v44  ;;  %v2705_v44 = vpack.c.bf16 %v761_v36, %v757_v35  ;;  %2682 = vmatprep.subr.bf16.mxu1 %v2681_v37  ;;  %v412_v35 = vld [vmem:[#allocation2 + $0x7b0] sm:$0xff]  ;;  %v759_v37 = vld [vmem:[#allocation6 + $0x18] sm:$0xff]  ;;  %v832_v26 = vld [vmem:[#allocation6 + $0x260] sm:$0xff] }
 0x124   :  { %2622 = vmatprep.subr.bf16.mxu0 %v2621_v47  ;;  %v2683_v47 = vpack.c.bf16 %v340_v39, %v332_v38  ;;  %v420_v36 = vld [vmem:[#allocation2 + $0x7f0] sm:$0xff]  ;;  %v763_v38 = vld [vmem:[#allocation6 + $0x38] sm:$0xff]  ;;  %v2723_v39 = vpack.c.bf16 %v792_v30, %v788_v29 }
 0x125   :  { %v841_v29 = vld [vmem:[#allocation6 + $0x2a8] sm:$0xff] }
 0x126   :  { %2684 = vmatpush1.bf16.msra.mxu1 %v2683_v47  ;;  %v2961_v47 = vpack.c.bf16 %v763_v38, %v759_v37  ;;  %v836_v37 = vld [vmem:[#allocation6 + $0x280] sm:$0xff] }
 0x127   :  { %2624 = vmatpush1.bf16.msra.mxu0 %v2623_v57  ;;  %v2709_v57 = vpack.c.bf16 %v769_v50, %v765_v48  ;;  %2686 = vmatprep.subr.bf16.mxu1 %v2685_v51  ;;  %v758_v48 = vld [vmem:[#allocation6 + $0x10] sm:$0xff]  ;;  %v767_v51 = vld [vmem:[#allocation6 + $0x58] sm:$0xff]  ;;  %v840_v38 = vld [vmem:[#allocation6 + $0x2a0] sm:$0xff] }
 0x128   :  { %2626 = vmatprep.subr.bf16.mxu0 %v2625_v60  ;;  %v2687_v60 = vpack.c.bf16 %v356_v53, %v348_v52  ;;  %v762_v50 = vld [vmem:[#allocation6 + $0x30] sm:$0xff]  ;;  %v771_v52 = vld [vmem:[#allocation6 + $0x78] sm:$0xff]  ;;  %v2727_v53 = vpack.c.bf16 %v800_v43, %v796_v41  ;;  %v849_v41 = vld [vmem:[#allocation6 + $0x2e8] sm:$0xff] }
 0x12a   :  { %2688 = vmatpush1.bf16.msra.mxu1 %v2687_v60  ;;  %v2965_v60 = vpack.c.bf16 %v771_v52, %v767_v51  ;;  %v844_v51 = vld [vmem:[#allocation6 + $0x2c0] sm:$0xff] }
 0x12b   :  { %2628 = vmatpush1.bf16.msra.mxu0 %v2627_v5  ;;  %v2713_v5 = vpack.c.bf16 %v777_v62, %v773_v61  ;;  %2690 = vmatprep.subr.bf16.mxu1 %v2689_v63  ;;  %v766_v61 = vld [vmem:[#allocation6 + $0x50] sm:$0xff]  ;;  %v775_v63 = vld [vmem:[#allocation6 + $0x98] sm:$0xff]  ;;  %v848_v52 = vld [vmem:[#allocation6 + $0x2e0] sm:$0xff] }
 0x12c   :  { %2630 = vmatprep.subr.bf16.mxu0 %v2629_v8  ;;  %v2691_v8 = vpack.c.bf16 %v372_v1, %v364_v0  ;;  %v770_v62 = vld [vmem:[#allocation6 + $0x70] sm:$0xff]  ;;  %v779_v0 = vld [vmem:[#allocation6 + $0xb8] sm:$0xff] }
 0x12e   :  { %2692 = vmatpush1.bf16.msra.mxu1 %v2691_v8  ;;  %v2969_v8 = vpack.c.bf16 %v779_v0, %v775_v63  ;;  %v852_v63 = vld [vmem:[#allocation6 + $0x300] sm:$0xff] }
 0x12f   :  { %2632 = vmatpush1.bf16.msra.mxu0 %v2631_v17  ;;  %v2717_v17 = vpack.c.bf16 %v785_v10, %v781_v9  ;;  %2694 = vmatprep.subr.bf16.mxu1 %v2693_v11  ;;  %v774_v9 = vld [vmem:[#allocation6 + $0x90] sm:$0xff]  ;;  %v783_v11 = vld [vmem:[#allocation6 + $0xd8] sm:$0xff]  ;;  %v856_v0 = vld [vmem:[#allocation6 + $0x320] sm:$0xff] }
 0x130   :  { %2634 = vmatprep.subr.bf16.mxu0 %v2633_v19  ;;  %v2695_v19 = vpack.c.bf16 %v388_v13, %v380_v12  ;;  %v778_v10 = vld [vmem:[#allocation6 + $0xb0] sm:$0xff]  ;;  %v787_v12 = vld [vmem:[#allocation6 + $0xf8] sm:$0xff] }
 0x131   :  { %v2973_v42 = vpack.c.bf16 %v787_v12, %v783_v11  ;;  %v860_v11 = vld [vmem:[#allocation6 + $0x340] sm:$0xff] }
 0x132   :  { %2696 = vmatpush1.bf16.msra.mxu1 %v2695_v19  ;;  %v782_v19 = vld [vmem:[#allocation6 + $0xd0] sm:$0xff]  ;;  %v864_v12 = vld [vmem:[#allocation6 + $0x360] sm:$0xff] }
 0x133   :  { %2636 = vmatpush1.bf16.msra.mxu0 %v2635_v28  ;;  %v2721_v28 = vpack.c.bf16 %v793_v21, %v789_v20  ;;  %2698 = vmatprep.subr.bf16.mxu1 %v2697_v22  ;;  %v786_v20 = vld [vmem:[#allocation6 + $0xf0] sm:$0xff]  ;;  %v791_v21 = vld [vmem:[#allocation6 + $0x118] sm:$0xff] }
 0x134   :  { %2638 = vmatprep.subr.bf16.mxu0 %v2637_v31  ;;  %v2699_v31 = vpack.c.bf16 %v404_v24, %v396_v23  ;;  %v795_v22 = vld [vmem:[#allocation6 + $0x138] sm:$0xff] }
 0x135   :  { %v2977_v30 = vpack.c.bf16 %v795_v22, %v791_v21  ;;  %v868_v21 = vld [vmem:[#allocation6 + $0x380] sm:$0xff] }
 0x136   :  { %2700 = vmatpush1.bf16.msra.mxu1 %v2699_v31  ;;  %v790_v31 = vld [vmem:[#allocation6 + $0x110] sm:$0xff]  ;;  %v872_v22 = vld [vmem:[#allocation6 + $0x3a0] sm:$0xff] }
 0x137   :  { %2640 = vmatpush1.bf16.msra.mxu0 %v2639_v40  ;;  %v2725_v40 = vpack.c.bf16 %v801_v33, %v797_v32  ;;  %2702 = vmatprep.subr.bf16.mxu1 %v2701_v34  ;;  %v794_v32 = vld [vmem:[#allocation6 + $0x130] sm:$0xff]  ;;  %v799_v33 = vld [vmem:[#allocation6 + $0x158] sm:$0xff] }
 0x138   :  { %2706 = vmatprep.subr.bf16.mxu0 %v2705_v44  ;;  %v2703_v44 = vpack.c.bf16 %v420_v36, %v412_v35  ;;  %v803_v34 = vld [vmem:[#allocation6 + $0x178] sm:$0xff]  ;;  %v2743_v35 = vpack.c.bf16 %v832_v26, %v828_v25  ;;  %v881_v25 = vld [vmem:[#allocation6 + $0x3e8] sm:$0xff] }
 0x139   :  { %v2981_v43 = vpack.c.bf16 %v803_v34, %v799_v33  ;;  %v876_v33 = vld [vmem:[#allocation6 + $0x3c0] sm:$0xff] }
 0x13a   :  { %671 = vmatmul.mubr.f32.vlgmr.msra.gmra.mrb[2].mxu0 %v3886_v49  ;;  %2704 = vmatpush1.bf16.msra.mxu1 %v2703_v44  ;;  %v798_v44 = vld [vmem:[#allocation6 + $0x150] sm:$0xff]  ;;  %v880_v34 = vld [vmem:[#allocation6 + $0x3e0] sm:$0xff] }
 0x13b   :  { %2708 = vmatpush1.bf16.msra.mxu0 %v2707_v56  ;;  %v808_v56 = vld [vmem:[#allocation6 + $0x1a0] sm:$0xff]  ;;  %2962 = vmatprep.subr.bf16.mxu1 %v2961_v47  ;;  %v811_v47 = vld [vmem:[#allocation6 + $0x1b8] sm:$0xff] }
 0x13c   :  { %2710 = vmatprep.subr.bf16.mxu0 %v2709_v57  ;;  %v2963_v57 = vpack.c.bf16 %v762_v50, %v758_v48  ;;  %v2731_v1 = vpack.c.bf16 %v808_v56, %v804_v55  ;;  %v2747_v48 = vpack.c.bf16 %v840_v38, %v836_v37  ;;  %v857_v55 = vld [vmem:[#allocation6 + $0x328] sm:$0xff]  ;;  %v2985_v56 = vpack.c.bf16 %v811_v47, %v807_v46 }
 0x13d   :  { %742 = vmatmul.mubr.f32.vlgmr.msra.gmra.mrb[2].mxu1 %v3886_v49  ;;  %v824_v49 = vld [vmem:[#allocation6 + $0x220] sm:$0xff]  ;;  %v889_v37 = vld [vmem:[#allocation6 + $0x428] sm:$0xff] }
 0x13e   :  { %2964 = vmatpush1.bf16.msra.mxu1 %v2963_v57  ;;  %v2739_v23 = vpack.c.bf16 %v824_v49, %v820_v15  ;;  %v806_v57 = vld [vmem:[#allocation6 + $0x190] sm:$0xff]  ;;  %v873_v15 = vld [vmem:[#allocation6 + $0x3a8] sm:$0xff] }
 0x13f   :  { %2712 = vmatpush1.bf16.msra.mxu0 %v2711_v4  ;;  %v816_v4 = vld [vmem:[#allocation6 + $0x1e0] sm:$0xff]  ;;  %2966 = vmatprep.subr.bf16.mxu1 %v2965_v60  ;;  %v819_v60 = vld [vmem:[#allocation6 + $0x1f8] sm:$0xff] }
 0x140   :  { %2714 = vmatprep.subr.bf16.mxu0 %v2713_v5  ;;  %v2967_v5 = vpack.c.bf16 %v770_v62, %v766_v61  ;;  %v2735_v13 = vpack.c.bf16 %v816_v4, %v812_v3  ;;  %v2751_v61 = vpack.c.bf16 %v848_v52, %v844_v51  ;;  %v865_v3 = vld [vmem:[#allocation6 + $0x368] sm:$0xff]  ;;  %v2989_v4 = vpack.c.bf16 %v819_v60, %v815_v59  ;;  %v855_v51 = vld [vmem:[#allocation6 + $0x318] sm:$0xff] }
 0x141   :  { %v859_v52 = vld [vmem:[#allocation6 + $0x338] sm:$0xff] }
 0x142   :  { %2968 = vmatpush1.bf16.msra.mxu1 %v2967_v5  ;;  %v814_v5 = vld [vmem:[#allocation6 + $0x1d0] sm:$0xff] }
 0x143   :  { %2716 = vmatpush1.bf16.msra.mxu0 %v2715_v16  ;;  %v2971_v16 = vpack.c.bf16 %v778_v10, %v774_v9  ;;  %2970 = vmatprep.subr.bf16.mxu1 %v2969_v8  ;;  %v827_v8 = vld [vmem:[#allocation6 + $0x238] sm:$0xff]  ;;  %v2755_v9 = vpack.c.bf16 %v856_v0, %v852_v63 }
 0x144   :  { %2718 = vmatprep.subr.bf16.mxu0 %v2717_v17  ;;  %v829_v17 = vld [vmem:[#allocation6 + $0x248] sm:$0xff]  ;;  %v2993_v49 = vpack.c.bf16 %v827_v8, %v823_v7  ;;  %v871_v63 = vld [vmem:[#allocation6 + $0x398] sm:$0xff] }
 0x145   :  { %v2741_v24 = vpack.c.bf16 %v833_v18, %v829_v17  ;;  %v826_v17 = vld [vmem:[#allocation6 + $0x230] sm:$0xff]  ;;  %v831_v18 = vld [vmem:[#allocation6 + $0x258] sm:$0xff] }
 0x146   :  { %2972 = vmatpush1.bf16.msra.mxu1 %v2971_v16  ;;  %v822_v16 = vld [vmem:[#allocation6 + $0x210] sm:$0xff]  ;;  %v875_v0 = vld [vmem:[#allocation6 + $0x3b8] sm:$0xff] }
 0x147   :  { %2720 = vmatpush1.bf16.msra.mxu0 %v2719_v27  ;;  %v2975_v27 = vpack.c.bf16 %v786_v20, %v782_v19  ;;  %2974 = vmatprep.subr.bf16.mxu1 %v2973_v42  ;;  %v835_v42 = vld [vmem:[#allocation6 + $0x278] sm:$0xff]  ;;  %v2759_v19 = vpack.c.bf16 %v864_v12, %v860_v11 }
 0x148   :  { %2722 = vmatprep.subr.bf16.mxu0 %v2721_v28  ;;  %v837_v28 = vld [vmem:[#allocation6 + $0x288] sm:$0xff]  ;;  %v2997_v26 = vpack.c.bf16 %v835_v42, %v831_v18  ;;  %v887_v11 = vld [vmem:[#allocation6 + $0x418] sm:$0xff] }
 0x149   :  { %v2745_v36 = vpack.c.bf16 %v841_v29, %v837_v28  ;;  %v834_v28 = vld [vmem:[#allocation6 + $0x270] sm:$0xff]  ;;  %v839_v29 = vld [vmem:[#allocation6 + $0x298] sm:$0xff] }
 0x14a   :  { %2976 = vmatpush1.bf16.msra.mxu1 %v2975_v27  ;;  %v830_v27 = vld [vmem:[#allocation6 + $0x250] sm:$0xff]  ;;  %v891_v12 = vld [vmem:[#allocation6 + $0x438] sm:$0xff] }
 0x14b   :  { %2724 = vmatpush1.bf16.msra.mxu0 %v2723_v39  ;;  %v2979_v39 = vpack.c.bf16 %v794_v32, %v790_v31  ;;  %2978 = vmatprep.subr.bf16.mxu1 %v2977_v30  ;;  %v843_v30 = vld [vmem:[#allocation6 + $0x2b8] sm:$0xff]  ;;  %v2763_v31 = vpack.c.bf16 %v872_v22, %v868_v21  ;;  %v884_v21 = vld [vmem:[#allocation6 + $0x400] sm:$0xff] }
 0x14c   :  { %2726 = vmatprep.subr.bf16.mxu0 %v2725_v40  ;;  %v845_v40 = vld [vmem:[#allocation6 + $0x2c8] sm:$0xff]  ;;  %v3001_v38 = vpack.c.bf16 %v843_v30, %v839_v29  ;;  %v888_v22 = vld [vmem:[#allocation6 + $0x420] sm:$0xff]  ;;  %v895_v30 = vld [vmem:[#allocation6 + $0x458] sm:$0xff] }
 0x14d   :  { %v2749_v50 = vpack.c.bf16 %v849_v41, %v845_v40  ;;  %v842_v40 = vld [vmem:[#allocation6 + $0x2b0] sm:$0xff]  ;;  %v847_v41 = vld [vmem:[#allocation6 + $0x2d8] sm:$0xff]  ;;  %v897_v29 = vld [vmem:[#allocation6 + $0x468] sm:$0xff] }
 0x14e   :  { %2980 = vmatpush1.bf16.msra.mxu1 %v2979_v39  ;;  %v838_v39 = vld [vmem:[#allocation6 + $0x290] sm:$0xff] }
 0x14f   :  { %2728 = vmatpush1.bf16.msra.mxu0 %v2727_v53  ;;  %v2983_v53 = vpack.c.bf16 %v802_v45, %v798_v44  ;;  %2982 = vmatprep.subr.bf16.mxu1 %v2981_v43  ;;  %v851_v43 = vld [vmem:[#allocation6 + $0x2f8] sm:$0xff]  ;;  %v2767_v44 = vpack.c.bf16 %v880_v34, %v876_v33  ;;  %v3003_v46 = vpack.c.bf16 %v842_v40, %v838_v39  ;;  %v894_v40 = vld [vmem:[#allocation6 + $0x450] sm:$0xff] }
 0x150   :  { %2730 = vmatprep.subr.bf16.mxu0 %v2729_v54  ;;  %v853_v54 = vld [vmem:[#allocation6 + $0x308] sm:$0xff]  ;;  %v3005_v47 = vpack.c.bf16 %v851_v43, %v847_v41  ;;  %v2771_v33 = vpack.c.bf16 %v888_v22, %v884_v21  ;;  %v898_v41 = vld [vmem:[#allocation6 + $0x470] sm:$0xff]  ;;  %v927_v21 = vld [vmem:[#allocation6 + $0x558] sm:$0xff] }
 0x151   :  { %v2753_v62 = vpack.c.bf16 %v857_v55, %v853_v54  ;;  %v3009_v54 = vpack.c.bf16 %v859_v52, %v855_v51  ;;  %v854_v55 = vld [vmem:[#allocation6 + $0x310] sm:$0xff]  ;;  %v901_v43 = vld [vmem:[#allocation6 + $0x488] sm:$0xff]  ;;  %v904_v51 = vld [vmem:[#allocation6 + $0x4a0] sm:$0xff] }
 0x152   :  { %2984 = vmatpush1.bf16.msra.mxu1 %v2983_v53  ;;  %v931_v22 = vld [vmem:[#allocation6 + $0x578] sm:$0xff] }
 0x153   :  { %2732 = vmatpush1.bf16.msra.mxu0 %v2731_v1  ;;  %v2987_v1 = vpack.c.bf16 %v810_v58, %v806_v57  ;;  %2986 = vmatprep.subr.bf16.mxu1 %v2985_v56  ;;  %v858_v56 = vld [vmem:[#allocation6 + $0x330] sm:$0xff]  ;;  %v863_v57 = vld [vmem:[#allocation6 + $0x358] sm:$0xff] }
 0x154   :  { %2734 = vmatprep.subr.bf16.mxu0 %v2733_v2  ;;  %v861_v2 = vld [vmem:[#allocation6 + $0x348] sm:$0xff]  ;;  %v867_v58 = vld [vmem:[#allocation6 + $0x378] sm:$0xff]  ;;  %v3011_v59 = vpack.c.bf16 %v858_v56, %v854_v55  ;;  %v906_v55 = vld [vmem:[#allocation6 + $0x4b0] sm:$0xff] }
 0x155   :  { %v2757_v10 = vpack.c.bf16 %v865_v3, %v861_v2  ;;  %v3013_v60 = vpack.c.bf16 %v867_v58, %v863_v57  ;;  %v3017_v2 = vpack.c.bf16 %v875_v0, %v871_v63  ;;  %v870_v3 = vld [vmem:[#allocation6 + $0x390] sm:$0xff]  ;;  %v909_v56 = vld [vmem:[#allocation6 + $0x4c8] sm:$0xff]  ;;  %v911_v58 = vld [vmem:[#allocation6 + $0x4d8] sm:$0xff] }
 0x156   :  { %2988 = vmatpush1.bf16.msra.mxu1 %v2987_v1  ;;  %v913_v57 = vld [vmem:[#allocation6 + $0x4e8] sm:$0xff]  ;;  %v912_v63 = vld [vmem:[#allocation6 + $0x4e0] sm:$0xff] }
 0x157   :  { %2736 = vmatpush1.bf16.msra.mxu0 %v2735_v13  ;;  %v2991_v13 = vpack.c.bf16 %v818_v6, %v814_v5  ;;  %2990 = vmatprep.subr.bf16.mxu1 %v2989_v4  ;;  %v874_v4 = vld [vmem:[#allocation6 + $0x3b0] sm:$0xff]  ;;  %v879_v5 = vld [vmem:[#allocation6 + $0x3d8] sm:$0xff]  ;;  %v2781_v0 = vpack.c.bf16 %v913_v57, %v909_v56  ;;  %v940_v56 = vld [vmem:[#allocation6 + $0x5c0] sm:$0xff] }
 0x158   :  { %2738 = vmatprep.subr.bf16.mxu0 %v2737_v14  ;;  %v869_v14 = vld [vmem:[#allocation6 + $0x388] sm:$0xff]  ;;  %v883_v6 = vld [vmem:[#allocation6 + $0x3f8] sm:$0xff]  ;;  %v3019_v7 = vpack.c.bf16 %v874_v4, %v870_v3  ;;  %v914_v3 = vld [vmem:[#allocation6 + $0x4f0] sm:$0xff] }
 0x159   :  { %v2761_v20 = vpack.c.bf16 %v873_v15, %v869_v14  ;;  %v3021_v8 = vpack.c.bf16 %v883_v6, %v879_v5  ;;  %v3025_v14 = vpack.c.bf16 %v891_v12, %v887_v11  ;;  %v424_v15 = vlaneseq  ;;  %v917_v4 = vld [vmem:[#allocation6 + $0x508] sm:$0xff]  ;;  %v919_v6 = vld [vmem:[#allocation6 + $0x518] sm:$0xff]  ;;  %v920_v11 = vld [vmem:[#allocation6 + $0x520] sm:$0xff] }
 0x15a   :  { %2992 = vmatpush1.bf16.msra.mxu1 %v2991_v13  ;;  %v921_v5 = vld [vmem:[#allocation6 + $0x528] sm:$0xff]  ;;  %v944_v57 = vld [vmem:[#allocation6 + $0x5e0] sm:$0xff] }
 0x15b   :  { %2740 = vmatpush1.bf16.msra.mxu0 %v2739_v23  ;;  %v2995_v23 = vpack.c.bf16 %v826_v17, %v822_v16  ;;  %2994 = vmatprep.subr.bf16.mxu1 %v2993_v49  ;;  %v3894_v49 = vshrl.u32 %v424_v15, 7  ;;  %v3899_v17 = vld [vmem:[#allocation4] sm:$0xff]  ;;  %v918_v15 = vld [vmem:[#allocation6 + $0x510] sm:$0xff] }
 0x15c   :  { %2742 = vmatprep.subr.bf16.mxu0 %v2741_v24  ;;  %v877_v24 = vld [vmem:[#allocation6 + $0x3c8] sm:$0xff] }
 0x15d   :  { %v2765_v32 = vpack.c.bf16 %v881_v25, %v877_v24  ;;  %v3897_v16 = vsub.s32 0, %v3894_v49  ;;  %v3902_v18 = vsub.s32 1, %v3894_v49  ;;  %v886_v25 = vld [vmem:[#allocation6 + $0x410] sm:$0xff]  ;;  %v438_v12 = vsub.s32 3, %v3894_v49 }
 0x15e   :  { %2996 = vmatpush1.bf16.msra.mxu1 %v2995_v23 }
 0x15f   :  { %2744 = vmatpush1.bf16.msra.mxu0 %v2743_v35  ;;  %v2999_v35 = vpack.c.bf16 %v834_v28, %v830_v27  ;;  %2998 = vmatprep.subr.bf16.mxu1 %v2997_v26  ;;  %v427_v42 = vrot.slane %v3899_v17, %v3897_v16  ;;  %v890_v26 = vld [vmem:[#allocation6 + $0x430] sm:$0xff]  ;;  %v893_v27 = vld [vmem:[#allocation6 + $0x448] sm:$0xff] }
 0x160   :  { %2746 = vmatprep.subr.bf16.mxu0 %v2745_v36  ;;  %v885_v36 = vld [vmem:[#allocation6 + $0x408] sm:$0xff]  ;;  %v3027_v34 = vpack.c.bf16 %v890_v26, %v886_v25  ;;  %v924_v25 = vld [vmem:[#allocation6 + $0x540] sm:$0xff] }
 0x161   :  { %v2769_v45 = vpack.c.bf16 %v889_v37, %v885_v36  ;;  %v896_v36 = vld [vmem:[#allocation6 + $0x460] sm:$0xff] }
 0x162   :  { %3000 = vmatpush1.bf16.msra.mxu1 %v2999_v35  ;;  %v892_v35 = vld [vmem:[#allocation6 + $0x440] sm:$0xff] }
 0x163   :  { %2748 = vmatpush1.bf16.msra.mxu0 %v2747_v48  ;;  %3002 = vmatprep.subr.bf16.mxu1 %v3001_v38  ;;  %v846_v48 = vld [vmem:[#allocation6 + $0x2d0] sm:$0xff]  ;;  %v2773_v38 = vpack.c.bf16 %v897_v29, %v893_v27  ;;  %v928_v26 = vld [vmem:[#allocation6 + $0x560] sm:$0xff]  ;;  %v439_v27 = vrot.slane %v3899_v17, %v438_v12  ;;  %v3045_v29 = vpack.c.bf16 %v931_v22, %v927_v21 }
 0x164   :  { %2750 = vmatprep.subr.bf16.mxu0 %v2749_v50  ;;  %v850_v50 = vld [vmem:[#allocation6 + $0x2f0] sm:$0xff] }
 0x165   :  { %v3007_v53 = vpack.c.bf16 %v850_v50, %v846_v48  ;;  %v3031_v48 = vpack.c.bf16 %v898_v41, %v894_v40  ;;  %v900_v50 = vld [vmem:[#allocation6 + $0x480] sm:$0xff] }
 0x166   :  { %3004 = vmatpush1.bf16.msra.mxu1 %v3003_v46  ;;  %v907_v46 = vld [vmem:[#allocation6 + $0x4b8] sm:$0xff]  ;;  %v932_v40 = vld [vmem:[#allocation6 + $0x580] sm:$0xff] }
 0x167   :  { %2752 = vmatpush1.bf16.msra.mxu0 %v2751_v61  ;;  %3006 = vmatprep.subr.bf16.mxu1 %v3005_v47  ;;  %v862_v61 = vld [vmem:[#allocation6 + $0x350] sm:$0xff]  ;;  %v2775_v47 = vpack.c.bf16 %v896_v36, %v892_v35  ;;  %v939_v35 = vld [vmem:[#allocation6 + $0x5b8] sm:$0xff]  ;;  %v936_v41 = vld [vmem:[#allocation6 + $0x5a0] sm:$0xff] }
 0x168   :  { %2754 = vmatprep.subr.bf16.mxu0 %v2753_v62  ;;  %v866_v62 = vld [vmem:[#allocation6 + $0x370] sm:$0xff] }
 0x169   :  { %v3015_v1 = vpack.c.bf16 %v866_v62, %v862_v61  ;;  %v908_v62 = vld [vmem:[#allocation6 + $0x4c0] sm:$0xff] }
 0x16a   :  { %3008 = vmatpush1.bf16.msra.mxu1 %v3007_v53 }
 0x16b   :  { %2756 = vmatpush1.bf16.msra.mxu0 %v2755_v9  ;;  %3010 = vmatprep.subr.bf16.mxu1 %v3009_v54  ;;  %v878_v9 = vld [vmem:[#allocation6 + $0x3d0] sm:$0xff] }
 0x16c   :  { %2758 = vmatprep.subr.bf16.mxu0 %v2757_v10  ;;  %v882_v10 = vld [vmem:[#allocation6 + $0x3f0] sm:$0xff] }
 0x16d   :  { %v3023_v13 = vpack.c.bf16 %v882_v10, %v878_v9  ;;  %v902_v54 = vld [vmem:[#allocation6 + $0x490] sm:$0xff]  ;;  %v916_v10 = vld [vmem:[#allocation6 + $0x500] sm:$0xff] }
 0x16e   :  { %3012 = vmatpush1.bf16.msra.mxu1 %v3011_v59  ;;  %v915_v59 = vld [vmem:[#allocation6 + $0x4f8] sm:$0xff]  ;;  %v3035_v61 = vpack.c.bf16 %v906_v55, %v902_v54  ;;  %v2795_v54 = vpack.c.bf16 %v936_v41, %v932_v40 }
 0x16f   :  { %2760 = vmatpush1.bf16.msra.mxu0 %v2759_v19  ;;  %3014 = vmatprep.subr.bf16.mxu1 %v3013_v60  ;;  %v431_v19 = vrot.slane %v3899_v17, %v3902_v18  ;;  %v2779_v60 = vpack.c.bf16 %v904_v51, %v900_v50  ;;  %v945_v50 = vld [vmem:[#allocation6 + $0x5e8] sm:$0xff]  ;;  %v943_v51 = vld [vmem:[#allocation6 + $0x5d8] sm:$0xff] }
 0x170   :  { %2762 = vmatprep.subr.bf16.mxu0 %v2761_v20  ;;  %v975_v40 = vld [vmem:[#allocation6 + $0x6d8] sm:$0xff] }
 0x171   :  { %v979_v41 = vld [vmem:[#allocation6 + $0x6f8] sm:$0xff] }
 0x172   :  { %3016 = vmatpush1.bf16.msra.mxu1 %v3015_v1  ;;  %v3037_v1 = vpack.c.bf16 %v915_v59, %v911_v58 }
 0x173   :  { %2764 = vmatpush1.bf16.msra.mxu0 %v2763_v31  ;;  %3018 = vmatprep.subr.bf16.mxu1 %v3017_v2  ;;  %v899_v31 = vld [vmem:[#allocation6 + $0x478] sm:$0xff]  ;;  %v910_v2 = vld [vmem:[#allocation6 + $0x4d0] sm:$0xff] }
 0x174   :  { %2766 = vmatprep.subr.bf16.mxu0 %v2765_v32  ;;  %v3029_v39 = vpack.c.bf16 %v899_v31, %v895_v30  ;;  %v3039_v9 = vpack.c.bf16 %v914_v3, %v910_v2  ;;  %v926_v30 = vld [vmem:[#allocation6 + $0x550] sm:$0xff]  ;;  %v2799_v2 = vpack.c.bf16 %v944_v57, %v940_v56 }
 0x175   :  { %v930_v31 = vld [vmem:[#allocation6 + $0x570] sm:$0xff] }
 0x176   :  { %3020 = vmatpush1.bf16.msra.mxu1 %v3019_v7  ;;  %v923_v7 = vld [vmem:[#allocation6 + $0x538] sm:$0xff] }
 0x177   :  { %2768 = vmatpush1.bf16.msra.mxu0 %v2767_v44  ;;  %3022 = vmatprep.subr.bf16.mxu1 %v3021_v8  ;;  %v905_v44 = vld [vmem:[#allocation6 + $0x4a8] sm:$0xff]  ;;  %v2783_v8 = vpack.c.bf16 %v912_v63, %v908_v62 }
 0x178   :  { %2770 = vmatprep.subr.bf16.mxu0 %v2769_v45  ;;  %v903_v45 = vld [vmem:[#allocation6 + $0x498] sm:$0xff]  ;;  %v2777_v52 = vpack.c.bf16 %v905_v44, %v901_v43  ;;  %v949_v62 = vld [vmem:[#allocation6 + $0x608] sm:$0xff] }
 0x179   :  { %v3033_v53 = vpack.c.bf16 %v907_v46, %v903_v45  ;;  %v934_v46 = vld [vmem:[#allocation6 + $0x590] sm:$0xff]  ;;  %v953_v63 = vld [vmem:[#allocation6 + $0x628] sm:$0xff] }
 0x17a   :  { %3024 = vmatpush1.bf16.msra.mxu1 %v3023_v13  ;;  %v2785_v13 = vpack.c.bf16 %v921_v5, %v917_v4  ;;  %v948_v4 = vld [vmem:[#allocation6 + $0x600] sm:$0xff] }
 0x17b   :  { %3026 = vmatprep.subr.bf16.mxu1 %v3025_v14  ;;  %v3041_v14 = vpack.c.bf16 %v923_v7, %v919_v6  ;;  %v952_v5 = vld [vmem:[#allocation6 + $0x620] sm:$0xff]  ;;  %v2801_v6 = vpack.c.bf16 %v953_v63, %v949_v62  ;;  %v982_v62 = vld [vmem:[#allocation6 + $0x710] sm:$0xff] }
 0x17c   :  { %v986_v63 = vld [vmem:[#allocation6 + $0x730] sm:$0xff] }
 0x1cd   :  { %v530_v20 = vpop.f32.mrb[0].mxu0 }
 0x1ce   :  { %v531_v23 = vadd.f32 %v530_v20, %v427_v42  ;;  %v532_v24 = vpop.f32.mrb[1].mxu0  ;;  %v922_v42 = vld [vmem:[#allocation6 + $0x530] sm:$0xff]  ;;  %v929_v20 = vld [vmem:[#allocation6 + $0x568] sm:$0xff] }
 0x1cf   :  { %v533_v28 = vadd.f32 %v532_v24, %v431_v19  ;;  %v925_v19 = vld [vmem:[#allocation6 + $0x548] sm:$0xff]  ;;  %v3043_v24 = vpack.c.bf16 %v922_v42, %v918_v15  ;;  %v2803_v15 = vpack.c.bf16 %v952_v5, %v948_v4  ;;  %v3075_v5 = vpack.c.bf16 %v986_v63, %v982_v62  ;;  %v1027_v63 = vld [vmem:[#allocation6 + $0x878] sm:$0xff] }
 0x1d0   :  { %v748_v37 = vmax.f32 %v531_v23, 0.0  ;;  %v2787_v23 = vpack.c.bf16 %v920_v11, %v916_v10  ;;  %v3912_v36 = vpop.f32.mrb[0].mxu1  ;;  %v957_v10 = vld [vmem:[#allocation6 + $0x648] sm:$0xff] }
 0x1d1   :  { %v749_v32 = vmax.f32 %v533_v28, 0.0  ;;  %v2789_v28 = vpack.c.bf16 %v929_v20, %v925_v19  ;;  %v961_v11 = vld [vmem:[#allocation6 + $0x668] sm:$0xff]  ;;  %v956_v19 = vld [vmem:[#allocation6 + $0x640] sm:$0xff] }
 0x1d2   :  { %v960_v20 = vld [vmem:[#allocation6 + $0x660] sm:$0xff]  ;;  %v2805_v21 = vpack.c.bf16 %v961_v11, %v957_v10  ;;  %v990_v10 = vld [vmem:[#allocation6 + $0x750] sm:$0xff]  ;;  %v1025_v62 = vld [vmem:[#allocation6 + $0x868] sm:$0xff] }
 0x1d3   :  { %1354 = vmatprep.mubr.f32.mxu0 %v749_v32  ;;  %1638 = vmatprep.mubr.f32.mxu1 %v749_v32  ;;  %v933_v32 = vld [vmem:[#allocation6 + $0x588] sm:$0xff]  ;;  %v994_v11 = vld [vmem:[#allocation6 + $0x770] sm:$0xff] }
 0x1d4   :  { %1355 = vmatmul.mubr.f32.vlgmr.msra.gmra.mrb[4].mxu0 %v748_v37  ;;  %1639 = vmatmul.mubr.f32.vlgmr.msra.gmra.mrb[4].mxu1 %v748_v37  ;;  %v603_v37 = vpop.f32.mrb[1].mxu1 }
 0x1d5   :  { %2772 = vmatpush1.bf16.msra.mxu0 %v2771_v33  ;;  %3028 = vmatpush1.bf16.msra.mxu1 %v3027_v34  ;;  %v937_v33 = vld [vmem:[#allocation6 + $0x5a8] sm:$0xff]  ;;  %v935_v34 = vld [vmem:[#allocation6 + $0x598] sm:$0xff]  ;;  %v604_v43 = vadd.f32 %v603_v37, %v439_v27  ;;  %v970_v37 = vld [vmem:[#allocation6 + $0x6b0] sm:$0xff] }
 0x1d6   :  { %2774 = vmatprep.subr.bf16.mxu0 %v2773_v38  ;;  %3030 = vmatprep.subr.bf16.mxu1 %v3029_v39  ;;  %v2791_v38 = vpack.c.bf16 %v928_v26, %v924_v25  ;;  %v3047_v39 = vpack.c.bf16 %v930_v31, %v926_v30  ;;  %v2793_v44 = vpack.c.bf16 %v937_v33, %v933_v32  ;;  %v965_v25 = vld [vmem:[#allocation6 + $0x688] sm:$0xff]  ;;  %v967_v27 = vld [vmem:[#allocation6 + $0x698] sm:$0xff]  ;;  %v964_v31 = vld [vmem:[#allocation6 + $0x680] sm:$0xff] }
 0x1d7   :  { %v3049_v45 = vpack.c.bf16 %v939_v35, %v935_v34  ;;  %v969_v26 = vld [vmem:[#allocation6 + $0x6a8] sm:$0xff]  ;;  %v968_v32 = vld [vmem:[#allocation6 + $0x6a0] sm:$0xff]  ;;  %v966_v35 = vld [vmem:[#allocation6 + $0x690] sm:$0xff] }
 0x1d8   :  { %v2809_v33 = vpack.c.bf16 %v969_v26, %v965_v25  ;;  %v998_v26 = vld [vmem:[#allocation6 + $0x790] sm:$0xff] }
 0x1d9   :  { %2776 = vmatpush1.bf16.msra.mxu0 %v2775_v47  ;;  %3032 = vmatpush1.bf16.msra.mxu1 %v3031_v48  ;;  %v938_v47 = vld [vmem:[#allocation6 + $0x5b0] sm:$0xff]  ;;  %v941_v48 = vld [vmem:[#allocation6 + $0x5c8] sm:$0xff] }
 0x1da   :  { %2778 = vmatprep.subr.bf16.mxu0 %v2777_v52  ;;  %3034 = vmatprep.subr.bf16.mxu1 %v3033_v53  ;;  %v947_v52 = vld [vmem:[#allocation6 + $0x5f8] sm:$0xff]  ;;  %v751_v53 = vmax.f32 %v604_v43, 0.0  ;;  %v3051_v55 = vpack.c.bf16 %v938_v47, %v934_v46  ;;  %v2797_v58 = vpack.c.bf16 %v945_v50, %v941_v48  ;;  %v2811_v43 = vpack.c.bf16 %v968_v32, %v964_v31  ;;  %v976_v46 = vld [vmem:[#allocation6 + $0x6e0] sm:$0xff]  ;;  %v974_v50 = vld [vmem:[#allocation6 + $0x6d0] sm:$0xff] }
 0x1db   :  { %v3053_v59 = vpack.c.bf16 %v947_v52, %v943_v51  ;;  %v3069_v48 = vpack.c.bf16 %v979_v41, %v975_v40  ;;  %v978_v51 = vld [vmem:[#allocation6 + $0x6f0] sm:$0xff]  ;;  %v981_v52 = vld [vmem:[#allocation6 + $0x708] sm:$0xff]  ;;  %v1011_v31 = vld [vmem:[#allocation6 + $0x7f8] sm:$0xff]  ;;  %v446_v32 = vsub.s32 5, %v3894_v49 }
 0x1dc   :  { %1425 = vmatprep.mubr.f32.mxu0 %v751_v53  ;;  %1709 = vmatprep.mubr.f32.mxu1 %v751_v53  ;;  %v985_v53 = vld [vmem:[#allocation6 + $0x728] sm:$0xff]  ;;  %v3071_v57 = vpack.c.bf16 %v978_v51, %v974_v50  ;;  %v1006_v41 = vld [vmem:[#allocation6 + $0x7d0] sm:$0xff] }
 0x1dd   :  { %2780 = vmatpush1.bf16.msra.mxu0 %v2779_v60  ;;  %3036 = vmatpush1.bf16.msra.mxu1 %v3035_v61  ;;  %v942_v60 = vld [vmem:[#allocation6 + $0x5d0] sm:$0xff] }
 0x1de   :  { %2782 = vmatprep.subr.bf16.mxu0 %v2781_v0  ;;  %3038 = vmatprep.subr.bf16.mxu1 %v3037_v1  ;;  %v946_v61 = vld [vmem:[#allocation6 + $0x5f0] sm:$0xff]  ;;  %v951_v0 = vld [vmem:[#allocation6 + $0x618] sm:$0xff] }
 0x1df   :  { %v955_v1 = vld [vmem:[#allocation6 + $0x638] sm:$0xff]  ;;  %v3055_v3 = vpack.c.bf16 %v946_v61, %v942_v60  ;;  %v2817_v60 = vpack.c.bf16 %v985_v53, %v981_v52  ;;  %v1012_v53 = vld [vmem:[#allocation6 + $0x800] sm:$0xff] }
 0x1e0   :  { %v3057_v7 = vpack.c.bf16 %v955_v1, %v951_v0  ;;  %v989_v0 = vld [vmem:[#allocation6 + $0x748] sm:$0xff] }
 0x1e1   :  { %2784 = vmatpush1.bf16.msra.mxu0 %v2783_v8  ;;  %3040 = vmatpush1.bf16.msra.mxu1 %v3039_v9  ;;  %v950_v8 = vld [vmem:[#allocation6 + $0x610] sm:$0xff]  ;;  %v993_v1 = vld [vmem:[#allocation6 + $0x768] sm:$0xff] }
 0x1e2   :  { %2786 = vmatprep.subr.bf16.mxu0 %v2785_v13  ;;  %3042 = vmatprep.subr.bf16.mxu1 %v3041_v14  ;;  %v954_v9 = vld [vmem:[#allocation6 + $0x630] sm:$0xff]  ;;  %v959_v13 = vld [vmem:[#allocation6 + $0x658] sm:$0xff] }
 0x1e3   :  { %v963_v14 = vld [vmem:[#allocation6 + $0x678] sm:$0xff]  ;;  %v3059_v42 = vpack.c.bf16 %v954_v9, %v950_v8  ;;  %v2821_v8 = vpack.c.bf16 %v993_v1, %v989_v0 }
 0x1e4   :  { %v3061_v22 = vpack.c.bf16 %v963_v14, %v959_v13  ;;  %v997_v13 = vld [vmem:[#allocation6 + $0x788] sm:$0xff] }
 0x1e5   :  { %2788 = vmatpush1.bf16.msra.mxu0 %v2787_v23  ;;  %3044 = vmatpush1.bf16.msra.mxu1 %v3043_v24  ;;  %v958_v23 = vld [vmem:[#allocation6 + $0x650] sm:$0xff]  ;;  %v1001_v14 = vld [vmem:[#allocation6 + $0x7a8] sm:$0xff] }
 0x1e6   :  { %2790 = vmatprep.subr.bf16.mxu0 %v2789_v28  ;;  %3046 = vmatprep.subr.bf16.mxu1 %v3045_v29  ;;  %v962_v24 = vld [vmem:[#allocation6 + $0x670] sm:$0xff]  ;;  %v971_v28 = vld [vmem:[#allocation6 + $0x6b8] sm:$0xff]  ;;  %v2807_v29 = vpack.c.bf16 %v960_v20, %v956_v19  ;;  %v434_v19 = vsub.s32 2, %v3894_v49 }
 0x1e7   :  { %v3063_v30 = vpack.c.bf16 %v962_v24, %v958_v23  ;;  %v3065_v34 = vpack.c.bf16 %v971_v28, %v967_v27  ;;  %v1000_v23 = vld [vmem:[#allocation6 + $0x7a0] sm:$0xff]  ;;  %v2825_v24 = vpack.c.bf16 %v1001_v14, %v997_v13  ;;  %v1002_v27 = vld [vmem:[#allocation6 + $0x7b0] sm:$0xff]  ;;  %v1005_v28 = vld [vmem:[#allocation6 + $0x7c8] sm:$0xff] }
 0x1e8   :  { %v1035_v13 = vld [vmem:[#allocation6 + $0x8b8] sm:$0xff] }
 0x1e9   :  { %2792 = vmatpush1.bf16.msra.mxu0 %v2791_v38  ;;  %3048 = vmatpush1.bf16.msra.mxu1 %v3047_v39  ;;  %v973_v38 = vld [vmem:[#allocation6 + $0x6c8] sm:$0xff] }
 0x1ea   :  { %2794 = vmatprep.subr.bf16.mxu0 %v2793_v44  ;;  %3050 = vmatprep.subr.bf16.mxu1 %v3049_v45  ;;  %v977_v39 = vld [vmem:[#allocation6 + $0x6e8] sm:$0xff]  ;;  %v3067_v44 = vpack.c.bf16 %v970_v37, %v966_v35  ;;  %v972_v45 = vld [vmem:[#allocation6 + $0x6c0] sm:$0xff]  ;;  %v3083_v35 = vpack.c.bf16 %v1002_v27, %v998_v26 }
 0x1eb   :  { %v2813_v47 = vpack.c.bf16 %v977_v39, %v973_v38  ;;  %v2815_v56 = vpack.c.bf16 %v976_v46, %v972_v45  ;;  %v1004_v37 = vld [vmem:[#allocation6 + $0x7c0] sm:$0xff]  ;;  %v1017_v45 = vld [vmem:[#allocation6 + $0x828] sm:$0xff]  ;;  %v1015_v46 = vld [vmem:[#allocation6 + $0x818] sm:$0xff] }
 0x1ec   :  { %v1008_v38 = vld [vmem:[#allocation6 + $0x7e0] sm:$0xff]  ;;  %v1037_v26 = vld [vmem:[#allocation6 + $0x8c8] sm:$0xff] }
 0x1ed   :  { %2796 = vmatpush1.bf16.msra.mxu0 %v2795_v54  ;;  %3052 = vmatpush1.bf16.msra.mxu1 %v3051_v55  ;;  %v983_v54 = vld [vmem:[#allocation6 + $0x718] sm:$0xff]  ;;  %v2831_v51 = vpack.c.bf16 %v1008_v38, %v1004_v37  ;;  %v1041_v27 = vld [vmem:[#allocation6 + $0x8e8] sm:$0xff]  ;;  %v1038_v37 = vld [vmem:[#allocation6 + $0x8d0] sm:$0xff] }
 0x1ee   :  { %2798 = vmatprep.subr.bf16.mxu0 %v2797_v58  ;;  %3054 = vmatprep.subr.bf16.mxu1 %v3053_v59  ;;  %v987_v55 = vld [vmem:[#allocation6 + $0x738] sm:$0xff]  ;;  %v980_v58 = vld [vmem:[#allocation6 + $0x700] sm:$0xff]  ;;  %v1042_v38 = vld [vmem:[#allocation6 + $0x8f0] sm:$0xff] }
 0x1ef   :  { %v984_v59 = vld [vmem:[#allocation6 + $0x720] sm:$0xff]  ;;  %v3073_v61 = vpack.c.bf16 %v987_v55, %v983_v54 }
 0x1f0   :  { %v2819_v4 = vpack.c.bf16 %v984_v59, %v980_v58  ;;  %v1016_v54 = vld [vmem:[#allocation6 + $0x820] sm:$0xff]  ;;  %v1014_v58 = vld [vmem:[#allocation6 + $0x810] sm:$0xff] }
 0x1f1   :  { %2800 = vmatpush1.bf16.msra.mxu0 %v2799_v2  ;;  %3056 = vmatpush1.bf16.msra.mxu1 %v3055_v3  ;;  %v991_v2 = vld [vmem:[#allocation6 + $0x758] sm:$0xff]  ;;  %v1018_v59 = vld [vmem:[#allocation6 + $0x830] sm:$0xff]  ;;  %v2835_v1 = vpack.c.bf16 %v1016_v54, %v1012_v53  ;;  %v1053_v53 = vld [vmem:[#allocation6 + $0x948] sm:$0xff] }
 0x1f2   :  { %2802 = vmatprep.subr.bf16.mxu0 %v2801_v6  ;;  %3058 = vmatprep.subr.bf16.mxu1 %v3057_v7  ;;  %v995_v3 = vld [vmem:[#allocation6 + $0x778] sm:$0xff]  ;;  %v988_v6 = vld [vmem:[#allocation6 + $0x740] sm:$0xff]  ;;  %v1057_v54 = vld [vmem:[#allocation6 + $0x968] sm:$0xff] }
 0x1f3   :  { %v992_v7 = vld [vmem:[#allocation6 + $0x760] sm:$0xff]  ;;  %v3077_v9 = vpack.c.bf16 %v995_v3, %v991_v2  ;;  %v3091_v2 = vpack.c.bf16 %v1018_v59, %v1014_v58 }
 0x1f4   :  { %v2823_v20 = vpack.c.bf16 %v992_v7, %v988_v6  ;;  %v1020_v3 = vld [vmem:[#allocation6 + $0x840] sm:$0xff]  ;;  %v1022_v7 = vld [vmem:[#allocation6 + $0x850] sm:$0xff] }
 0x1f5   :  { %2804 = vmatpush1.bf16.msra.mxu0 %v2803_v15  ;;  %3060 = vmatpush1.bf16.msra.mxu1 %v3059_v42  ;;  %v999_v15 = vld [vmem:[#allocation6 + $0x798] sm:$0xff] }
 0x1f6   :  { %2806 = vmatprep.subr.bf16.mxu0 %v2805_v21  ;;  %3062 = vmatprep.subr.bf16.mxu1 %v3061_v22  ;;  %v1003_v42 = vld [vmem:[#allocation6 + $0x7b8] sm:$0xff]  ;;  %v3079_v21 = vpack.c.bf16 %v994_v11, %v990_v10  ;;  %v996_v22 = vld [vmem:[#allocation6 + $0x780] sm:$0xff]  ;;  %v1033_v10 = vld [vmem:[#allocation6 + $0x8a8] sm:$0xff] }
 0x1f7   :  { %v3081_v25 = vpack.c.bf16 %v1003_v42, %v999_v15  ;;  %v1031_v11 = vld [vmem:[#allocation6 + $0x898] sm:$0xff] }
 0x1f9   :  { %2808 = vmatpush1.bf16.msra.mxu0 %v2807_v29  ;;  %3064 = vmatpush1.bf16.msra.mxu1 %v3063_v30  ;;  %v1009_v29 = vld [vmem:[#allocation6 + $0x7e8] sm:$0xff]  ;;  %v1007_v30 = vld [vmem:[#allocation6 + $0x7d8] sm:$0xff] }
 0x1fa   :  { %2810 = vmatprep.subr.bf16.mxu0 %v2809_v33  ;;  %3066 = vmatprep.subr.bf16.mxu1 %v3065_v34  ;;  %v435_v33 = vrot.slane %v3899_v17, %v434_v19  ;;  %v2827_v34 = vpack.c.bf16 %v1000_v23, %v996_v22  ;;  %v2829_v39 = vpack.c.bf16 %v1009_v29, %v1005_v28  ;;  %v1039_v28 = vld [vmem:[#allocation6 + $0x8d8] sm:$0xff] }
 0x1fb   :  { %v3085_v40 = vpack.c.bf16 %v1011_v31, %v1007_v30  ;;  %v3097_v23 = vpack.c.bf16 %v1035_v13, %v1031_v11  ;;  %v1043_v29 = vld [vmem:[#allocation6 + $0x8f8] sm:$0xff]  ;;  %v1062_v13 = vld [vmem:[#allocation6 + $0x990] sm:$0xff] }
 0x1fc   :  { %v602_v50 = vadd.f32 %v3912_v36, %v435_v33  ;;  %v1040_v33 = vld [vmem:[#allocation6 + $0x8e0] sm:$0xff] }
 0x1fd   :  { %2812 = vmatpush1.bf16.msra.mxu0 %v2811_v43  ;;  %3068 = vmatpush1.bf16.msra.mxu1 %v3067_v44  ;;  %v1010_v43 = vld [vmem:[#allocation6 + $0x7f0] sm:$0xff]  ;;  %v1013_v44 = vld [vmem:[#allocation6 + $0x808] sm:$0xff] }
 0x1fe   :  { %2814 = vmatprep.subr.bf16.mxu0 %v2813_v47  ;;  %3070 = vmatprep.subr.bf16.mxu1 %v3069_v48  ;;  %v1019_v47 = vld [vmem:[#allocation6 + $0x838] sm:$0xff]  ;;  %v447_v48 = vrot.slane %v3899_v17, %v446_v32  ;;  %v3087_v52 = vpack.c.bf16 %v1010_v43, %v1006_v41  ;;  %v750_v0 = vmax.f32 %v602_v50, 0.0  ;;  %v1036_v32 = vld [vmem:[#allocation6 + $0x8c0] sm:$0xff] }
 0x1ff   :  { %v1023_v17 = vld [vmem:[#allocation6 + $0x858] sm:$0xff] }
 0x200   :  { %v3093_v6 = vpack.c.bf16 %v1027_v63, %v1023_v17  ;;  %v1047_v41 = vld [vmem:[#allocation6 + $0x918] sm:$0xff]  ;;  %v1054_v63 = vld [vmem:[#allocation6 + $0x950] sm:$0xff] }
 0x201   :  { %2816 = vmatpush1.bf16.msra.mxu0 %v2815_v56  ;;  %3072 = vmatpush1.bf16.msra.mxu1 %v3071_v57  ;;  %v2833_v56 = vpack.c.bf16 %v1017_v45, %v1013_v44  ;;  %v3089_v57 = vpack.c.bf16 %v1019_v47, %v1015_v46  ;;  %v1051_v43 = vld [vmem:[#allocation6 + $0x938] sm:$0xff]  ;;  %v2847_v44 = vpack.c.bf16 %v1040_v33, %v1036_v32  ;;  %v1044_v46 = vld [vmem:[#allocation6 + $0x900] sm:$0xff] }
 0x202   :  { %2818 = vmatprep.subr.bf16.mxu0 %v2817_v60  ;;  %3074 = vmatprep.subr.bf16.mxu1 %v3073_v61  ;;  %v1021_v60 = vld [vmem:[#allocation6 + $0x848] sm:$0xff]  ;;  %v3103_v45 = vpack.c.bf16 %v1042_v38, %v1038_v37  ;;  %v1048_v47 = vld [vmem:[#allocation6 + $0x920] sm:$0xff]  ;;  %v3105_v50 = vpack.c.bf16 %v1051_v43, %v1047_v41  ;;  %v1079_v32 = vld [vmem:[#allocation6 + $0xa18] sm:$0xff] }
 0x203   :  { %v2851_v58 = vpack.c.bf16 %v1048_v47, %v1044_v46  ;;  %v1083_v33 = vld [vmem:[#allocation6 + $0xa38] sm:$0xff]  ;;  %v1076_v37 = vld [vmem:[#allocation6 + $0xa00] sm:$0xff]  ;;  %v1078_v41 = vld [vmem:[#allocation6 + $0xa10] sm:$0xff] }
 0x204   :  { %v1080_v38 = vld [vmem:[#allocation6 + $0xa20] sm:$0xff]  ;;  %v1082_v43 = vld [vmem:[#allocation6 + $0xa30] sm:$0xff]  ;;  %v1087_v46 = vld [vmem:[#allocation6 + $0xa58] sm:$0xff] }
 0x205   :  { %2820 = vmatpush1.bf16.msra.mxu0 %v2819_v4  ;;  %3076 = vmatpush1.bf16.msra.mxu1 %v3075_v5  ;;  %v1024_v4 = vld [vmem:[#allocation6 + $0x860] sm:$0xff]  ;;  %v2837_v5 = vpack.c.bf16 %v1025_v62, %v1021_v60  ;;  %v2853_v62 = vpack.c.bf16 %v1057_v54, %v1053_v53  ;;  %v1091_v47 = vld [vmem:[#allocation6 + $0xa78] sm:$0xff] }
 0x206   :  { %2822 = vmatprep.subr.bf16.mxu0 %v2821_v8  ;;  %3078 = vmatprep.subr.bf16.mxu1 %v3077_v9  ;;  %v1026_v8 = vld [vmem:[#allocation6 + $0x870] sm:$0xff]  ;;  %v1029_v9 = vld [vmem:[#allocation6 + $0x888] sm:$0xff]  ;;  %v2839_v15 = vpack.c.bf16 %v1024_v4, %v1020_v3  ;;  %v1052_v60 = vld [vmem:[#allocation6 + $0x940] sm:$0xff]  ;;  %v3125_v54 = vpack.c.bf16 %v1091_v47, %v1087_v46 }
 0x207   :  { %v3095_v42 = vpack.c.bf16 %v1026_v8, %v1022_v7  ;;  %v2841_v22 = vpack.c.bf16 %v1033_v10, %v1029_v9  ;;  %v1067_v3 = vld [vmem:[#allocation6 + $0x9b8] sm:$0xff]  ;;  %v1060_v8 = vld [vmem:[#allocation6 + $0x980] sm:$0xff]  ;;  %v1118_v46 = vld [vmem:[#allocation6 + $0xb50] sm:$0xff] }
 0x208   :  { %v1064_v9 = vld [vmem:[#allocation6 + $0x9a0] sm:$0xff]  ;;  %v1122_v47 = vld [vmem:[#allocation6 + $0xb70] sm:$0xff] }
 0x209   :  { %2824 = vmatpush1.bf16.msra.mxu0 %v2823_v20  ;;  %3080 = vmatpush1.bf16.msra.mxu1 %v3079_v21  ;;  %v1028_v20 = vld [vmem:[#allocation6 + $0x880] sm:$0xff] }
 0x20a   :  { %2826 = vmatprep.subr.bf16.mxu0 %v2825_v24  ;;  %3082 = vmatprep.subr.bf16.mxu1 %v3081_v25  ;;  %v1032_v21 = vld [vmem:[#allocation6 + $0x8a0] sm:$0xff]  ;;  %v1030_v24 = vld [vmem:[#allocation6 + $0x890] sm:$0xff] }
 0x20b   :  { %v1034_v25 = vld [vmem:[#allocation6 + $0x8b0] sm:$0xff]  ;;  %v2843_v30 = vpack.c.bf16 %v1032_v21, %v1028_v20  ;;  %v1071_v20 = vld [vmem:[#allocation6 + $0x9d8] sm:$0xff] }
 0x20c   :  { %v3099_v31 = vpack.c.bf16 %v1034_v25, %v1030_v24  ;;  %v1075_v21 = vld [vmem:[#allocation6 + $0x9f8] sm:$0xff]  ;;  %v1068_v24 = vld [vmem:[#allocation6 + $0x9c0] sm:$0xff] }
 0x20d   :  { %2828 = vmatpush1.bf16.msra.mxu0 %v2827_v34  ;;  %3084 = vmatpush1.bf16.msra.mxu1 %v3083_v35  ;;  %v3921_v55 = vpop.f32.mrb[2].mxu0  ;;  %v2845_v34 = vpack.c.bf16 %v1041_v27, %v1037_v26  ;;  %v3101_v35 = vpack.c.bf16 %v1043_v29, %v1039_v28  ;;  %v1072_v25 = vld [vmem:[#allocation6 + $0x9e0] sm:$0xff]  ;;  %v3117_v27 = vpack.c.bf16 %v1075_v21, %v1071_v20  ;;  %v1070_v28 = vld [vmem:[#allocation6 + $0x9d0] sm:$0xff] }
 0x20e   :  { %2830 = vmatprep.subr.bf16.mxu0 %v2829_v39  ;;  %3086 = vmatprep.subr.bf16.mxu1 %v3085_v40  ;;  %v674_v61 = vpop.f32.mrb[3].mxu0  ;;  %v1045_v39 = vld [vmem:[#allocation6 + $0x908] sm:$0xff]  ;;  %v1074_v29 = vld [vmem:[#allocation6 + $0x9f0] sm:$0xff] }
 0x20f   :  { %v675_v36 = vadd.f32 %v674_v61, %v447_v48  ;;  %v1049_v40 = vld [vmem:[#allocation6 + $0x928] sm:$0xff]  ;;  %v1056_v61 = vld [vmem:[#allocation6 + $0x960] sm:$0xff]  ;;  %v1102_v20 = vld [vmem:[#allocation6 + $0xad0] sm:$0xff] }
 0x210   :  { %v2849_v48 = vpack.c.bf16 %v1049_v40, %v1045_v39  ;;  %v3923_v4 = vpop.f32.mrb[2].mxu1  ;;  %v3121_v40 = vpack.c.bf16 %v1083_v33, %v1079_v32  ;;  %v1106_v21 = vld [vmem:[#allocation6 + $0xaf0] sm:$0xff] }
 0x211   :  { %2832 = vmatpush1.bf16.msra.mxu0 %v2831_v51  ;;  %3088 = vmatpush1.bf16.msra.mxu1 %v3087_v52  ;;  %v753_v14 = vmax.f32 %v675_v36, 0.0  ;;  %v1046_v51 = vld [vmem:[#allocation6 + $0x910] sm:$0xff] }
 0x212   :  { %2834 = vmatprep.subr.bf16.mxu0 %v2833_v56  ;;  %3090 = vmatprep.subr.bf16.mxu1 %v3089_v57  ;;  %v1050_v52 = vld [vmem:[#allocation6 + $0x930] sm:$0xff]  ;;  %v1055_v56 = vld [vmem:[#allocation6 + $0x958] sm:$0xff] }
 0x213   :  { %v1059_v57 = vld [vmem:[#allocation6 + $0x978] sm:$0xff]  ;;  %v3107_v59 = vpack.c.bf16 %v1050_v52, %v1046_v51  ;;  %v1058_v36 = vld [vmem:[#allocation6 + $0x970] sm:$0xff]  ;;  %v1084_v51 = vld [vmem:[#allocation6 + $0xa40] sm:$0xff] }
 0x214   :  { %1426 = vmatmul.mubr.f32.vlgmr.msra.gmra.mrb[4].mxu0 %v750_v0  ;;  %1710 = vmatmul.mubr.f32.vlgmr.msra.gmra.mrb[4].mxu1 %v750_v0  ;;  %v3109_v17 = vpack.c.bf16 %v1059_v57, %v1055_v56  ;;  %v1061_v0 = vld [vmem:[#allocation6 + $0x988] sm:$0xff]  ;;  %v3111_v7 = vpack.c.bf16 %v1058_v36, %v1054_v63  ;;  %v1088_v52 = vld [vmem:[#allocation6 + $0xa60] sm:$0xff]  ;;  %v1086_v56 = vld [vmem:[#allocation6 + $0xa50] sm:$0xff] }
 0x215   :  { %2836 = vmatpush1.bf16.msra.mxu0 %v2835_v1  ;;  %3092 = vmatpush1.bf16.msra.mxu1 %v3091_v2  ;;  %v1065_v1 = vld [vmem:[#allocation6 + $0x9a8] sm:$0xff]  ;;  %v1063_v2 = vld [vmem:[#allocation6 + $0x998] sm:$0xff]  ;;  %v1090_v57 = vld [vmem:[#allocation6 + $0xa70] sm:$0xff] }
 0x216   :  { %2838 = vmatprep.subr.bf16.mxu0 %v2837_v5  ;;  %3094 = vmatprep.subr.bf16.mxu1 %v3093_v6  ;;  %v3925_v5 = vpop.f32.mrb[3].mxu1  ;;  %v2855_v6 = vpack.c.bf16 %v1056_v61, %v1052_v60  ;;  %v2857_v10 = vpack.c.bf16 %v1065_v1, %v1061_v0  ;;  %v3113_v11 = vpack.c.bf16 %v1067_v3, %v1063_v2  ;;  %v1095_v60 = vld [vmem:[#allocation6 + $0xa98] sm:$0xff]  ;;  %v1092_v63 = vld [vmem:[#allocation6 + $0xa80] sm:$0xff]  ;;  %v1094_v2 = vld [vmem:[#allocation6 + $0xa90] sm:$0xff] }
 0x217   :  { %1496 = vmatprep.mubr.f32.mxu0 %v753_v14  ;;  %1780 = vmatprep.mubr.f32.mxu1 %v753_v14  ;;  %v1066_v14 = vld [vmem:[#allocation6 + $0x9b0] sm:$0xff]  ;;  %v1099_v61 = vld [vmem:[#allocation6 + $0xab8] sm:$0xff]  ;;  %v1096_v36 = vld [vmem:[#allocation6 + $0xaa0] sm:$0xff] }
 0x218   :  { %v3129_v1 = vpack.c.bf16 %v1099_v61, %v1095_v60  ;;  %v1098_v3 = vld [vmem:[#allocation6 + $0xab0] sm:$0xff] }
 0x219   :  { %2840 = vmatpush1.bf16.msra.mxu0 %v2839_v15  ;;  %3096 = vmatpush1.bf16.msra.mxu1 %v3095_v42  ;;  %v1069_v15 = vld [vmem:[#allocation6 + $0x9c8] sm:$0xff]  ;;  %v1110_v32 = vld [vmem:[#allocation6 + $0xb10] sm:$0xff] }
 0x21a   :  { %2842 = vmatprep.subr.bf16.mxu0 %v2841_v22  ;;  %3098 = vmatprep.subr.bf16.mxu1 %v3097_v23  ;;  %v1073_v42 = vld [vmem:[#allocation6 + $0x9e8] sm:$0xff]  ;;  %v2859_v22 = vpack.c.bf16 %v1064_v9, %v1060_v8  ;;  %v3115_v23 = vpack.c.bf16 %v1066_v14, %v1062_v13  ;;  %v1103_v8 = vld [vmem:[#allocation6 + $0xad8] sm:$0xff]  ;;  %v1100_v13 = vld [vmem:[#allocation6 + $0xac0] sm:$0xff] }
 0x21b   :  { %v2861_v26 = vpack.c.bf16 %v1073_v42, %v1069_v15  ;;  %v1107_v9 = vld [vmem:[#allocation6 + $0xaf8] sm:$0xff]  ;;  %v1104_v14 = vld [vmem:[#allocation6 + $0xae0] sm:$0xff]  ;;  %v1114_v33 = vld [vmem:[#allocation6 + $0xb30] sm:$0xff] }
 0x21c   :  { %v3133_v42 = vpack.c.bf16 %v1107_v9, %v1103_v8  ;;  %v1126_v61 = vld [vmem:[#allocation6 + $0xb90] sm:$0xff]  ;;  %v1132_v8 = vld [vmem:[#allocation6 + $0xbc0] sm:$0xff] }
 0x21d   :  { %2844 = vmatpush1.bf16.msra.mxu0 %v2843_v30  ;;  %3100 = vmatpush1.bf16.msra.mxu1 %v3099_v31  ;;  %v1077_v30 = vld [vmem:[#allocation6 + $0xa08] sm:$0xff]  ;;  %v1136_v9 = vld [vmem:[#allocation6 + $0xbe0] sm:$0xff] }
 0x21e   :  { %2846 = vmatprep.subr.bf16.mxu0 %v2845_v34  ;;  %3102 = vmatprep.subr.bf16.mxu1 %v3101_v35  ;;  %v1081_v31 = vld [vmem:[#allocation6 + $0xa28] sm:$0xff]  ;;  %v2863_v34 = vpack.c.bf16 %v1072_v25, %v1068_v24  ;;  %v3119_v35 = vpack.c.bf16 %v1074_v29, %v1070_v28  ;;  %v1111_v24 = vld [vmem:[#allocation6 + $0xb18] sm:$0xff]  ;;  %v1108_v28 = vld [vmem:[#allocation6 + $0xb00] sm:$0xff] }
 0x21f   :  { %v2865_v39 = vpack.c.bf16 %v1081_v31, %v1077_v30  ;;  %v1115_v25 = vld [vmem:[#allocation6 + $0xb38] sm:$0xff]  ;;  %v1112_v29 = vld [vmem:[#allocation6 + $0xb20] sm:$0xff] }
 0x220   :  { %v3137_v31 = vpack.c.bf16 %v1115_v25, %v1111_v24  ;;  %v2895_v24 = vpack.c.bf16 %v1136_v9, %v1132_v8  ;;  %v1166_v8 = vld [vmem:[#allocation6 + $0xcd0] sm:$0xff] }
 0x221   :  { %2848 = vmatpush1.bf16.msra.mxu0 %v2847_v44  ;;  %3104 = vmatpush1.bf16.msra.mxu1 %v3103_v45  ;;  %v1085_v44 = vld [vmem:[#allocation6 + $0xa48] sm:$0xff]  ;;  %v1170_v9 = vld [vmem:[#allocation6 + $0xcf0] sm:$0xff] }
 0x222   :  { %2850 = vmatprep.subr.bf16.mxu0 %v2849_v48  ;;  %3106 = vmatprep.subr.bf16.mxu1 %v3105_v50  ;;  %v1089_v45 = vld [vmem:[#allocation6 + $0xa68] sm:$0xff]  ;;  %v2867_v48 = vpack.c.bf16 %v1080_v38, %v1076_v37  ;;  %v3123_v50 = vpack.c.bf16 %v1082_v43, %v1078_v41  ;;  %v1119_v37 = vld [vmem:[#allocation6 + $0xb58] sm:$0xff]  ;;  %v1116_v41 = vld [vmem:[#allocation6 + $0xb40] sm:$0xff] }
 0x223   :  { %v2869_v53 = vpack.c.bf16 %v1089_v45, %v1085_v44  ;;  %v1123_v38 = vld [vmem:[#allocation6 + $0xb78] sm:$0xff]  ;;  %v1120_v43 = vld [vmem:[#allocation6 + $0xb60] sm:$0xff] }
 0x224   :  { %v3141_v45 = vpack.c.bf16 %v1123_v38, %v1119_v37 }
 0x225   :  { %2852 = vmatpush1.bf16.msra.mxu0 %v2851_v58  ;;  %3108 = vmatpush1.bf16.msra.mxu1 %v3107_v59  ;;  %v1093_v58 = vld [vmem:[#allocation6 + $0xa88] sm:$0xff] }
 0x226   :  { %2854 = vmatprep.subr.bf16.mxu0 %v2853_v62  ;;  %3110 = vmatprep.subr.bf16.mxu1 %v3109_v17  ;;  %v1097_v59 = vld [vmem:[#allocation6 + $0xaa8] sm:$0xff]  ;;  %v2871_v62 = vpack.c.bf16 %v1088_v52, %v1084_v51  ;;  %v3127_v17 = vpack.c.bf16 %v1090_v57, %v1086_v56  ;;  %v1127_v51 = vld [vmem:[#allocation6 + $0xb98] sm:$0xff]  ;;  %v3143_v56 = vpack.c.bf16 %v1122_v47, %v1118_v46  ;;  %v1124_v57 = vld [vmem:[#allocation6 + $0xb80] sm:$0xff] }
 0x227   :  { %v2873_v0 = vpack.c.bf16 %v1097_v59, %v1093_v58  ;;  %v1131_v52 = vld [vmem:[#allocation6 + $0xbb8] sm:$0xff]  ;;  %v1128_v58 = vld [vmem:[#allocation6 + $0xba0] sm:$0xff]  ;;  %v1154_v46 = vld [vmem:[#allocation6 + $0xc70] sm:$0xff] }
 0x228   :  { %v3145_v60 = vpack.c.bf16 %v1131_v52, %v1127_v51  ;;  %v1157_v47 = vld [vmem:[#allocation6 + $0xc88] sm:$0xff]  ;;  %v1163_v51 = vld [vmem:[#allocation6 + $0xcb8] sm:$0xff] }
 0x229   :  { %2856 = vmatpush1.bf16.msra.mxu0 %v2855_v6  ;;  %3112 = vmatpush1.bf16.msra.mxu1 %v3111_v7  ;;  %v1101_v6 = vld [vmem:[#allocation6 + $0xac8] sm:$0xff] }
 0x22a   :  { %2858 = vmatprep.subr.bf16.mxu0 %v2857_v10  ;;  %3114 = vmatprep.subr.bf16.mxu1 %v3113_v11  ;;  %v1105_v7 = vld [vmem:[#allocation6 + $0xae8] sm:$0xff]  ;;  %v2875_v10 = vpack.c.bf16 %v1096_v36, %v1092_v63  ;;  %v3131_v11 = vpack.c.bf16 %v1098_v3, %v1094_v2  ;;  %v1135_v36 = vld [vmem:[#allocation6 + $0xbd8] sm:$0xff] }
 0x22b   :  { %v2877_v15 = vpack.c.bf16 %v1105_v7, %v1101_v6  ;;  %v1137_v63 = vld [vmem:[#allocation6 + $0xbe8] sm:$0xff]  ;;  %v3929_v2 = vld [vmem:[#allocation4] sm:$0xff]  ;;  %v2891_v6 = vpack.c.bf16 %v1128_v58, %v1124_v57 }
 0x22d   :  { %2860 = vmatpush1.bf16.msra.mxu0 %v2859_v22  ;;  %3116 = vmatpush1.bf16.msra.mxu1 %v3115_v23  ;;  %v1109_v22 = vld [vmem:[#allocation6 + $0xb08] sm:$0xff] }
 0x22e   :  { %2862 = vmatprep.subr.bf16.mxu0 %v2861_v26  ;;  %3118 = vmatprep.subr.bf16.mxu1 %v3117_v27  ;;  %v1113_v23 = vld [vmem:[#allocation6 + $0xb28] sm:$0xff]  ;;  %v2879_v26 = vpack.c.bf16 %v1104_v14, %v1100_v13  ;;  %v3135_v27 = vpack.c.bf16 %v1106_v21, %v1102_v20  ;;  %v1134_v13 = vld [vmem:[#allocation6 + $0xbd0] sm:$0xff]  ;;  %v1143_v20 = vld [vmem:[#allocation6 + $0xc18] sm:$0xff] }
 0x22f   :  { %v2881_v30 = vpack.c.bf16 %v1113_v23, %v1109_v22  ;;  %v1138_v14 = vld [vmem:[#allocation6 + $0xbf0] sm:$0xff]  ;;  %v1147_v21 = vld [vmem:[#allocation6 + $0xc38] sm:$0xff] }
 0x230   :  { %v3151_v25 = vpack.c.bf16 %v1138_v14, %v1134_v13  ;;  %v1175_v13 = vld [vmem:[#allocation6 + $0xd18] sm:$0xff] }
 0x231   :  { %2864 = vmatpush1.bf16.msra.mxu0 %v2863_v34  ;;  %3120 = vmatpush1.bf16.msra.mxu1 %v3119_v35  ;;  %v1117_v34 = vld [vmem:[#allocation6 + $0xb48] sm:$0xff]  ;;  %v1179_v14 = vld [vmem:[#allocation6 + $0xd38] sm:$0xff] }
 0x232   :  { %2866 = vmatprep.subr.bf16.mxu0 %v2865_v39  ;;  %3122 = vmatprep.subr.bf16.mxu1 %v3121_v40  ;;  %v1121_v35 = vld [vmem:[#allocation6 + $0xb68] sm:$0xff]  ;;  %v2883_v39 = vpack.c.bf16 %v1112_v29, %v1108_v28  ;;  %v3139_v40 = vpack.c.bf16 %v1114_v33, %v1110_v32  ;;  %v3153_v29 = vpack.c.bf16 %v1147_v21, %v1143_v20  ;;  %v1172_v20 = vld [vmem:[#allocation6 + $0xd00] sm:$0xff] }
 0x233   :  { %v2885_v44 = vpack.c.bf16 %v1121_v35, %v1117_v34  ;;  %v1149_v32 = vld [vmem:[#allocation6 + $0xc48] sm:$0xff]  ;;  %v1151_v34 = vld [vmem:[#allocation6 + $0xc58] sm:$0xff]  ;;  %v1176_v21 = vld [vmem:[#allocation6 + $0xd20] sm:$0xff] }
 0x234   :  { %v1153_v33 = vld [vmem:[#allocation6 + $0xc68] sm:$0xff]  ;;  %v1155_v35 = vld [vmem:[#allocation6 + $0xc78] sm:$0xff] }
 0x235   :  { %2868 = vmatpush1.bf16.msra.mxu0 %v2867_v48  ;;  %3124 = vmatpush1.bf16.msra.mxu1 %v3123_v50  ;;  %v1125_v48 = vld [vmem:[#allocation6 + $0xb88] sm:$0xff] }
 0x236   :  { %2870 = vmatprep.subr.bf16.mxu0 %v2869_v53  ;;  %3126 = vmatprep.subr.bf16.mxu1 %v3125_v54  ;;  %v1129_v50 = vld [vmem:[#allocation6 + $0xba8] sm:$0xff]  ;;  %v442_v53 = vsub.s32 4, %v3894_v49  ;;  %v2887_v54 = vpack.c.bf16 %v1120_v43, %v1116_v41  ;;  %v1152_v41 = vld [vmem:[#allocation6 + $0xc60] sm:$0xff]  ;;  %v2901_v43 = vpack.c.bf16 %v1153_v33, %v1149_v32 }
 0x237   :  { %v2889_v59 = vpack.c.bf16 %v1129_v50, %v1125_v48  ;;  %v1161_v48 = vld [vmem:[#allocation6 + $0xca8] sm:$0xff]  ;;  %v1159_v50 = vld [vmem:[#allocation6 + $0xc98] sm:$0xff]  ;;  %v1180_v32 = vld [vmem:[#allocation6 + $0xd40] sm:$0xff] }
 0x238   :  { %v443_v3 = vrot.slane %v3929_v2, %v442_v53  ;;  %v2905_v57 = vpack.c.bf16 %v1161_v48, %v1157_v47  ;;  %v3161_v58 = vpack.c.bf16 %v1163_v51, %v1159_v50  ;;  %v1184_v33 = vld [vmem:[#allocation6 + $0xd60] sm:$0xff]  ;;  %v1190_v50 = vld [vmem:[#allocation6 + $0xd90] sm:$0xff] }
 0x239   :  { %2872 = vmatpush1.bf16.msra.mxu0 %v2871_v62  ;;  %3128 = vmatpush1.bf16.msra.mxu1 %v3127_v17  ;;  %v1130_v62 = vld [vmem:[#allocation6 + $0xbb0] sm:$0xff]  ;;  %v1133_v17 = vld [vmem:[#allocation6 + $0xbc8] sm:$0xff] }
 0x23a   :  { %2874 = vmatprep.subr.bf16.mxu0 %v2873_v0  ;;  %3130 = vmatprep.subr.bf16.mxu1 %v3129_v1  ;;  %v1139_v0 = vld [vmem:[#allocation6 + $0xbf8] sm:$0xff]  ;;  %v454_v1 = vsub.s32 7, %v3894_v49  ;;  %v3147_v7 = vpack.c.bf16 %v1130_v62, %v1126_v61  ;;  %v673_v23 = vadd.f32 %v3921_v55, %v443_v3  ;;  %v1165_v61 = vld [vmem:[#allocation6 + $0xcc8] sm:$0xff]  ;;  %v1168_v3 = vld [vmem:[#allocation6 + $0xce0] sm:$0xff] }
 0x23b   :  { %v1169_v62 = vld [vmem:[#allocation6 + $0xce8] sm:$0xff]  ;;  %v1194_v51 = vld [vmem:[#allocation6 + $0xdb0] sm:$0xff] }
 0x23c   :  { %v455_v22 = vrot.slane %v3929_v2, %v454_v1  ;;  %v752_v38 = vmax.f32 %v673_v23, 0.0  ;;  %v1164_v1 = vld [vmem:[#allocation6 + $0xcc0] sm:$0xff]  ;;  %v3169_v23 = vpack.c.bf16 %v1179_v14, %v1175_v13  ;;  %v1210_v13 = vld [vmem:[#allocation6 + $0xe30] sm:$0xff]  ;;  %v1213_v14 = vld [vmem:[#allocation6 + $0xe48] sm:$0xff] }
 0x23d   :  { %2876 = vmatpush1.bf16.msra.mxu0 %v2875_v10  ;;  %3132 = vmatpush1.bf16.msra.mxu1 %v3131_v11  ;;  %v2893_v10 = vpack.c.bf16 %v1137_v63, %v1133_v17  ;;  %v3149_v11 = vpack.c.bf16 %v1139_v0, %v1135_v36  ;;  %v1167_v17 = vld [vmem:[#allocation6 + $0xcd8] sm:$0xff] }
 0x23e   :  { %2878 = vmatprep.subr.bf16.mxu0 %v2877_v15  ;;  %3134 = vmatprep.subr.bf16.mxu1 %v3133_v42  ;;  %v1141_v15 = vld [vmem:[#allocation6 + $0xc08] sm:$0xff]  ;;  %v746_v37 = vadd.f32 %v3925_v5, %v455_v22  ;;  %v1171_v63 = vld [vmem:[#allocation6 + $0xcf8] sm:$0xff] }
 0x23f   :  { %v1145_v42 = vld [vmem:[#allocation6 + $0xc28] sm:$0xff] }
 0x240   :  { %v2897_v28 = vpack.c.bf16 %v1145_v42, %v1141_v15  ;;  %v755_v52 = vmax.f32 %v746_v37, 0.0  ;;  %v2911_v15 = vpack.c.bf16 %v1168_v3, %v1164_v1  ;;  %v3167_v42 = vpack.c.bf16 %v1170_v9, %v1166_v8  ;;  %v1182_v37 = vld [vmem:[#allocation6 + $0xd50] sm:$0xff]  ;;  %v1211_v1 = vld [vmem:[#allocation6 + $0xe38] sm:$0xff]  ;;  %v1208_v8 = vld [vmem:[#allocation6 + $0xe20] sm:$0xff] }
 0x241   :  { %2880 = vmatpush1.bf16.msra.mxu0 %v2879_v26  ;;  %3136 = vmatpush1.bf16.msra.mxu1 %v3135_v27  ;;  %v1140_v26 = vld [vmem:[#allocation6 + $0xc00] sm:$0xff] }
 0x242   :  { %2882 = vmatprep.subr.bf16.mxu0 %v2881_v30  ;;  %3138 = vmatprep.subr.bf16.mxu1 %v3137_v31  ;;  %v1144_v27 = vld [vmem:[#allocation6 + $0xc20] sm:$0xff]  ;;  %v1142_v30 = vld [vmem:[#allocation6 + $0xc10] sm:$0xff] }
 0x243   :  { %v1146_v31 = vld [vmem:[#allocation6 + $0xc30] sm:$0xff]  ;;  %v2899_v55 = vpack.c.bf16 %v1144_v27, %v1140_v26  ;;  %v1181_v26 = vld [vmem:[#allocation6 + $0xd48] sm:$0xff] }
 0x244   :  { %v1185_v27 = vld [vmem:[#allocation6 + $0xd68] sm:$0xff] }
 0x245   :  { %2884 = vmatpush1.bf16.msra.mxu0 %v2883_v39  ;;  %3140 = vmatpush1.bf16.msra.mxu1 %v3139_v40  ;;  %v3155_v39 = vpack.c.bf16 %v1146_v31, %v1142_v30  ;;  %v1148_v40 = vld [vmem:[#allocation6 + $0xc40] sm:$0xff]  ;;  %v2915_v30 = vpack.c.bf16 %v1176_v21, %v1172_v20  ;;  %v1219_v20 = vld [vmem:[#allocation6 + $0xe78] sm:$0xff] }
 0x246   :  { %2886 = vmatprep.subr.bf16.mxu0 %v2885_v44  ;;  %3142 = vmatprep.subr.bf16.mxu1 %v3141_v45  ;;  %v3157_v44 = vpack.c.bf16 %v1155_v35, %v1151_v34  ;;  %v1150_v45 = vld [vmem:[#allocation6 + $0xc50] sm:$0xff]  ;;  %v2903_v5 = vpack.c.bf16 %v1152_v41, %v1148_v40  ;;  %v2917_v34 = vpack.c.bf16 %v1185_v27, %v1181_v26  ;;  %v1191_v40 = vld [vmem:[#allocation6 + $0xd98] sm:$0xff] }
 0x247   :  { %v3159_v53 = vpack.c.bf16 %v1154_v46, %v1150_v45  ;;  %v1195_v41 = vld [vmem:[#allocation6 + $0xdb8] sm:$0xff]  ;;  %v1188_v45 = vld [vmem:[#allocation6 + $0xd80] sm:$0xff]  ;;  %v1214_v27 = vld [vmem:[#allocation6 + $0xe50] sm:$0xff] }
 0x248   :  { %v1192_v46 = vld [vmem:[#allocation6 + $0xda0] sm:$0xff]  ;;  %v3177_v48 = vpack.c.bf16 %v1195_v41, %v1191_v40  ;;  %v1226_v40 = vld [vmem:[#allocation6 + $0xeb0] sm:$0xff]  ;;  %v1229_v41 = vld [vmem:[#allocation6 + $0xec8] sm:$0xff] }
 0x249   :  { %2888 = vmatpush1.bf16.msra.mxu0 %v2887_v54  ;;  %3144 = vmatpush1.bf16.msra.mxu1 %v3143_v56  ;;  %v1156_v54 = vld [vmem:[#allocation6 + $0xc80] sm:$0xff] }
 0x24a   :  { %2890 = vmatprep.subr.bf16.mxu0 %v2889_v59  ;;  %3146 = vmatprep.subr.bf16.mxu1 %v3145_v60  ;;  %v1160_v56 = vld [vmem:[#allocation6 + $0xca0] sm:$0xff]  ;;  %v1158_v59 = vld [vmem:[#allocation6 + $0xc90] sm:$0xff] }
 0x24b   :  { %v1162_v60 = vld [vmem:[#allocation6 + $0xcb0] sm:$0xff]  ;;  %v2907_v36 = vpack.c.bf16 %v1160_v56, %v1156_v54  ;;  %v1203_v54 = vld [vmem:[#allocation6 + $0xdf8] sm:$0xff]  ;;  %v2923_v56 = vpack.c.bf16 %v1192_v46, %v1188_v45 }
 0x24c   :  { %v3163_v0 = vpack.c.bf16 %v1162_v60, %v1158_v59  ;;  %v1200_v59 = vld [vmem:[#allocation6 + $0xde0] sm:$0xff]  ;;  %v1235_v45 = vld [vmem:[#allocation6 + $0xef8] sm:$0xff] }
 0x24d   :  { %2892 = vmatpush1.bf16.msra.mxu0 %v2891_v6  ;;  %3148 = vmatpush1.bf16.msra.mxu1 %v3147_v7  ;;  %v2909_v6 = vpack.c.bf16 %v1169_v62, %v1165_v61  ;;  %v3165_v7 = vpack.c.bf16 %v1171_v63, %v1167_v17  ;;  %v1198_v62 = vld [vmem:[#allocation6 + $0xdd0] sm:$0xff]  ;;  %v1205_v63 = vld [vmem:[#allocation6 + $0xe08] sm:$0xff] }
 0x24e   :  { %2894 = vmatprep.subr.bf16.mxu0 %v2893_v10  ;;  %3150 = vmatprep.subr.bf16.mxu1 %v3149_v11  ;;  %v1173_v10 = vld [vmem:[#allocation6 + $0xd08] sm:$0xff]  ;;  %v1202_v17 = vld [vmem:[#allocation6 + $0xdf0] sm:$0xff] }
 0x24f   :  { %v1177_v11 = vld [vmem:[#allocation6 + $0xd28] sm:$0xff] }
 0x250   :  { %v2913_v22 = vpack.c.bf16 %v1177_v11, %v1173_v10  ;;  %v1206_v11 = vld [vmem:[#allocation6 + $0xe10] sm:$0xff] }
 0x251   :  { %2896 = vmatpush1.bf16.msra.mxu0 %v2895_v24  ;;  %3152 = vmatpush1.bf16.msra.mxu1 %v3151_v25  ;;  %v1174_v24 = vld [vmem:[#allocation6 + $0xd10] sm:$0xff] }
 0x252   :  { %2898 = vmatprep.subr.bf16.mxu0 %v2897_v28  ;;  %3154 = vmatprep.subr.bf16.mxu1 %v3153_v29  ;;  %v1178_v25 = vld [vmem:[#allocation6 + $0xd30] sm:$0xff]  ;;  %v1183_v28 = vld [vmem:[#allocation6 + $0xd58] sm:$0xff] }
 0x253   :  { %v1187_v29 = vld [vmem:[#allocation6 + $0xd78] sm:$0xff]  ;;  %v3171_v31 = vpack.c.bf16 %v1178_v25, %v1174_v24  ;;  %v1216_v24 = vld [vmem:[#allocation6 + $0xe60] sm:$0xff] }
 0x254   :  { %1497 = vmatmul.mubr.f32.vlgmr.msra.gmra.mrb[4].mxu0 %v752_v38  ;;  %1781 = vmatmul.mubr.f32.vlgmr.msra.gmra.mrb[4].mxu1 %v752_v38  ;;  %v3173_v35 = vpack.c.bf16 %v1187_v29, %v1183_v28  ;;  %v1186_v38 = vld [vmem:[#allocation6 + $0xd70] sm:$0xff]  ;;  %v1221_v29 = vld [vmem:[#allocation6 + $0xe88] sm:$0xff] }
 0x255   :  { %2900 = vmatpush1.bf16.msra.mxu0 %v2899_v55  ;;  %3156 = vmatpush1.bf16.msra.mxu1 %v3155_v39  ;;  %v1189_v55 = vld [vmem:[#allocation6 + $0xd88] sm:$0xff]  ;;  %v1218_v28 = vld [vmem:[#allocation6 + $0xe70] sm:$0xff] }
 0x256   :  { %2902 = vmatprep.subr.bf16.mxu0 %v2901_v43  ;;  %3158 = vmatprep.subr.bf16.mxu1 %v3157_v44  ;;  %v1193_v39 = vld [vmem:[#allocation6 + $0xda8] sm:$0xff]  ;;  %v2919_v43 = vpack.c.bf16 %v1184_v33, %v1180_v32  ;;  %v3175_v44 = vpack.c.bf16 %v1186_v38, %v1182_v37  ;;  %v1227_v32 = vld [vmem:[#allocation6 + $0xeb8] sm:$0xff]  ;;  %v1224_v37 = vld [vmem:[#allocation6 + $0xea0] sm:$0xff] }
 0x257   :  { %1567 = vmatprep.mubr.f32.mxu0 %v755_v52  ;;  %1851 = vmatprep.mubr.f32.mxu1 %v755_v52  ;;  %v2921_v47 = vpack.c.bf16 %v1193_v39, %v1189_v55  ;;  %v1197_v52 = vld [vmem:[#allocation6 + $0xdc8] sm:$0xff]  ;;  %v1222_v39 = vld [vmem:[#allocation6 + $0xe90] sm:$0xff] }
 0x259   :  { %2904 = vmatpush1.bf16.msra.mxu0 %v2903_v5  ;;  %3160 = vmatpush1.bf16.msra.mxu1 %v3159_v53  ;;  %v1201_v5 = vld [vmem:[#allocation6 + $0xde8] sm:$0xff]  ;;  %v1199_v53 = vld [vmem:[#allocation6 + $0xdd8] sm:$0xff] }
 0x25a   :  { %2906 = vmatprep.subr.bf16.mxu0 %v2905_v57  ;;  %3162 = vmatprep.subr.bf16.mxu1 %v3161_v58  ;;  %v3179_v57 = vpack.c.bf16 %v1194_v51, %v1190_v50  ;;  %v1196_v58 = vld [vmem:[#allocation6 + $0xdc0] sm:$0xff]  ;;  %v2925_v60 = vpack.c.bf16 %v1201_v5, %v1197_v52  ;;  %v3181_v61 = vpack.c.bf16 %v1203_v54, %v1199_v53  ;;  %v1230_v5 = vld [vmem:[#allocation6 + $0xed0] sm:$0xff]  ;;  %v1237_v54 = vld [vmem:[#allocation6 + $0xf08] sm:$0xff] }
 0x25b   :  { %v2927_v3 = vpack.c.bf16 %v1200_v59, %v1196_v58  ;;  %v1232_v50 = vld [vmem:[#allocation6 + $0xee0] sm:$0xff]  ;;  %v1234_v53 = vld [vmem:[#allocation6 + $0xef0] sm:$0xff]  ;;  %v1243_v58 = vld [vmem:[#allocation6 + $0xf38] sm:$0xff] }
 0x25d   :  { %2908 = vmatpush1.bf16.msra.mxu0 %v2907_v36  ;;  %3164 = vmatpush1.bf16.msra.mxu1 %v3163_v0  ;;  %v1209_v36 = vld [vmem:[#allocation6 + $0xe28] sm:$0xff]  ;;  %v1207_v0 = vld [vmem:[#allocation6 + $0xe18] sm:$0xff] }
 0x25e   :  { %2910 = vmatprep.subr.bf16.mxu0 %v2909_v6  ;;  %3166 = vmatprep.subr.bf16.mxu1 %v3165_v7  ;;  %v3183_v6 = vpack.c.bf16 %v1202_v17, %v1198_v62  ;;  %v1204_v7 = vld [vmem:[#allocation6 + $0xe00] sm:$0xff]  ;;  %v2929_v9 = vpack.c.bf16 %v1209_v36, %v1205_v63  ;;  %v3185_v10 = vpack.c.bf16 %v1211_v1, %v1207_v0  ;;  %v1238_v36 = vld [vmem:[#allocation6 + $0xf10] sm:$0xff]  ;;  %v1245_v1 = vld [vmem:[#allocation6 + $0xf48] sm:$0xff] }
 0x25f   :  { %v2931_v21 = vpack.c.bf16 %v1208_v8, %v1204_v7  ;;  %v1240_v62 = vld [vmem:[#allocation6 + $0xf20] sm:$0xff]  ;;  %v1242_v0 = vld [vmem:[#allocation6 + $0xf30] sm:$0xff]  ;;  %v1251_v7 = vld [vmem:[#allocation6 + $0xf78] sm:$0xff] }
 0x261   :  { %2912 = vmatpush1.bf16.msra.mxu0 %v2911_v15  ;;  %3168 = vmatpush1.bf16.msra.mxu1 %v3167_v42  ;;  %v1217_v15 = vld [vmem:[#allocation6 + $0xe68] sm:$0xff]  ;;  %v1215_v42 = vld [vmem:[#allocation6 + $0xe58] sm:$0xff] }
 0x262   :  { %2914 = vmatprep.subr.bf16.mxu0 %v2913_v22  ;;  %3170 = vmatprep.subr.bf16.mxu1 %v3169_v23  ;;  %v3187_v22 = vpack.c.bf16 %v1210_v13, %v1206_v11  ;;  %v1212_v23 = vld [vmem:[#allocation6 + $0xe40] sm:$0xff]  ;;  %v2933_v25 = vpack.c.bf16 %v1217_v15, %v1213_v14  ;;  %v3189_v26 = vpack.c.bf16 %v1219_v20, %v1215_v42  ;;  %v1246_v15 = vld [vmem:[#allocation6 + $0xf50] sm:$0xff]  ;;  %v1253_v20 = vld [vmem:[#allocation6 + $0xf88] sm:$0xff] }
 0x263   :  { %v2935_v33 = vpack.c.bf16 %v1216_v24, %v1212_v23  ;;  %v1248_v11 = vld [vmem:[#allocation6 + $0xf60] sm:$0xff]  ;;  %v1250_v42 = vld [vmem:[#allocation6 + $0xf70] sm:$0xff]  ;;  %v1259_v23 = vld [vmem:[#allocation6 + $0xfb8] sm:$0xff] }
 0x265   :  { %2916 = vmatpush1.bf16.msra.mxu0 %v2915_v30  ;;  %3172 = vmatpush1.bf16.msra.mxu1 %v3171_v31  ;;  %v1225_v30 = vld [vmem:[#allocation6 + $0xea8] sm:$0xff]  ;;  %v1223_v31 = vld [vmem:[#allocation6 + $0xe98] sm:$0xff] }
 0x266   :  { %2918 = vmatprep.subr.bf16.mxu0 %v2917_v34  ;;  %3174 = vmatprep.subr.bf16.mxu1 %v3173_v35  ;;  %v3191_v34 = vpack.c.bf16 %v1218_v28, %v1214_v27  ;;  %v1220_v35 = vld [vmem:[#allocation6 + $0xe80] sm:$0xff]  ;;  %v2937_v38 = vpack.c.bf16 %v1225_v30, %v1221_v29  ;;  %v3193_v55 = vpack.c.bf16 %v1227_v32, %v1223_v31  ;;  %v450_v28 = vsub.s32 6, %v3894_v49  ;;  %v1254_v31 = vld [vmem:[#allocation6 + $0xf90] sm:$0xff] }
 0x267   :  { %v2939_v46 = vpack.c.bf16 %v1224_v37, %v1220_v35  ;;  %v1256_v27 = vld [vmem:[#allocation6 + $0xfa0] sm:$0xff]  ;;  %v1258_v32 = vld [vmem:[#allocation6 + $0xfb0] sm:$0xff]  ;;  %v1263_v35 = vld [vmem:[#allocation6 + $0xfd8] sm:$0xff] }
 0x268   :  { %v1267_v37 = vld [vmem:[#allocation6 + $0xff8] sm:$0xff] }
 0x269   :  { %2920 = vmatpush1.bf16.msra.mxu0 %v2919_v43  ;;  %3176 = vmatpush1.bf16.msra.mxu1 %v3175_v44  ;;  %v1233_v43 = vld [vmem:[#allocation6 + $0xee8] sm:$0xff]  ;;  %v1231_v44 = vld [vmem:[#allocation6 + $0xed8] sm:$0xff] }
 0x26a   :  { %2922 = vmatprep.subr.bf16.mxu0 %v2921_v47  ;;  %3178 = vmatprep.subr.bf16.mxu1 %v3177_v48  ;;  %v3195_v47 = vpack.c.bf16 %v1226_v40, %v1222_v39  ;;  %v1228_v48 = vld [vmem:[#allocation6 + $0xec0] sm:$0xff]  ;;  %v2941_v51 = vpack.c.bf16 %v1233_v43, %v1229_v41  ;;  %v3197_v52 = vpack.c.bf16 %v1235_v45, %v1231_v44  ;;  %v1262_v45 = vld [vmem:[#allocation6 + $0xfd0] sm:$0xff] }
 0x26b   :  { %v2943_v59 = vpack.c.bf16 %v1232_v50, %v1228_v48  ;;  %v1260_v39 = vld [vmem:[#allocation6 + $0xfc0] sm:$0xff]  ;;  %v451_v40 = vrot.slane %v3929_v2, %v450_v28  ;;  %v3213_v43 = vpack.c.bf16 %v1267_v37, %v1263_v35  ;;  %v1864_v2 = vld [vmem:[#allocation9 + $0x10] sm:$0xff] }
 0x26c   :  { %v1264_v44 = vld [vmem:[#allocation6 + $0xfe0] sm:$0xff] }
 0x26d   :  { %2924 = vmatpush1.bf16.msra.mxu0 %v2923_v56  ;;  %3180 = vmatpush1.bf16.msra.mxu1 %v3179_v57  ;;  %v1241_v56 = vld [vmem:[#allocation6 + $0xf28] sm:$0xff]  ;;  %v1239_v57 = vld [vmem:[#allocation6 + $0xf18] sm:$0xff]  ;;  %v2959_v50 = vpack.c.bf16 %v1264_v44, %v1260_v39 }
 0x26e   :  { %2926 = vmatprep.subr.bf16.mxu0 %v2925_v60  ;;  %3182 = vmatprep.subr.bf16.mxu1 %v3181_v61  ;;  %v3199_v60 = vpack.c.bf16 %v1234_v53, %v1230_v5  ;;  %v1236_v61 = vld [vmem:[#allocation6 + $0xf00] sm:$0xff]  ;;  %v2945_v17 = vpack.c.bf16 %v1241_v56, %v1237_v54  ;;  %v3201_v63 = vpack.c.bf16 %v1243_v58, %v1239_v57  ;;  %v1867_v54 = vld [vmem:[#allocation9 + $0x28] sm:$0xff]  ;;  %v1896_v44 = vld [vmem:[#allocation9 + $0x110] sm:$0xff] }
 0x26f   :  { %v2947_v8 = vpack.c.bf16 %v1240_v62, %v1236_v61  ;;  %v1865_v48 = vld [vmem:[#allocation9 + $0x18] sm:$0xff]  ;;  %v1862_v53 = vld [vmem:[#allocation9] sm:$0xff]  ;;  %v1868_v61 = vld [vmem:[#allocation9 + $0x30] sm:$0xff] }
 0x270   :  { %v1869_v56 = vld [vmem:[#allocation9 + $0x38] sm:$0xff]  ;;  %v3219_v57 = vpack.c.bf16 %v1864_v2, %v1862_v53  ;;  %v1871_v62 = vld [vmem:[#allocation9 + $0x48] sm:$0xff]  ;;  %v1890_v37 = vld [vmem:[#allocation9 + $0xe0] sm:$0xff] }
 0x271   :  { %2928 = vmatpush1.bf16.msra.mxu0 %v2927_v3  ;;  %3184 = vmatpush1.bf16.msra.mxu1 %v3183_v6  ;;  %v1249_v3 = vld [vmem:[#allocation6 + $0xf68] sm:$0xff]  ;;  %v1247_v6 = vld [vmem:[#allocation6 + $0xf58] sm:$0xff] }
 0x272   :  { %2930 = vmatprep.subr.bf16.mxu0 %v2929_v9  ;;  %3186 = vmatprep.subr.bf16.mxu1 %v3185_v10  ;;  %v3203_v9 = vpack.c.bf16 %v1242_v0, %v1238_v36  ;;  %v1244_v10 = vld [vmem:[#allocation6 + $0xf40] sm:$0xff]  ;;  %v2949_v13 = vpack.c.bf16 %v1249_v3, %v1245_v1  ;;  %v3205_v14 = vpack.c.bf16 %v1251_v7, %v1247_v6  ;;  %v1872_v0 = vld [vmem:[#allocation9 + $0x50] sm:$0xff]  ;;  %v1875_v1 = vld [vmem:[#allocation9 + $0x68] sm:$0xff] }
 0x273   :  { %v2951_v24 = vpack.c.bf16 %v1248_v11, %v1244_v10  ;;  %v1870_v36 = vld [vmem:[#allocation9 + $0x40] sm:$0xff]  ;;  %v1877_v3 = vld [vmem:[#allocation9 + $0x78] sm:$0xff]  ;;  %v1879_v10 = vld [vmem:[#allocation9 + $0x88] sm:$0xff] }
 0x274   :  { %v3227_v6 = vpack.c.bf16 %v1872_v0, %v1870_v36  ;;  %v3229_v7 = vpack.c.bf16 %v1877_v3, %v1875_v1  ;;  %v1881_v11 = vld [vmem:[#allocation9 + $0x98] sm:$0xff]  ;;  %v1910_v0 = vld [vmem:[#allocation9 + $0x180] sm:$0xff]  ;;  %v1912_v1 = vld [vmem:[#allocation9 + $0x190] sm:$0xff] }
 0x275   :  { %2932 = vmatpush1.bf16.msra.mxu0 %v2931_v21  ;;  %3188 = vmatpush1.bf16.msra.mxu1 %v3187_v22  ;;  %v1257_v21 = vld [vmem:[#allocation6 + $0xfa8] sm:$0xff]  ;;  %v1255_v22 = vld [vmem:[#allocation6 + $0xf98] sm:$0xff] }
 0x276   :  { %2934 = vmatprep.subr.bf16.mxu0 %v2933_v25  ;;  %3190 = vmatprep.subr.bf16.mxu1 %v3189_v26  ;;  %v3207_v25 = vpack.c.bf16 %v1250_v42, %v1246_v15  ;;  %v1252_v26 = vld [vmem:[#allocation6 + $0xf80] sm:$0xff]  ;;  %v2953_v29 = vpack.c.bf16 %v1257_v21, %v1253_v20  ;;  %v3209_v30 = vpack.c.bf16 %v1259_v23, %v1255_v22  ;;  %v1880_v42 = vld [vmem:[#allocation9 + $0x90] sm:$0xff]  ;;  %v1883_v20 = vld [vmem:[#allocation9 + $0xa8] sm:$0xff] }
 0x277   :  { %v1878_v15 = vld [vmem:[#allocation9 + $0x80] sm:$0xff]  ;;  %v1885_v21 = vld [vmem:[#allocation9 + $0xb8] sm:$0xff]  ;;  %v1915_v3 = vld [vmem:[#allocation9 + $0x1a8] sm:$0xff] }
 0x278   :  { %v3235_v22 = vpack.c.bf16 %v1880_v42, %v1878_v15  ;;  %v3237_v23 = vpack.c.bf16 %v1885_v21, %v1883_v20  ;;  %v1897_v39 = vld [vmem:[#allocation9 + $0x118] sm:$0xff]  ;;  %v1918_v42 = vld [vmem:[#allocation9 + $0x1c0] sm:$0xff]  ;;  %v1920_v20 = vld [vmem:[#allocation9 + $0x1d0] sm:$0xff] }
 0x279   :  { %2936 = vmatpush1.bf16.msra.mxu0 %v2935_v33  ;;  %3192 = vmatpush1.bf16.msra.mxu1 %v3191_v34  ;;  %v1261_v33 = vld [vmem:[#allocation6 + $0xfc8] sm:$0xff]  ;;  %v3275_v21 = vpack.c.bf16 %v1920_v20, %v1918_v42  ;;  %v2177_v49 = vld [vmem:[#allocation12 + $0xf8] sm:$0xff] }
 0x27a   :  { %2938 = vmatprep.subr.bf16.mxu0 %v2937_v38  ;;  %3194 = vmatprep.subr.bf16.mxu1 %v3193_v55  ;;  %v1265_v34 = vld [vmem:[#allocation6 + $0xfe8] sm:$0xff]  ;;  %v2955_v38 = vpack.c.bf16 %v1256_v27, %v1252_v26  ;;  %v3211_v55 = vpack.c.bf16 %v1258_v32, %v1254_v31  ;;  %v1889_v27 = vld [vmem:[#allocation9 + $0xd8] sm:$0xff]  ;;  %v1888_v31 = vld [vmem:[#allocation9 + $0xd0] sm:$0xff] }
 0x27b   :  { %v2957_v41 = vpack.c.bf16 %v1265_v34, %v1261_v33  ;;  %v1887_v26 = vld [vmem:[#allocation9 + $0xc8] sm:$0xff]  ;;  %v1893_v33 = vld [vmem:[#allocation9 + $0xf8] sm:$0xff]  ;;  %v1926_v20 = vld [vmem:[#allocation9 + $0x200] sm:$0xff] }
 0x27c   :  { %v1891_v32 = vld [vmem:[#allocation9 + $0xe8] sm:$0xff] }
 0x27d   :  { %2940 = vmatpush1.bf16.msra.mxu0 %v2939_v46  ;;  %3196 = vmatpush1.bf16.msra.mxu1 %v3195_v47  ;;  %v1266_v46 = vld [vmem:[#allocation6 + $0xff0] sm:$0xff]  ;;  %v3245_v35 = vpack.c.bf16 %v1893_v33, %v1891_v32  ;;  %v2146_v33 = vld [vmem:[#allocation12] sm:$0xff] }
 0x27e   :  { %2942 = vmatprep.subr.bf16.mxu0 %v2941_v51  ;;  %3198 = vmatprep.subr.bf16.mxu1 %v3197_v52  ;;  %v1863_v47 = vld [vmem:[#allocation9 + $0x8] sm:$0xff]  ;;  %v3215_v51 = vpack.c.bf16 %v1266_v46, %v1262_v45  ;;  %v744_v52 = vadd.f32 %v3923_v4, %v451_v40  ;;  %v1901_v46 = vld [vmem:[#allocation9 + $0x138] sm:$0xff] }
 0x27f   :  { %v3217_v5 = vpack.c.bf16 %v1865_v48, %v1863_v47  ;;  %v1899_v45 = vld [vmem:[#allocation9 + $0x128] sm:$0xff] }
 0x280   :  { %v754_v58 = vmax.f32 %v744_v52, 0.0  ;;  %v3253_v48 = vpack.c.bf16 %v1901_v46, %v1899_v45  ;;  %v1903_v52 = vld [vmem:[#allocation9 + $0x148] sm:$0xff] }
 0x281   :  { %2944 = vmatpush1.bf16.msra.mxu0 %v2943_v59  ;;  %3200 = vmatpush1.bf16.msra.mxu1 %v3199_v60  ;;  %v3221_v59 = vpack.c.bf16 %v1869_v56, %v1867_v54  ;;  %v1866_v60 = vld [vmem:[#allocation9 + $0x20] sm:$0xff]  ;;  %v1904_v56 = vld [vmem:[#allocation9 + $0x150] sm:$0xff] }
 0x282   :  { %2946 = vmatprep.subr.bf16.mxu0 %v2945_v17  ;;  %3202 = vmatprep.subr.bf16.mxu1 %v3201_v63  ;;  %v1873_v17 = vld [vmem:[#allocation9 + $0x58] sm:$0xff]  ;;  %v3223_v4 = vpack.c.bf16 %v1868_v61, %v1866_v60  ;;  %v1902_v54 = vld [vmem:[#allocation9 + $0x140] sm:$0xff]  ;;  %v2163_v32 = vld [vmem:[#allocation12 + $0x88] sm:$0xff] }
 0x283   :  { %v3225_v63 = vpack.c.bf16 %v1873_v17, %v1871_v62  ;;  %v1906_v61 = vld [vmem:[#allocation9 + $0x160] sm:$0xff]  ;;  %v1908_v62 = vld [vmem:[#allocation9 + $0x170] sm:$0xff]  ;;  %v1911_v17 = vld [vmem:[#allocation9 + $0x188] sm:$0xff] }
 0x285   :  { %2948 = vmatpush1.bf16.msra.mxu0 %v2947_v8  ;;  %3204 = vmatpush1.bf16.msra.mxu1 %v3203_v9  ;;  %v1874_v8 = vld [vmem:[#allocation9 + $0x60] sm:$0xff]  ;;  %v1876_v9 = vld [vmem:[#allocation9 + $0x70] sm:$0xff] }
 0x286   :  { %2950 = vmatprep.subr.bf16.mxu0 %v2949_v13  ;;  %3206 = vmatprep.subr.bf16.mxu1 %v3205_v14  ;;  %v3231_v13 = vpack.c.bf16 %v1876_v9, %v1874_v8  ;;  %v3233_v14 = vpack.c.bf16 %v1881_v11, %v1879_v10  ;;  %v1914_v9 = vld [vmem:[#allocation9 + $0x1a0] sm:$0xff]  ;;  %v1916_v10 = vld [vmem:[#allocation9 + $0x1b0] sm:$0xff]  ;;  %v1919_v11 = vld [vmem:[#allocation9 + $0x1c8] sm:$0xff] }
 0x289   :  { %2952 = vmatpush1.bf16.msra.mxu0 %v2951_v24  ;;  %3208 = vmatpush1.bf16.msra.mxu1 %v3207_v25  ;;  %v1882_v24 = vld [vmem:[#allocation9 + $0xa0] sm:$0xff]  ;;  %v1884_v25 = vld [vmem:[#allocation9 + $0xb0] sm:$0xff] }
 0x28a   :  { %2954 = vmatprep.subr.bf16.mxu0 %v2953_v29  ;;  %3210 = vmatprep.subr.bf16.mxu1 %v3209_v30  ;;  %v3239_v28 = vpack.c.bf16 %v1884_v25, %v1882_v24  ;;  %v3241_v29 = vpack.c.bf16 %v1889_v27, %v1887_v26  ;;  %v1886_v30 = vld [vmem:[#allocation9 + $0xc0] sm:$0xff]  ;;  %v1924_v26 = vld [vmem:[#allocation9 + $0x1f0] sm:$0xff] }
 0x28b   :  { %v3243_v34 = vpack.c.bf16 %v1888_v31, %v1886_v30  ;;  %v1922_v25 = vld [vmem:[#allocation9 + $0x1e0] sm:$0xff] }
 0x28c   :  { %v3279_v27 = vpack.c.bf16 %v1924_v26, %v1922_v25  ;;  %v2162_v31 = vld [vmem:[#allocation12 + $0x80] sm:$0xff]  ;;  %v1933_v25 = vld [vmem:[#allocation9 + $0x238] sm:$0xff] }
 0x28d   :  { %2956 = vmatpush1.bf16.msra.mxu0 %v2955_v38  ;;  %3212 = vmatpush1.bf16.msra.mxu1 %v3211_v55  ;;  %v1892_v38 = vld [vmem:[#allocation9 + $0xf0] sm:$0xff]  ;;  %v1895_v55 = vld [vmem:[#allocation9 + $0x108] sm:$0xff] }
 0x28e   :  { %2958 = vmatprep.subr.bf16.mxu0 %v2957_v41  ;;  %3214 = vmatprep.subr.bf16.mxu1 %v3213_v43  ;;  %v3247_v40 = vpack.c.bf16 %v1892_v38, %v1890_v37  ;;  %v3249_v41 = vpack.c.bf16 %v1897_v39, %v1895_v55  ;;  %v1894_v43 = vld [vmem:[#allocation9 + $0x100] sm:$0xff]  ;;  %v2164_v37 = vld [vmem:[#allocation12 + $0x90] sm:$0xff] }
 0x28f   :  { %v3251_v47 = vpack.c.bf16 %v1896_v44, %v1894_v43  ;;  %v2165_v38 = vld [vmem:[#allocation12 + $0x98] sm:$0xff]  ;;  %v2166_v43 = vld [vmem:[#allocation12 + $0xa0] sm:$0xff]  ;;  %v2167_v44 = vld [vmem:[#allocation12 + $0xa8] sm:$0xff] }
 0x290   :  { %v3349_v39 = vpack.c.bf16 %v2165_v38, %v2164_v37  ;;  %v3353_v46 = vpack.c.bf16 %v2167_v44, %v2166_v43  ;;  %v1934_v37 = vld [vmem:[#allocation9 + $0x240] sm:$0xff]  ;;  %v1936_v38 = vld [vmem:[#allocation9 + $0x250] sm:$0xff] }
 0x291   :  { %2960 = vmatpush1.bf16.msra.mxu0 %v2959_v50  ;;  %3216 = vmatpush1.bf16.msra.mxu1 %v3215_v51  ;;  %v1898_v50 = vld [vmem:[#allocation9 + $0x120] sm:$0xff]  ;;  %v1900_v51 = vld [vmem:[#allocation9 + $0x130] sm:$0xff] }
 0x292   :  { %3218 = vmatprep.subr.bf16.mxu0 %v3217_v5  ;;  %v1905_v5 = vld [vmem:[#allocation9 + $0x158] sm:$0xff]  ;;  %v3255_v53 = vpack.c.bf16 %v1900_v51, %v1898_v50  ;;  %v1938_v43 = vld [vmem:[#allocation9 + $0x260] sm:$0xff]  ;;  %v1940_v44 = vld [vmem:[#allocation9 + $0x270] sm:$0xff] }
 0x293   :  { %v3257_v2 = vpack.c.bf16 %v1905_v5, %v1903_v52  ;;  %v2168_v50 = vld [vmem:[#allocation12 + $0xb0] sm:$0xff]  ;;  %v2169_v51 = vld [vmem:[#allocation12 + $0xb8] sm:$0xff] }
 0x294   :  { %1568 = vmatmul.mubr.f32.vlgmr.msra.gmra.mrb[4].mxu0 %v754_v58  ;;  %1852 = vmatmul.mubr.f32.vlgmr.msra.gmra.mrb[4].mxu1 %v754_v58  ;;  %v1909_v58 = vld [vmem:[#allocation9 + $0x178] sm:$0xff]  ;;  %v3357_v5 = vpack.c.bf16 %v2169_v51, %v2168_v50  ;;  %v1942_v50 = vld [vmem:[#allocation9 + $0x280] sm:$0xff]  ;;  %v1944_v51 = vld [vmem:[#allocation9 + $0x290] sm:$0xff] }
 0x295   :  { %3220 = vmatpush1.bf16.msra.mxu0 %v3219_v57  ;;  %v1907_v57 = vld [vmem:[#allocation9 + $0x168] sm:$0xff] }
 0x296   :  { %3222 = vmatprep.subr.bf16.mxu0 %v3221_v59  ;;  %v3259_v59 = vpack.c.bf16 %v1904_v56, %v1902_v54  ;;  %v3261_v60 = vpack.c.bf16 %v1909_v58, %v1907_v57  ;;  %v2170_v54 = vld [vmem:[#allocation12 + $0xc0] sm:$0xff]  ;;  %v2171_v56 = vld [vmem:[#allocation12 + $0xc8] sm:$0xff] }
 0x297   :  { %v3361_v58 = vpack.c.bf16 %v2171_v56, %v2170_v54  ;;  %v1946_v54 = vld [vmem:[#allocation9 + $0x2a0] sm:$0xff]  ;;  %v1948_v56 = vld [vmem:[#allocation9 + $0x2b0] sm:$0xff] }
 0x299   :  { %3224 = vmatpush1.bf16.msra.mxu0 %v3223_v4  ;;  %v1913_v4 = vld [vmem:[#allocation9 + $0x198] sm:$0xff] }
 0x29a   :  { %3226 = vmatprep.subr.bf16.mxu0 %v3225_v63  ;;  %v3263_v63 = vpack.c.bf16 %v1908_v62, %v1906_v61  ;;  %v3265_v36 = vpack.c.bf16 %v1913_v4, %v1911_v17  ;;  %v2172_v61 = vld [vmem:[#allocation12 + $0xd0] sm:$0xff]  ;;  %v2173_v62 = vld [vmem:[#allocation12 + $0xd8] sm:$0xff] }
 0x29b   :  { %v3365_v4 = vpack.c.bf16 %v2173_v62, %v2172_v61  ;;  %v1950_v61 = vld [vmem:[#allocation9 + $0x2c0] sm:$0xff]  ;;  %v1952_v62 = vld [vmem:[#allocation9 + $0x2d0] sm:$0xff] }
 0x29d   :  { %3228 = vmatpush1.bf16.msra.mxu0 %v3227_v6  ;;  %v1917_v6 = vld [vmem:[#allocation9 + $0x1b8] sm:$0xff] }
 0x29e   :  { %3230 = vmatprep.subr.bf16.mxu0 %v3229_v7  ;;  %v3267_v7 = vpack.c.bf16 %v1912_v1, %v1910_v0  ;;  %v3269_v8 = vpack.c.bf16 %v1917_v6, %v1915_v3  ;;  %v2174_v0 = vld [vmem:[#allocation12 + $0xe0] sm:$0xff]  ;;  %v2175_v1 = vld [vmem:[#allocation12 + $0xe8] sm:$0xff] }
 0x29f   :  { %v3369_v6 = vpack.c.bf16 %v2175_v1, %v2174_v0  ;;  %v1954_v0 = vld [vmem:[#allocation9 + $0x2e0] sm:$0xff]  ;;  %v1956_v1 = vld [vmem:[#allocation9 + $0x2f0] sm:$0xff] }
 0x2a1   :  { %3232 = vmatpush1.bf16.msra.mxu0 %v3231_v13  ;;  %v1921_v13 = vld [vmem:[#allocation9 + $0x1d8] sm:$0xff] }
 0x2a2   :  { %3234 = vmatprep.subr.bf16.mxu0 %v3233_v14  ;;  %v3271_v14 = vpack.c.bf16 %v1916_v10, %v1914_v9  ;;  %v3273_v15 = vpack.c.bf16 %v1921_v13, %v1919_v11 }
 0x2a5   :  { %3236 = vmatpush1.bf16.msra.mxu0 %v3235_v22  ;;  %v1923_v22 = vld [vmem:[#allocation9 + $0x1e8] sm:$0xff] }
 0x2a6   :  { %3238 = vmatprep.subr.bf16.mxu0 %v3237_v23  ;;  %v1925_v23 = vld [vmem:[#allocation9 + $0x1f8] sm:$0xff] }
 0x2a7   :  { %v3277_v24 = vpack.c.bf16 %v1925_v23, %v1923_v22 }
 0x2a9   :  { %3240 = vmatpush1.bf16.msra.mxu0 %v3239_v28  ;;  %v1927_v28 = vld [vmem:[#allocation9 + $0x208] sm:$0xff] }
 0x2aa   :  { %3242 = vmatprep.subr.bf16.mxu0 %v3241_v29  ;;  %v1929_v29 = vld [vmem:[#allocation9 + $0x218] sm:$0xff] }
 0x2ab   :  { %v3281_v30 = vpack.c.bf16 %v1929_v29, %v1927_v28 }
 0x2ad   :  { %3244 = vmatpush1.bf16.msra.mxu0 %v3243_v34  ;;  %v3345_v34 = vpack.c.bf16 %v2163_v32, %v2162_v31  ;;  %v1932_v31 = vld [vmem:[#allocation9 + $0x230] sm:$0xff] }
 0x2ae   :  { %3246 = vmatprep.subr.bf16.mxu0 %v3245_v35  ;;  %v2147_v35 = vld [vmem:[#allocation12 + $0x8] sm:$0xff] }
 0x2af   :  { %v3347_v55 = vpack.c.bf16 %v2147_v35, %v2146_v33  ;;  %3346 = vmatprep.subr.bf16.mxu1 %v3345_v34  ;;  %v1937_v33 = vld [vmem:[#allocation9 + $0x258] sm:$0xff] }
 0x2b1   :  { %3248 = vmatpush1.bf16.msra.mxu0 %v3247_v40  ;;  %v2148_v40 = vld [vmem:[#allocation12 + $0x10] sm:$0xff]  ;;  %3348 = vmatpush3.bf16.msra.mxu1 %v3347_v55  ;;  %v1939_v55 = vld [vmem:[#allocation9 + $0x268] sm:$0xff] }
 0x2b2   :  { %3250 = vmatprep.subr.bf16.mxu0 %v3249_v41  ;;  %v2149_v41 = vld [vmem:[#allocation12 + $0x18] sm:$0xff]  ;;  %3350 = vmatprep.subr.bf16.mxu1 %v3349_v39 }
 0x2b3   :  { %v3351_v45 = vpack.c.bf16 %v2149_v41, %v2148_v40  ;;  %v1941_v39 = vld [vmem:[#allocation9 + $0x278] sm:$0xff]  ;;  %v3291_v40 = vpack.c.bf16 %v1936_v38, %v1934_v37 }
 0x2b4   :  { %v3293_v41 = vpack.c.bf16 %v1941_v39, %v1939_v55  ;;  %v1974_v55 = vld [vmem:[#allocation9 + $0x380] sm:$0xff]  ;;  %v1976_v39 = vld [vmem:[#allocation9 + $0x390] sm:$0xff] }
 0x2b5   :  { %3252 = vmatpush1.bf16.msra.mxu0 %v3251_v47  ;;  %v2150_v47 = vld [vmem:[#allocation12 + $0x20] sm:$0xff]  ;;  %3352 = vmatpush3.bf16.msra.mxu1 %v3351_v45 }
 0x2b6   :  { %3254 = vmatprep.subr.bf16.mxu0 %v3253_v48  ;;  %v2151_v48 = vld [vmem:[#allocation12 + $0x28] sm:$0xff]  ;;  %3354 = vmatprep.subr.bf16.mxu1 %v3353_v46  ;;  %v1945_v46 = vld [vmem:[#allocation9 + $0x298] sm:$0xff] }
 0x2b7   :  { %v3355_v52 = vpack.c.bf16 %v2151_v48, %v2150_v47  ;;  %v1943_v45 = vld [vmem:[#allocation9 + $0x288] sm:$0xff]  ;;  %v3295_v47 = vpack.c.bf16 %v1940_v44, %v1938_v43  ;;  %v3331_v43 = vpack.c.bf16 %v1976_v39, %v1974_v55  ;;  %v2270_v55 = vld [vmem:[#allocation15 + $0x70] sm:$0xff]  ;;  %v2271_v39 = vld [vmem:[#allocation15 + $0x78] sm:$0xff] }
 0x2b8   :  { %v3297_v48 = vpack.c.bf16 %v1945_v46, %v1943_v45  ;;  %v1978_v45 = vld [vmem:[#allocation9 + $0x3a0] sm:$0xff]  ;;  %v1980_v46 = vld [vmem:[#allocation9 + $0x3b0] sm:$0xff] }
 0x2b9   :  { %3256 = vmatpush1.bf16.msra.mxu0 %v3255_v53  ;;  %v2152_v53 = vld [vmem:[#allocation12 + $0x30] sm:$0xff]  ;;  %3356 = vmatpush3.bf16.msra.mxu1 %v3355_v52  ;;  %v1947_v52 = vld [vmem:[#allocation9 + $0x2a8] sm:$0xff] }
 0x2ba   :  { %3258 = vmatprep.subr.bf16.mxu0 %v3257_v2  ;;  %v2153_v2 = vld [vmem:[#allocation12 + $0x38] sm:$0xff]  ;;  %3358 = vmatprep.subr.bf16.mxu1 %v3357_v5 }
 0x2bb   :  { %v3359_v57 = vpack.c.bf16 %v2153_v2, %v2152_v53  ;;  %v1949_v5 = vld [vmem:[#allocation9 + $0x2b8] sm:$0xff]  ;;  %v3299_v53 = vpack.c.bf16 %v1944_v51, %v1942_v50  ;;  %v3335_v50 = vpack.c.bf16 %v1980_v46, %v1978_v45 }
 0x2bc   :  { %v3301_v2 = vpack.c.bf16 %v1949_v5, %v1947_v52  ;;  %v1982_v52 = vld [vmem:[#allocation9 + $0x3c0] sm:$0xff]  ;;  %v1984_v5 = vld [vmem:[#allocation9 + $0x3d0] sm:$0xff] }
 0x2bd   :  { %3260 = vmatpush1.bf16.msra.mxu0 %v3259_v59  ;;  %v2154_v59 = vld [vmem:[#allocation12 + $0x40] sm:$0xff]  ;;  %3360 = vmatpush3.bf16.msra.mxu1 %v3359_v57 }
 0x2be   :  { %3262 = vmatprep.subr.bf16.mxu0 %v3261_v60  ;;  %v2155_v60 = vld [vmem:[#allocation12 + $0x48] sm:$0xff]  ;;  %3362 = vmatprep.subr.bf16.mxu1 %v3361_v58  ;;  %v1953_v58 = vld [vmem:[#allocation9 + $0x2d8] sm:$0xff] }
 0x2bf   :  { %v3363_v17 = vpack.c.bf16 %v2155_v60, %v2154_v59  ;;  %v1951_v57 = vld [vmem:[#allocation9 + $0x2c8] sm:$0xff]  ;;  %v3303_v59 = vpack.c.bf16 %v1948_v56, %v1946_v54  ;;  %v3339_v54 = vpack.c.bf16 %v1984_v5, %v1982_v52 }
 0x2c0   :  { %v3305_v60 = vpack.c.bf16 %v1953_v58, %v1951_v57  ;;  %v1986_v58 = vld [vmem:[#allocation9 + $0x3e0] sm:$0xff] }
 0x2c1   :  { %3264 = vmatpush1.bf16.msra.mxu0 %v3263_v63  ;;  %v2156_v63 = vld [vmem:[#allocation12 + $0x50] sm:$0xff]  ;;  %3364 = vmatpush3.bf16.msra.mxu1 %v3363_v17  ;;  %v1955_v17 = vld [vmem:[#allocation9 + $0x2e8] sm:$0xff] }
 0x2c2   :  { %3266 = vmatprep.subr.bf16.mxu0 %v3265_v36  ;;  %v2157_v36 = vld [vmem:[#allocation12 + $0x58] sm:$0xff]  ;;  %3366 = vmatprep.subr.bf16.mxu1 %v3365_v4 }
 0x2c3   :  { %v3367_v3 = vpack.c.bf16 %v2157_v36, %v2156_v63  ;;  %v1957_v4 = vld [vmem:[#allocation9 + $0x2f8] sm:$0xff]  ;;  %v3307_v63 = vpack.c.bf16 %v1952_v62, %v1950_v61 }
 0x2c4   :  { %v3309_v36 = vpack.c.bf16 %v1957_v4, %v1955_v17  ;;  %v2158_v17 = vld [vmem:[#allocation12 + $0x60] sm:$0xff]  ;;  %v2159_v4 = vld [vmem:[#allocation12 + $0x68] sm:$0xff] }
 0x2c5   :  { %3268 = vmatpush1.bf16.msra.mxu0 %v3267_v7  ;;  %3368 = vmatpush3.bf16.msra.mxu1 %v3367_v3  ;;  %v3938_v7 = vld [vmem:[#allocation7] sm:$0xf]  ;;  %v1959_v3 = vld [vmem:[#allocation9 + $0x308] sm:$0xff] }
 0x2c6   :  { %3270 = vmatprep.subr.bf16.mxu0 %v3269_v8  ;;  %3370 = vmatprep.subr.bf16.mxu1 %v3369_v6  ;;  %v1273_v8 = vrot.slane %v3938_v7, %v3897_v16  ;;  %v1277_v9 = vrot.slane %v3938_v7, %v3902_v18  ;;  %v1285_v10 = vrot.slane %v3938_v7, %v438_v12  ;;  %v1935_v12 = vld [vmem:[#allocation9 + $0x248] sm:$0xff]  ;;  %v1961_v6 = vld [vmem:[#allocation9 + $0x318] sm:$0xff] }
 0x2c7   :  { %v3289_v35 = vpack.c.bf16 %v1937_v33, %v1935_v12  ;;  %v1970_v12 = vld [vmem:[#allocation9 + $0x360] sm:$0xff]  ;;  %v1972_v33 = vld [vmem:[#allocation9 + $0x370] sm:$0xff]  ;;  %v1281_v56 = vrot.slane %v3938_v7, %v434_v19 }
 0x2c8   :  { %v3327_v37 = vpack.c.bf16 %v1972_v33, %v1970_v12  ;;  %v2160_v19 = vld [vmem:[#allocation12 + $0x70] sm:$0xff]  ;;  %v2161_v7 = vld [vmem:[#allocation12 + $0x78] sm:$0xff] }
 0x2c9   :  { %3272 = vmatpush1.bf16.msra.mxu0 %v3271_v14  ;;  %v2266_v12 = vld [vmem:[#allocation15 + $0x50] sm:$0xff]  ;;  %v2267_v33 = vld [vmem:[#allocation15 + $0x58] sm:$0xff] }
 0x2ca   :  { %3274 = vmatprep.subr.bf16.mxu0 %v3273_v15 }
 0x2cd   :  { %3276 = vmatpush1.bf16.msra.mxu0 %v3275_v21  ;;  %v1928_v21 = vld [vmem:[#allocation9 + $0x210] sm:$0xff] }
 0x2ce   :  { %3278 = vmatprep.subr.bf16.mxu0 %v3277_v24  ;;  %v1931_v24 = vld [vmem:[#allocation9 + $0x228] sm:$0xff] }
 0x2cf   :  { %v3285_v29 = vpack.c.bf16 %v1933_v25, %v1931_v24  ;;  %v1969_v24 = vld [vmem:[#allocation9 + $0x358] sm:$0xff] }
 0x2d1   :  { %3280 = vmatpush1.bf16.msra.mxu0 %v3279_v27  ;;  %v3283_v27 = vpack.c.bf16 %v1928_v21, %v1926_v20  ;;  %v1962_v21 = vld [vmem:[#allocation9 + $0x320] sm:$0xff] }
 0x2d2   :  { %3282 = vmatprep.subr.bf16.mxu0 %v3281_v30  ;;  %v1930_v30 = vld [vmem:[#allocation9 + $0x220] sm:$0xff] }
 0x2d3   :  { %v3287_v34 = vpack.c.bf16 %v1932_v31, %v1930_v30  ;;  %v1973_v30 = vld [vmem:[#allocation9 + $0x378] sm:$0xff] }
 0x367   :  { %v1569_v11 = vpop.f32.mrb[4].mxu0  ;;  %v3947_v13 = vpop.f32.mrb[4].mxu1 }
 0x368   :  { %v3401_v14 = vadd.f32 %v1569_v11, %v1273_v8  ;;  %v1571_v15 = vpop.f32.mrb[5].mxu0  ;;  %v1855_v42 = vpop.f32.mrb[5].mxu1  ;;  %v3311_v8 = vpack.c.bf16 %v1956_v1, %v1954_v0  ;;  %v1960_v11 = vld [vmem:[#allocation9 + $0x310] sm:$0xff]  ;;  %v3403_v61 = vadd.f32 %v3947_v13, %v1281_v56  ;;  %v3375_v1 = vpack.c.bf16 %v2161_v7, %v2160_v19 }
 0x369   :  { %v3402_v22 = vadd.f32 %v1571_v15, %v1277_v9  ;;  %v3404_v23 = vadd.f32 %v1855_v42, %v1285_v10  ;;  %v3313_v9 = vpack.c.bf16 %v1961_v6, %v1959_v3  ;;  %v1958_v10 = vld [vmem:[#allocation9 + $0x300] sm:$0xff]  ;;  %v1965_v15 = vld [vmem:[#allocation9 + $0x338] sm:$0xff]  ;;  %v3693_v3 = vmov 0.0|0.0  }
 0x36a   :  { %v1858_v28 = vmax.f32 %v3401_v14, 0.0  ;;  %v1963_v14 = vld [vmem:[#allocation9 + $0x328] sm:$0xff]  ;;  %v3315_v42 = vpack.c.bf16 %v1960_v11, %v1958_v10  ;;  %v1860_v62 = vmax.f32 %v3403_v61, 0.0  ;;  %v1990_v6 = vld [vmem:[#allocation10] sm:$0x3] }
 0x36b   :  { %v1859_v26 = vmax.f32 %v3402_v22, 0.0  ;;  %v1861_v32 = vmax.f32 %v3404_v23, 0.0  ;;  %v3317_v20 = vpack.c.bf16 %v1965_v15, %v1963_v14  ;;  %v1964_v22 = vld [vmem:[#allocation9 + $0x330] sm:$0xff]  ;;  %v1967_v23 = vld [vmem:[#allocation9 + $0x348] sm:$0xff]  ;;  %v1995_v13 = vrot.slane %v1990_v6, %v3897_v16 }
 0x36c   :  { %v3319_v25 = vpack.c.bf16 %v1964_v22, %v1962_v21  ;;  %v2256_v14 = vld [vmem:[#allocation15] sm:$0xff]  ;;  %v2257_v15 = vld [vmem:[#allocation15 + $0x8] sm:$0xff] }
 0x36d   :  { %2066 = vmatprep.mubr.f32.mxu0 %v1859_v26  ;;  %v3321_v26 = vpack.c.bf16 %v1969_v24, %v1967_v23  ;;  %v3378_v21 = vpack.c.bf16 %v2257_v15, %v2256_v14  ;;  %v2258_v23 = vld [vmem:[#allocation15 + $0x10] sm:$0xff]  ;;  %v2259_v24 = vld [vmem:[#allocation15 + $0x18] sm:$0xff]  ;;  %v2261_v16 = vld [vmem:[#allocation15 + $0x28] sm:$0xff] }
 0x36e   :  { %2067 = vmatmul.mubr.f32.vlgmr.msra.gmra.mrb[6].mxu0 %v1858_v28  ;;  %v1968_v28 = vld [vmem:[#allocation9 + $0x350] sm:$0xff] }
 0x36f   :  { %3284 = vmatpush1.bf16.msra.mxu0 %v3283_v27  ;;  %2137 = vmatprep.mubr.f32.mxu0 %v1861_v32  ;;  %v1966_v27 = vld [vmem:[#allocation9 + $0x340] sm:$0xff] }
 0x370   :  { %3286 = vmatprep.subr.bf16.mxu0 %v3285_v29  ;;  %v1971_v29 = vld [vmem:[#allocation9 + $0x368] sm:$0xff]  ;;  %v3323_v31 = vpack.c.bf16 %v1968_v28, %v1966_v27  ;;  %v2262_v27 = vld [vmem:[#allocation15 + $0x30] sm:$0xff]  ;;  %v2263_v28 = vld [vmem:[#allocation15 + $0x38] sm:$0xff] }
 0x371   :  { %v3325_v32 = vpack.c.bf16 %v1973_v30, %v1971_v29  ;;  %v3387_v29 = vpack.c.bf16 %v2263_v28, %v2262_v27  ;;  %v2264_v30 = vld [vmem:[#allocation15 + $0x40] sm:$0xff] }
 0x373   :  { %3288 = vmatpush1.bf16.msra.mxu0 %v3287_v34  ;;  %v1975_v34 = vld [vmem:[#allocation9 + $0x388] sm:$0xff] }
 0x374   :  { %3290 = vmatprep.subr.bf16.mxu0 %v3289_v35  ;;  %v1977_v35 = vld [vmem:[#allocation9 + $0x398] sm:$0xff] }
 0x375   :  { %v3329_v38 = vpack.c.bf16 %v1977_v35, %v1975_v34  ;;  %v3393_v34 = vpack.c.bf16 %v2267_v33, %v2266_v12  ;;  %v2268_v35 = vld [vmem:[#allocation15 + $0x60] sm:$0xff] }
 0x377   :  { %3292 = vmatpush1.bf16.msra.mxu0 %v3291_v40  ;;  %v1979_v40 = vld [vmem:[#allocation9 + $0x3a8] sm:$0xff] }
 0x378   :  { %3294 = vmatprep.subr.bf16.mxu0 %v3293_v41  ;;  %v1981_v41 = vld [vmem:[#allocation9 + $0x3b8] sm:$0xff] }
 0x379   :  { %v3333_v44 = vpack.c.bf16 %v1981_v41, %v1979_v40  ;;  %v3399_v40 = vpack.c.bf16 %v2271_v39, %v2270_v55  ;;  %v3695_v41 = vmov 0.0  }
 0x37b   :  { %3296 = vmatpush1.bf16.msra.mxu0 %v3295_v47  ;;  %v1983_v47 = vld [vmem:[#allocation9 + $0x3c8] sm:$0xff] }
 0x37c   :  { %3298 = vmatprep.subr.bf16.mxu0 %v3297_v48  ;;  %v1985_v48 = vld [vmem:[#allocation9 + $0x3d8] sm:$0xff] }
 0x37d   :  { %v3337_v51 = vpack.c.bf16 %v1985_v48, %v1983_v47 }
 0x37f   :  { %3300 = vmatpush1.bf16.msra.mxu0 %v3299_v53  ;;  %v1987_v53 = vld [vmem:[#allocation9 + $0x3e8] sm:$0xff] }
 0x380   :  { %3302 = vmatprep.subr.bf16.mxu0 %v3301_v2  ;;  %v1989_v2 = vld [vmem:[#allocation9 + $0x3f8] sm:$0xff] }
 0x381   :  { %v3341_v57 = vpack.c.bf16 %v1989_v2, %v1987_v53 }
 0x383   :  { %3304 = vmatpush1.bf16.msra.mxu0 %v3303_v59  ;;  %v1988_v59 = vld [vmem:[#allocation9 + $0x3f0] sm:$0xff] }
 0x384   :  { %3306 = vmatprep.subr.bf16.mxu0 %v3305_v60  ;;  %v3343_v60 = vpack.c.bf16 %v1988_v59, %v1986_v58 }
 0x387   :  { %3308 = vmatpush1.bf16.msra.mxu0 %v3307_v63  ;;  %v3371_v63 = vpack.c.bf16 %v2159_v4, %v2158_v17 }
 0x388   :  { %3310 = vmatprep.subr.bf16.mxu0 %v3309_v36  ;;  %v2176_v36 = vld [vmem:[#allocation12 + $0xf0] sm:$0xff] }
 0x389   :  { %3372 = vmatpush3.bf16.msra.mxu1 %v3371_v63  ;;  %v3373_v0 = vpack.c.bf16 %v2177_v49, %v2176_v36 }
 0x38b   :  { %3312 = vmatpush1.bf16.msra.mxu0 %v3311_v8  ;;  %3374 = vmatprep.subr.bf16.mxu1 %v3373_v0  ;;  %v1999_v8 = vrot.slane %v1990_v6, %v3902_v18 }
 0x38c   :  { %3314 = vmatprep.subr.bf16.mxu0 %v3313_v9 }
 0x38d   :  { %3376 = vmatpush3.bf16.msra.mxu1 %v3375_v1 }
 0x38e   :  { %3377 = vmatprep.subr.bf16.mxu1 %v3693_v3 }
 0x38f   :  { %3316 = vmatpush1.bf16.msra.mxu0 %v3315_v42 }
 0x390   :  { %3318 = vmatprep.subr.bf16.mxu0 %v3317_v20 }
 0x393   :  { %3320 = vmatpush1.bf16.msra.mxu0 %v3319_v25  ;;  %v3381_v25 = vpack.c.bf16 %v2259_v24, %v2258_v23 }
 0x394   :  { %3322 = vmatprep.subr.bf16.mxu0 %v3321_v26  ;;  %v2260_v26 = vld [vmem:[#allocation15 + $0x20] sm:$0xff] }
 0x395   :  { %v3384_v18 = vpack.c.bf16 %v2261_v16, %v2260_v26 }
 0x397   :  { %3324 = vmatpush1.bf16.msra.mxu0 %v3323_v31  ;;  %v2265_v31 = vld [vmem:[#allocation15 + $0x48] sm:$0xff] }
 0x398   :  { %3326 = vmatprep.subr.bf16.mxu0 %v3325_v32  ;;  %v3390_v32 = vpack.c.bf16 %v2265_v31, %v2264_v30 }
 0x39b   :  { %3328 = vmatpush1.bf16.msra.mxu0 %v3327_v37  ;;  %v2269_v37 = vld [vmem:[#allocation15 + $0x68] sm:$0xff] }
 0x39c   :  { %3330 = vmatprep.subr.bf16.mxu0 %v3329_v38  ;;  %v3396_v38 = vpack.c.bf16 %v2269_v37, %v2268_v35 }
 0x39f   :  { %3332 = vmatpush1.bf16.msra.mxu0 %v3331_v43 }
 0x3a0   :  { %3334 = vmatprep.subr.bf16.mxu0 %v3333_v44  ;;  %v2360_v44 = vld [vmem:[#allocation13] ss:$0 sm:$0xff] }
 0x3a3   :  { %3336 = vmatpush1.bf16.msra.mxu0 %v3335_v50  ;;  %v2361_v50 = vld [vmem:[#allocation16] ss:$0 sm:$0xff] }
 0x3a4   :  { %3338 = vmatprep.subr.bf16.mxu0 %v3337_v51 }
 0x3a7   :  { %3340 = vmatpush1.bf16.msra.mxu0 %v3339_v54 }
 0x3a8   :  { %3342 = vmatprep.subr.bf16.mxu0 %v3341_v57 }
 0x3ab   :  { %3344 = vmatpush1.bf16.msra.mxu0 %v3343_v60 }
 0x3ae   :  { %2138 = vmatmul.mubr.f32.vlgmr.msra.gmra.mrb[6].mxu0 %v1860_v62 }
 0x481   :  { %v2139_v9 = vpop.f32.mrb[6].mxu0 }
 0x482   :  { %v3405_v10 = vadd.f32 %v2139_v9, %v1995_v13  ;;  %v2141_v11 = vpop.f32.mrb[7].mxu0 }
 0x483   :  { %v3406_v42 = vadd.f32 %v2141_v11, %v1999_v8 }
 0x484   :  { %v2144_v22 = vmax.f32 %v3405_v10, 0.0 }
 0x485   :  { %v2145_v20 = vmax.f32 %v3406_v42, 0.0 }
 0x487   :  { %2249 = vmatprep.mubr.f32.mxu1 %v2145_v20 }
 0x488   :  { %2250 = vmatmul.mubr.f32.vlgmr.msra.gmra.mrb[6].mxu1 %v2144_v22 }
 0x489   :  { %3379 = vmatpush3.bf16.msra.mxu1 %v3378_v21  ;;  %2446 = vmatprep.mubr.msk.f32.mxu1 %vm3694_vm0, %v3695_v41 }
 0x48a   :  { %3380 = vmatprep.subr.bf16.mxu1 %v3693_v3 }
 0x48d   :  { %3382 = vmatpush3.bf16.msra.mxu1 %v3381_v25 }
 0x48e   :  { %3383 = vmatprep.subr.bf16.mxu1 %v3693_v3 }
 0x491   :  { %3385 = vmatpush3.bf16.msra.mxu1 %v3384_v18 }
 0x492   :  { %3386 = vmatprep.subr.bf16.mxu1 %v3693_v3 }
 0x495   :  { %3388 = vmatpush3.bf16.msra.mxu1 %v3387_v29 }
 0x496   :  { %3389 = vmatprep.subr.bf16.mxu1 %v3693_v3 }
 0x499   :  { %3391 = vmatpush3.bf16.msra.mxu1 %v3390_v32 }
 0x49a   :  { %3392 = vmatprep.subr.bf16.mxu1 %v3693_v3 }
 0x49d   :  { %3394 = vmatpush3.bf16.msra.mxu1 %v3393_v34 }
 0x49e   :  { %3395 = vmatprep.subr.bf16.mxu1 %v3693_v3 }
 0x4a1   :  { %3397 = vmatpush3.bf16.msra.mxu1 %v3396_v38 }
 0x4a2   :  { %3398 = vmatprep.subr.bf16.mxu1 %v3693_v3 }
 0x4a5   :  { %3400 = vmatpush3.bf16.msra.mxu1 %v3399_v40 }
 0x55b   :  { %v2394_v43 = vpop.f32.mrb[6].mxu1 }
 0x55c   :  { %v2395_v45 = vpop.f32.mrb[7].mxu1 }
 0x55d   :  { %v2396_v46 = vadd.f32 %v2395_v45, %v2394_v43 }
 0x55f   :  { %v2252_v47 = vadd.f32 %v2396_v46, %v2360_v44 }
 0x561   :  { %v2255_v48 = vmax.f32 %v2252_v47, 0.0 }
 0x563   :  { %2447 = vmatmul.mubr.f32.vlgmr.msra.gmra.mrb[8].mxu1 %v2255_v48 }
 0x636   :  { %v2345_v51 = vpop.f32.mrb[8].mxu1 }
 0x637   :  { %v2346_v52 = vadd.f32 %v2361_v50, %v2345_v51  ;;  %v2448_v5 = vpop.f32.mrb[9].mxu1 }
 0x639   :  { %2349 = vst [vmem:[%s3969_s11] sm:$0xff] %v2346_v52 }
 0x63a   :  { %2354 = vsyncpa [#allocation3], 1 }
 0x63b   :  { %2355 = vsyncpa [#allocation5], 1 }
 0x63c   :  { %2356 = vsyncpa [#allocation8], 1 }
 0x63d   :  { %2357 = vsyncpa [#allocation11], 1 }
 0x63e   :  { %2358 = vsyncpa [#allocation14], 1 }
 0x63f   :  { %2359 = vsyncpa [#allocation17], 1 }

</bundles_post_ra>
